<compile_context>
chip_gen: v6e
topology: v6e:2x2x1
jax: 0.10.0
libtpu: 0.0.40
codegen_flags: <defaults>
</compile_context>

<pallas_src>
import functools
import numpy as np
import jax
import jax.numpy as jnp
from jax import lax
from jax.experimental import pallas as pl
from jax.experimental.pallas import tpu as pltpu

# ---------------------------------------------------------------------------
# Deterministic synthetic ANI parameters (single species), as Python scalars.
# ---------------------------------------------------------------------------
RCR = 5.2                                     # radial cutoff
RCA = 3.5                                     # angular cutoff
ETA_R = 16.0
ETA_A = 8.0
ZETA = 32                                     # integer exponent
SHF_R = [float(v) for v in np.linspace(0.9, RCR, 17)[:16]]                    # 16 radial shifts
SHF_A = [float(v) for v in np.linspace(0.9, RCA, 5)[:4]]                      # 4 angular-radial shifts
SHF_Z = [float(v) for v in (np.linspace(0.0, np.pi, 9)[:8] + np.pi / 16.0)]   # 8 angle shifts
COS_Z = [float(np.cos(v)) for v in SHF_Z]
SIN_Z = [float(np.sin(v)) for v in SHF_Z]

N_RAD = len(SHF_R)                            # 16
N_SHF_A = len(SHF_A)                          # 4
N_SHF_Z = len(SHF_Z)                          # 8
N_ANG = N_SHF_A * N_SHF_Z                     # 32
AEV_LEN = N_RAD + N_ANG                       # 48

TILE_JK = 128                                 # lane-dense neighbor block width
OUT_LANES = 128                               # lane-dense output slab width
EPS = 1e-12                                   # guards sqrt / reciprocal for coincident atoms
SCALE_Q = 1024.0                              # integer quantization for the bbox early exit


def _int_pow(x, n: int):
    """x ** n for a Python int n >= 1 via an explicit binary-exponentiation mul chain."""
    result = None
    while True:
        if n & 1:
            result = x if result is None else result * x
        n >>= 1
        if n == 0:
            return result
        x = x * x


def _fcut(r, rc):
    """ANI cosine cutoff: 0.5*cos(pi*r/rc)+0.5 for r < rc, else 0."""
    return (0.5 * jnp.cos((np.pi / rc) * r) + 0.5) * (r < rc).astype(jnp.float32)


def ani_aev_kernel(ci_ref, cqb_ref, cq_sc_ref, qcrd_ref, qbox_ref, out_ref,
                   pacc_ref, *, n_atoms: int):
    # ci_ref   : (TILE_I, 128)        center-atom coords, xyz in lanes 0..2      (VMEM)
    # cqb_ref  : (nb, 8, TILE_JK)     neighbor blocks, rows 0..2 xyz, row 3 q    (VMEM)
    # cq_sc_ref: (4*n_jk,) f32        flat scalar table [x | y | z | q]          (SMEM)
    # qcrd_ref : (3*n_jk,) i32        quantized coords  [qx | qy | qz]           (SMEM)
    # qbox_ref : (grid*8,) i32        per-tile RCA-expanded bbox (lo xyz, hi xyz)(SMEM)
    # out_ref  : (TILE_I, 128)        lanes 0..15 radial, 16..47 angular, rest 0
    # pacc_ref : (32, TILE_I, 128)    lane-dense angular partial sums            (VMEM scratch)
    ti = ci_ref.shape[0]
    nb = cqb_ref.shape[0]
    tjk = cqb_ref.shape[2]
    n_jk = cq_sc_ref.shape[0] // 4
    i_blk = pl.program_id(0)

    xi = ci_ref[:, 0:1]                                                 # (TI, 1)
    yi = ci_ref[:, 1:2]
    zi = ci_ref[:, 2:3]
    gi = i_blk * ti + lax.broadcasted_iota(jnp.int32, (ti, 1), 0)       # global center index
    lane_out = lax.broadcasted_iota(jnp.int32, (1, OUT_LANES), 1)
    lane_k = lax.broadcasted_iota(jnp.int32, (1, tjk), 1)

    # Flat SMEM scalar accessors.
    def sx(j): return cq_sc_ref[j]
    def sy(j): return cq_sc_ref[n_jk + j]
    def sz(j): return cq_sc_ref[2 * n_jk + j]
    def sq(j): return cq_sc_ref[3 * n_jk + j]

    # RCA-expanded quantized bounding box of this center tile (int32 scalars).
    qxlo = qbox_ref[i_blk * 8 + 0]
    qylo = qbox_ref[i_blk * 8 + 1]
    qzlo = qbox_ref[i_blk * 8 + 2]
    qxhi = qbox_ref[i_blk * 8 + 3]
    qyhi = qbox_ref[i_blk * 8 + 4]
    qzhi = qbox_ref[i_blk * 8 + 5]

    rad_cols = [jnp.zeros((ti, 1), jnp.float32) for _ in range(N_RAD)]
    ang_cols = [jnp.zeros((ti, 1), jnp.float32) for _ in range(N_ANG)]

    # --------------------------------------------------------------- neighbor blocks
    for b in range(nb):                                                 # static unroll
        # ---- block geometry: computed ONCE per (grid step, block), shared by
        #      the radial pass and the whole angular j loop below.
        blk = cqb_ref[b]                                                # (8, TJK)
        dxk = xi - blk[0:1, :]
        dyk = yi - blk[1:2, :]
        dzk = zi - blk[2:3, :]
        rk = jnp.sqrt(dxk * dxk + dyk * dyk + dzk * dzk + EPS)
        not_self_k = ((b * tjk + lane_k) != gi).astype(jnp.float32)     # (TI, TJK)
        qk = blk[3:4, :] * not_self_k                                   # 0 for padded / self
        wr = 0.25 * _fcut(rk, RCR) * qk                                 # radial weight
        wa = _fcut(rk, RCA) * qk                                        # angular weight

        # ---- radial AEV: sum_j 0.25*exp(-EtaR (r-ShfR)^2)*fc(r,RCR)*q_j
        for m in range(N_RAD):
            dr = rk - SHF_R[m]
            rad_cols[m] = rad_cols[m] + jnp.sum(
                jnp.exp(-ETA_R * dr * dr) * wr, axis=1, keepdims=True)

        # ---- angular AEV: 2 * sum_{k>j} ((1+cos(theta-ShfZ))/2)^ZETA
        #                    * exp(-EtaA((r_ij+r_ik)/2-ShfA)^2) * fc(r_ij)fc(r_ik) q_j q_k
        #      lane-dense partials over k, accumulated over j into VMEM scratch;
        #      the 32 cross-lane reduces happen once per block (deferred reduction).
        pacc_ref[...] = jnp.zeros_like(pacc_ref)
        j_upper = min(n_atoms, (b + 1) * tjk)                           # only j with some k>j

        def j_body(j, carry, b=b, dxk=dxk, dyk=dyk, dzk=dzk, rk=rk, wa=wa):
            # Cheap integer early exit: skip j atoms outside the RCA-expanded tile bbox
            # (necessary condition for fc(r_ij, RCA) != 0 for any center in this tile).
            qxj = qcrd_ref[j]
            qyj = qcrd_ref[n_jk + j]
            qzj = qcrd_ref[2 * n_jk + j]
            near = ((qxj >= qxlo) & (qxj <= qxhi) &
                    (qyj >= qylo) & (qyj <= qyhi) &
                    (qzj >= qzlo) & (qzj <= qzhi))

            @pl.when(near)
            def _():
                xj = sx(j)
                yj = sy(j)
                zj = sz(j)
                qj = sq(j)
                dxj = xi - xj                                           # (TI, 1)
                dyj = yi - yj
                dzj = zi - zj
                rij = jnp.sqrt(dxj * dxj + dyj * dyj + dzj * dzj + EPS)
                not_self_j = (gi != j).astype(jnp.float32)
                wj2 = 2.0 * _fcut(rij, RCA) * qj * not_self_j           # x2 for j<k symmetry
                k_gt_j = ((b * tjk + lane_k) > j).astype(jnp.float32)   # ordered pairs only
                w = (wj2 * k_gt_j) * wa                                 # (TI, TJK)
                dot = dxj * dxk + dyj * dyk + dzj * dzk
                cos_t = (0.95 * dot) * pl.reciprocal(rij * rk + EPS, approx=True)
                sin_t = jnp.sqrt(jnp.maximum(1.0 - cos_t * cos_t, 0.0))
                hc = 0.5 * cos_t
                hs = 0.5 * sin_t
                avg = 0.5 * (rij + rk)
                for a in range(N_SHF_A):
                    da = avg - SHF_A[a]
                    f2w = jnp.exp(-ETA_A * da * da) * w                 # shared across ShfZ
                    for z in range(N_SHF_Z):
                        # cos(theta - ShfZ) = cos t * cos z + sin t * sin z, theta in [0, pi]
                        base = 0.5 + hc * COS_Z[z] + hs * SIN_Z[z]
                        idx = a * N_SHF_Z + z
                        pacc_ref[idx] = pacc_ref[idx] + _int_pow(base, ZETA) * f2w
            return carry

        lax.fori_loop(0, j_upper, j_body, 0)

        for idx in range(N_ANG):
            ang_cols[idx] = ang_cols[idx] + jnp.sum(
                pacc_ref[idx], axis=1, keepdims=True)

    # --------------------------------------------------------------- output assembly
    # One-shot layout assembly (constant lane masks), then a single dense 128-lane store.
    acc = jnp.zeros((ti, OUT_LANES), jnp.float32)
    for m in range(N_RAD):
        acc = acc + rad_cols[m] * (lane_out == m).astype(jnp.float32)
    for idx in range(N_ANG):
        acc = acc + ang_cols[idx] * (lane_out == (N_RAD + idx)).astype(jnp.float32)
    out_ref[...] = acc


def ani_forward(coordinates, charges, tile_i=None):
    """coordinates (N, 3) f32, charges (N,) f32 -> AEV (N, AEV_LEN) f32."""
    assert coordinates.ndim == 2 and coordinates.shape[1] == 3
    assert charges.shape == (coordinates.shape[0],)
    n = int(coordinates.shape[0])

    # Center-atom tile height: 16 by default, clamped so the "parallel" grid keeps
    # >= 2 steps (keeps both v7x TensorCores busy on small systems); multiple of 8.
    if tile_i is None:
        tile_i = 16
        while tile_i > 8 and ((n + tile_i - 1) // tile_i) < 2:
            tile_i //= 2

    n_i = ((n + tile_i - 1) // tile_i) * tile_i
    n_jk = ((n + TILE_JK - 1) // TILE_JK) * TILE_JK
    nb = n_jk // TILE_JK
    grid_len = n_i // tile_i

    coords = coordinates.astype(jnp.float32)
    q = charges.astype(jnp.float32)

    # Center-atom tile input: (n_i, 128) with xyz in lanes 0..2.
    ci = jnp.zeros((n_i, OUT_LANES), jnp.float32).at[:n, :3].set(coords)

    # Neighbor data, rows 0..2 = xyz, row 3 = charge (padded atoms keep q = 0, which
    # zeroes their radial and angular contributions). 8 sublane rows for tile alignment.
    vblk = jnp.zeros((8, n_jk), jnp.float32)
    vblk = vblk.at[:3, :n].set(coords.T)
    vblk = vblk.at[3, :n].set(q)
    cqb = vblk.reshape(8, nb, TILE_JK).transpose(1, 0, 2)               # (nb, 8, TJK)  VMEM
    cq_sc = vblk[:4].reshape(-1)                                        # (4*n_jk,)     SMEM

    # Quantized coords + per-tile RCA-expanded bounding boxes for the angular early exit.
    qcrd = jnp.zeros((3, n_jk), jnp.int32).at[:, :n].set(
        jnp.round(coords.T * SCALE_Q).astype(jnp.int32)).reshape(-1)    # (3*n_jk,)     SMEM
    big = jnp.float32(1e30)
    cmin_src = jnp.full((n_i, 3), big, jnp.float32).at[:n].set(coords)
    cmax_src = jnp.full((n_i, 3), -big, jnp.float32).at[:n].set(coords)
    tmin = cmin_src.reshape(grid_len, tile_i, 3).min(axis=1)            # real atoms only
    tmax = cmax_src.reshape(grid_len, tile_i, 3).max(axis=1)
    qlo = jnp.floor((tmin - RCA) * SCALE_Q).astype(jnp.int32) - 2       # conservative bounds
    qhi = jnp.ceil((tmax + RCA) * SCALE_Q).astype(jnp.int32) + 2
    qbox = (jnp.zeros((grid_len, 8), jnp.int32)
            .at[:, 0:3].set(qlo).at[:, 3:6].set(qhi).reshape(-1))       # (grid*8,)     SMEM

    # Advisory cost estimate (compute-bound kernel with trivial I/O).
    pair_lane_work = grid_len * nb * n * tile_i * TILE_JK
    rad_lane_work = grid_len * nb * tile_i * TILE_JK * N_RAD
    cost = pl.CostEstimate(
        flops=int(pair_lane_work * 430 + rad_lane_work * 6),
        transcendentals=int(pair_lane_work * 7 + rad_lane_work),
        bytes_accessed=int(4 * (ci.size + grid_len * (cqb.size + cq_sc.size)
                                + n_i * OUT_LANES)),
    )

    kernel = functools.partial(ani_aev_kernel, n_atoms=n)
    out = pl.pallas_call(
        kernel,
        out_shape=jax.ShapeDtypeStruct((n_i, OUT_LANES), jnp.float32),
        grid=(grid_len,),
        in_specs=[
            pl.BlockSpec((tile_i, OUT_LANES), lambda i: (i, 0)),
            pl.BlockSpec((nb, 8, TILE_JK), lambda i: (0, 0, 0)),
            pl.BlockSpec(memory_space=pltpu.MemorySpace.SMEM),
            pl.BlockSpec(memory_space=pltpu.MemorySpace.SMEM),
            pl.BlockSpec(memory_space=pltpu.MemorySpace.SMEM),
        ],
        out_specs=pl.BlockSpec((tile_i, OUT_LANES), lambda i: (i, 0)),
        scratch_shapes=[pltpu.VMEM((N_ANG, tile_i, TILE_JK), jnp.float32)],
        compiler_params=pltpu.CompilerParams(
            dimension_semantics=("parallel",)),
        cost_estimate=cost,
    )(ci, cqb, cq_sc, qcrd, qbox)

    # Glue: drop padded rows / unused lanes -> (N, M), matching aev_signals.squeeze().
    return out[:n, :AEV_LEN]


if __name__ == "__main__":
    n_atoms = 16
    key = jax.random.PRNGKey(0)
    kc, kq = jax.random.split(key)
    coordinates = jax.random.uniform(kc, (n_atoms, 3), jnp.float32, minval=0.0, maxval=4.0)
    charges = jax.random.uniform(kq, (n_atoms,), jnp.float32, minval=-0.5, maxval=0.5)

    aev = ani_forward(coordinates, charges)
    aev = jax.block_until_ready(aev)
    assert aev.shape == (n_atoms, AEV_LEN), aev.shape
    assert bool(jnp.all(jnp.isfinite(aev)))
    print("KERNEL_OK")
</pallas_src>

<mosaic_0001>
module attributes {stable_mosaic.version = 11 : i64} {
  func.func @ani_aev_kernel(%arg0: i32, %arg1: memref<8x128xf32, #tpu.memory_space<vmem>>, %arg2: memref<1x8x128xf32, #tpu.memory_space<vmem>>, %arg3: memref<512xf32, #tpu.memory_space<smem>>, %arg4: memref<384xi32, #tpu.memory_space<smem>>, %arg5: memref<16xi32, #tpu.memory_space<smem>>, %arg6: memref<8x128xf32, #tpu.memory_space<vmem>>, %arg7: memref<32x8x128xf32, #tpu.memory_space<vmem>>) attributes {dimension_semantics = [#tpu.dimension_semantics<parallel>], iteration_bounds = array<i64: 2>, scalar_prefetch = 0 : i64, scratch_operands = 1 : i64, tpu.core_type = #tpu.core_type<tc>, window_params = [{transform_indices = @transform_0, window_bounds = array<i64: 8, 128>}, {pipeline_mode = #tpu.pipeline_mode<synchronous>, transform_indices = @transform_1, window_bounds = array<i64: 1, 8, 128>}, {transform_indices = @transform_2, window_bounds = array<i64: 512>}, {transform_indices = @transform_3, window_bounds = array<i64: 384>}, {transform_indices = @transform_4, window_bounds = array<i64: 16>}, {transform_indices = @transform_5, window_bounds = array<i64: 8, 128>}]} {
    %c0 = arith.constant 0 : index
    %c0_0 = arith.constant 0 : index
    %0 = vector.load %arg1[%c0, %c0_0] : memref<8x128xf32, #tpu.memory_space<vmem>>, vector<8x1xf32>
    %c0_1 = arith.constant 0 : index
    %c1 = arith.constant 1 : index
    %1 = vector.load %arg1[%c0_1, %c1] : memref<8x128xf32, #tpu.memory_space<vmem>>, vector<8x1xf32>
    %c0_2 = arith.constant 0 : index
    %c2 = arith.constant 2 : index
    %2 = vector.load %arg1[%c0_2, %c2] : memref<8x128xf32, #tpu.memory_space<vmem>>, vector<8x1xf32>
    %c8_i32 = arith.constant 8 : i32
    %3 = arith.muli %arg0, %c8_i32 : i32
    %4 = tpu.iota {dimensions = array<i32: 0>} : vector<8x1xi32>
    %5 = vector.broadcast %3 : i32 to vector<8x1xi32>
    %6 = arith.addi %5, %4 : vector<8x1xi32>
    %7 = tpu.iota {dimensions = array<i32: 1>} : vector<1x128xi32>
    %8 = tpu.iota {dimensions = array<i32: 1>} : vector<1x128xi32>
    %c8_i32_3 = arith.constant 8 : i32
    %9 = arith.muli %arg0, %c8_i32_3 : i32
    %c0_i32 = arith.constant 0 : i32
    %10 = arith.addi %9, %c0_i32 : i32
    %11 = arith.index_cast %10 : i32 to index
    %12 = memref.load %arg5[%11] : memref<16xi32, #tpu.memory_space<smem>>
    %c8_i32_4 = arith.constant 8 : i32
    %13 = arith.muli %arg0, %c8_i32_4 : i32
    %c1_i32 = arith.constant 1 : i32
    %14 = arith.addi %13, %c1_i32 : i32
    %15 = arith.index_cast %14 : i32 to index
    %16 = memref.load %arg5[%15] : memref<16xi32, #tpu.memory_space<smem>>
    %c8_i32_5 = arith.constant 8 : i32
    %17 = arith.muli %arg0, %c8_i32_5 : i32
    %c2_i32 = arith.constant 2 : i32
    %18 = arith.addi %17, %c2_i32 : i32
    %19 = arith.index_cast %18 : i32 to index
    %20 = memref.load %arg5[%19] : memref<16xi32, #tpu.memory_space<smem>>
    %c8_i32_6 = arith.constant 8 : i32
    %21 = arith.muli %arg0, %c8_i32_6 : i32
    %c3_i32 = arith.constant 3 : i32
    %22 = arith.addi %21, %c3_i32 : i32
    %23 = arith.index_cast %22 : i32 to index
    %24 = memref.load %arg5[%23] : memref<16xi32, #tpu.memory_space<smem>>
    %c8_i32_7 = arith.constant 8 : i32
    %25 = arith.muli %arg0, %c8_i32_7 : i32
    %c4_i32 = arith.constant 4 : i32
    %26 = arith.addi %25, %c4_i32 : i32
    %27 = arith.index_cast %26 : i32 to index
    %28 = memref.load %arg5[%27] : memref<16xi32, #tpu.memory_space<smem>>
    %c8_i32_8 = arith.constant 8 : i32
    %29 = arith.muli %arg0, %c8_i32_8 : i32
    %c5_i32 = arith.constant 5 : i32
    %30 = arith.addi %29, %c5_i32 : i32
    %31 = arith.index_cast %30 : i32 to index
    %32 = memref.load %arg5[%31] : memref<16xi32, #tpu.memory_space<smem>>
    %cst = arith.constant 0.000000e+00 : f32
    %33 = vector.broadcast %cst : f32 to vector<8x1xf32>
    %cst_9 = arith.constant 0.000000e+00 : f32
    %34 = vector.broadcast %cst_9 : f32 to vector<8x1xf32>
    %cst_10 = arith.constant 0.000000e+00 : f32
    %35 = vector.broadcast %cst_10 : f32 to vector<8x1xf32>
    %cst_11 = arith.constant 0.000000e+00 : f32
    %36 = vector.broadcast %cst_11 : f32 to vector<8x1xf32>
    %cst_12 = arith.constant 0.000000e+00 : f32
    %37 = vector.broadcast %cst_12 : f32 to vector<8x1xf32>
    %cst_13 = arith.constant 0.000000e+00 : f32
    %38 = vector.broadcast %cst_13 : f32 to vector<8x1xf32>
    %cst_14 = arith.constant 0.000000e+00 : f32
    %39 = vector.broadcast %cst_14 : f32 to vector<8x1xf32>
    %cst_15 = arith.constant 0.000000e+00 : f32
    %40 = vector.broadcast %cst_15 : f32 to vector<8x1xf32>
    %cst_16 = arith.constant 0.000000e+00 : f32
    %41 = vector.broadcast %cst_16 : f32 to vector<8x1xf32>
    %cst_17 = arith.constant 0.000000e+00 : f32
    %42 = vector.broadcast %cst_17 : f32 to vector<8x1xf32>
    %cst_18 = arith.constant 0.000000e+00 : f32
    %43 = vector.broadcast %cst_18 : f32 to vector<8x1xf32>
    %cst_19 = arith.constant 0.000000e+00 : f32
    %44 = vector.broadcast %cst_19 : f32 to vector<8x1xf32>
    %cst_20 = arith.constant 0.000000e+00 : f32
    %45 = vector.broadcast %cst_20 : f32 to vector<8x1xf32>
    %cst_21 = arith.constant 0.000000e+00 : f32
    %46 = vector.broadcast %cst_21 : f32 to vector<8x1xf32>
    %cst_22 = arith.constant 0.000000e+00 : f32
    %47 = vector.broadcast %cst_22 : f32 to vector<8x1xf32>
    %cst_23 = arith.constant 0.000000e+00 : f32
    %48 = vector.broadcast %cst_23 : f32 to vector<8x1xf32>
    %cst_24 = arith.constant 0.000000e+00 : f32
    %49 = vector.broadcast %cst_24 : f32 to vector<8x1xf32>
    %cst_25 = arith.constant 0.000000e+00 : f32
    %50 = vector.broadcast %cst_25 : f32 to vector<8x1xf32>
    %cst_26 = arith.constant 0.000000e+00 : f32
    %51 = vector.broadcast %cst_26 : f32 to vector<8x1xf32>
    %cst_27 = arith.constant 0.000000e+00 : f32
    %52 = vector.broadcast %cst_27 : f32 to vector<8x1xf32>
    %cst_28 = arith.constant 0.000000e+00 : f32
    %53 = vector.broadcast %cst_28 : f32 to vector<8x1xf32>
    %cst_29 = arith.constant 0.000000e+00 : f32
    %54 = vector.broadcast %cst_29 : f32 to vector<8x1xf32>
    %cst_30 = arith.constant 0.000000e+00 : f32
    %55 = vector.broadcast %cst_30 : f32 to vector<8x1xf32>
    %cst_31 = arith.constant 0.000000e+00 : f32
    %56 = vector.broadcast %cst_31 : f32 to vector<8x1xf32>
    %cst_32 = arith.constant 0.000000e+00 : f32
    %57 = vector.broadcast %cst_32 : f32 to vector<8x1xf32>
    %cst_33 = arith.constant 0.000000e+00 : f32
    %58 = vector.broadcast %cst_33 : f32 to vector<8x1xf32>
    %cst_34 = arith.constant 0.000000e+00 : f32
    %59 = vector.broadcast %cst_34 : f32 to vector<8x1xf32>
    %cst_35 = arith.constant 0.000000e+00 : f32
    %60 = vector.broadcast %cst_35 : f32 to vector<8x1xf32>
    %cst_36 = arith.constant 0.000000e+00 : f32
    %61 = vector.broadcast %cst_36 : f32 to vector<8x1xf32>
    %cst_37 = arith.constant 0.000000e+00 : f32
    %62 = vector.broadcast %cst_37 : f32 to vector<8x1xf32>
    %cst_38 = arith.constant 0.000000e+00 : f32
    %63 = vector.broadcast %cst_38 : f32 to vector<8x1xf32>
    %cst_39 = arith.constant 0.000000e+00 : f32
    %64 = vector.broadcast %cst_39 : f32 to vector<8x1xf32>
    %cst_40 = arith.constant 0.000000e+00 : f32
    %65 = vector.broadcast %cst_40 : f32 to vector<8x1xf32>
    %cst_41 = arith.constant 0.000000e+00 : f32
    %66 = vector.broadcast %cst_41 : f32 to vector<8x1xf32>
    %cst_42 = arith.constant 0.000000e+00 : f32
    %67 = vector.broadcast %cst_42 : f32 to vector<8x1xf32>
    %cst_43 = arith.constant 0.000000e+00 : f32
    %68 = vector.broadcast %cst_43 : f32 to vector<8x1xf32>
    %cst_44 = arith.constant 0.000000e+00 : f32
    %69 = vector.broadcast %cst_44 : f32 to vector<8x1xf32>
    %cst_45 = arith.constant 0.000000e+00 : f32
    %70 = vector.broadcast %cst_45 : f32 to vector<8x1xf32>
    %cst_46 = arith.constant 0.000000e+00 : f32
    %71 = vector.broadcast %cst_46 : f32 to vector<8x1xf32>
    %cst_47 = arith.constant 0.000000e+00 : f32
    %72 = vector.broadcast %cst_47 : f32 to vector<8x1xf32>
    %cst_48 = arith.constant 0.000000e+00 : f32
    %73 = vector.broadcast %cst_48 : f32 to vector<8x1xf32>
    %cst_49 = arith.constant 0.000000e+00 : f32
    %74 = vector.broadcast %cst_49 : f32 to vector<8x1xf32>
    %cst_50 = arith.constant 0.000000e+00 : f32
    %75 = vector.broadcast %cst_50 : f32 to vector<8x1xf32>
    %cst_51 = arith.constant 0.000000e+00 : f32
    %76 = vector.broadcast %cst_51 : f32 to vector<8x1xf32>
    %cst_52 = arith.constant 0.000000e+00 : f32
    %77 = vector.broadcast %cst_52 : f32 to vector<8x1xf32>
    %cst_53 = arith.constant 0.000000e+00 : f32
    %78 = vector.broadcast %cst_53 : f32 to vector<8x1xf32>
    %cst_54 = arith.constant 0.000000e+00 : f32
    %79 = vector.broadcast %cst_54 : f32 to vector<8x1xf32>
    %cst_55 = arith.constant 0.000000e+00 : f32
    %80 = vector.broadcast %cst_55 : f32 to vector<8x1xf32>
    %c0_56 = arith.constant 0 : index
    %c0_57 = arith.constant 0 : index
    %c0_58 = arith.constant 0 : index
    %81 = vector.load %arg2[%c0_56, %c0_57, %c0_58] : memref<1x8x128xf32, #tpu.memory_space<vmem>>, vector<1x8x128xf32>
    %82 = vector.shape_cast %81 : vector<1x8x128xf32> to vector<8x128xf32>
    %83 = vector.extract_strided_slice %82 {offsets = [0, 0], sizes = [1, 128], strides = [1, 1]} : vector<8x128xf32> to vector<1x128xf32>
    %84 = vector.broadcast %0 : vector<8x1xf32> to vector<8x128xf32>
    %85 = vector.broadcast %83 : vector<1x128xf32> to vector<8x128xf32>
    %86 = arith.subf %84, %85 : vector<8x128xf32>
    %87 = vector.extract_strided_slice %82 {offsets = [1, 0], sizes = [1, 128], strides = [1, 1]} : vector<8x128xf32> to vector<1x128xf32>
    %88 = vector.broadcast %1 : vector<8x1xf32> to vector<8x128xf32>
    %89 = vector.broadcast %87 : vector<1x128xf32> to vector<8x128xf32>
    %90 = arith.subf %88, %89 : vector<8x128xf32>
    %91 = vector.extract_strided_slice %82 {offsets = [2, 0], sizes = [1, 128], strides = [1, 1]} : vector<8x128xf32> to vector<1x128xf32>
    %92 = vector.broadcast %2 : vector<8x1xf32> to vector<8x128xf32>
    %93 = vector.broadcast %91 : vector<1x128xf32> to vector<8x128xf32>
    %94 = arith.subf %92, %93 : vector<8x128xf32>
    %95 = arith.mulf %86, %86 : vector<8x128xf32>
    %96 = arith.mulf %90, %90 : vector<8x128xf32>
    %97 = arith.addf %95, %96 : vector<8x128xf32>
    %98 = arith.mulf %94, %94 : vector<8x128xf32>
    %99 = arith.addf %97, %98 : vector<8x128xf32>
    %cst_59 = arith.constant 9.99999996E-13 : f32
    %100 = vector.broadcast %cst_59 : f32 to vector<8x128xf32>
    %101 = arith.addf %99, %100 : vector<8x128xf32>
    %102 = math.sqrt %101 : vector<8x128xf32>
    %c0_i32_60 = arith.constant 0 : i32
    %103 = vector.broadcast %c0_i32_60 : i32 to vector<1x128xi32>
    %104 = arith.addi %103, %8 : vector<1x128xi32>
    %105 = vector.broadcast %104 : vector<1x128xi32> to vector<8x128xi32>
    %106 = vector.broadcast %6 : vector<8x1xi32> to vector<8x128xi32>
    %107 = arith.cmpi ne, %105, %106 : vector<8x128xi32>
    %108 = arith.extui %107 : vector<8x128xi1> to vector<8x128xi32>
    %109 = arith.sitofp %108 : vector<8x128xi32> to vector<8x128xf32>
    %110 = vector.extract_strided_slice %82 {offsets = [3, 0], sizes = [1, 128], strides = [1, 1]} : vector<8x128xf32> to vector<1x128xf32>
    %111 = vector.broadcast %110 : vector<1x128xf32> to vector<8x128xf32>
    %112 = arith.mulf %111, %109 : vector<8x128xf32>
    %cst_61 = arith.constant 0.604152441 : f32
    %113 = vector.broadcast %cst_61 : f32 to vector<8x128xf32>
    %114 = arith.mulf %113, %102 : vector<8x128xf32>
    %115 = math.cos %114 : vector<8x128xf32>
    %cst_62 = arith.constant 5.000000e-01 : f32
    %116 = vector.broadcast %cst_62 : f32 to vector<8x128xf32>
    %117 = arith.mulf %116, %115 : vector<8x128xf32>
    %cst_63 = arith.constant 5.000000e-01 : f32
    %118 = vector.broadcast %cst_63 : f32 to vector<8x128xf32>
    %119 = arith.addf %117, %118 : vector<8x128xf32>
    %cst_64 = arith.constant 5.200000e+00 : f32
    %120 = vector.broadcast %cst_64 : f32 to vector<8x128xf32>
    %121 = arith.cmpf olt, %102, %120 : vector<8x128xf32>
    %122 = arith.extui %121 : vector<8x128xi1> to vector<8x128xi32>
    %123 = arith.sitofp %122 : vector<8x128xi32> to vector<8x128xf32>
    %124 = arith.mulf %119, %123 : vector<8x128xf32>
    %cst_65 = arith.constant 2.500000e-01 : f32
    %125 = vector.broadcast %cst_65 : f32 to vector<8x128xf32>
    %126 = arith.mulf %125, %124 : vector<8x128xf32>
    %127 = arith.mulf %126, %112 : vector<8x128xf32>
    %cst_66 = arith.constant 0.897597908 : f32
    %128 = vector.broadcast %cst_66 : f32 to vector<8x128xf32>
    %129 = arith.mulf %128, %102 : vector<8x128xf32>
    %130 = math.cos %129 : vector<8x128xf32>
    %cst_67 = arith.constant 5.000000e-01 : f32
    %131 = vector.broadcast %cst_67 : f32 to vector<8x128xf32>
    %132 = arith.mulf %131, %130 : vector<8x128xf32>
    %cst_68 = arith.constant 5.000000e-01 : f32
    %133 = vector.broadcast %cst_68 : f32 to vector<8x128xf32>
    %134 = arith.addf %132, %133 : vector<8x128xf32>
    %cst_69 = arith.constant 3.500000e+00 : f32
    %135 = vector.broadcast %cst_69 : f32 to vector<8x128xf32>
    %136 = arith.cmpf olt, %102, %135 : vector<8x128xf32>
    %137 = arith.extui %136 : vector<8x128xi1> to vector<8x128xi32>
    %138 = arith.sitofp %137 : vector<8x128xi32> to vector<8x128xf32>
    %139 = arith.mulf %134, %138 : vector<8x128xf32>
    %140 = arith.mulf %139, %112 : vector<8x128xf32>
    %cst_70 = arith.constant 0.899999976 : f32
    %141 = vector.broadcast %cst_70 : f32 to vector<8x128xf32>
    %142 = arith.subf %102, %141 : vector<8x128xf32>
    %cst_71 = arith.constant -1.600000e+01 : f32
    %143 = vector.broadcast %cst_71 : f32 to vector<8x128xf32>
    %144 = arith.mulf %143, %142 : vector<8x128xf32>
    %145 = arith.mulf %144, %142 : vector<8x128xf32>
    %146 = math.exp %145 : vector<8x128xf32>
    %147 = arith.mulf %146, %127 : vector<8x128xf32>
    %cst_72 = arith.constant dense<0.000000e+00> : vector<8xf32>
    %148 = vector.multi_reduction <add>, %147, %cst_72 [1] : vector<8x128xf32> to vector<8xf32>
    %149 = vector.shape_cast %148 : vector<8xf32> to vector<8x1xf32>
    %150 = arith.addf %33, %149 : vector<8x1xf32>
    %cst_73 = arith.constant 1.168750e+00 : f32
    %151 = vector.broadcast %cst_73 : f32 to vector<8x128xf32>
    %152 = arith.subf %102, %151 : vector<8x128xf32>
    %cst_74 = arith.constant -1.600000e+01 : f32
    %153 = vector.broadcast %cst_74 : f32 to vector<8x128xf32>
    %154 = arith.mulf %153, %152 : vector<8x128xf32>
    %155 = arith.mulf %154, %152 : vector<8x128xf32>
    %156 = math.exp %155 : vector<8x128xf32>
    %157 = arith.mulf %156, %127 : vector<8x128xf32>
    %cst_75 = arith.constant dense<0.000000e+00> : vector<8xf32>
    %158 = vector.multi_reduction <add>, %157, %cst_75 [1] : vector<8x128xf32> to vector<8xf32>
    %159 = vector.shape_cast %158 : vector<8xf32> to vector<8x1xf32>
    %160 = arith.addf %34, %159 : vector<8x1xf32>
    %cst_76 = arith.constant 1.437500e+00 : f32
    %161 = vector.broadcast %cst_76 : f32 to vector<8x128xf32>
    %162 = arith.subf %102, %161 : vector<8x128xf32>
    %cst_77 = arith.constant -1.600000e+01 : f32
    %163 = vector.broadcast %cst_77 : f32 to vector<8x128xf32>
    %164 = arith.mulf %163, %162 : vector<8x128xf32>
    %165 = arith.mulf %164, %162 : vector<8x128xf32>
    %166 = math.exp %165 : vector<8x128xf32>
    %167 = arith.mulf %166, %127 : vector<8x128xf32>
    %cst_78 = arith.constant dense<0.000000e+00> : vector<8xf32>
    %168 = vector.multi_reduction <add>, %167, %cst_78 [1] : vector<8x128xf32> to vector<8xf32>
    %169 = vector.shape_cast %168 : vector<8xf32> to vector<8x1xf32>
    %170 = arith.addf %35, %169 : vector<8x1xf32>
    %cst_79 = arith.constant 1.706250e+00 : f32
    %171 = vector.broadcast %cst_79 : f32 to vector<8x128xf32>
    %172 = arith.subf %102, %171 : vector<8x128xf32>
    %cst_80 = arith.constant -1.600000e+01 : f32
    %173 = vector.broadcast %cst_80 : f32 to vector<8x128xf32>
    %174 = arith.mulf %173, %172 : vector<8x128xf32>
    %175 = arith.mulf %174, %172 : vector<8x128xf32>
    %176 = math.exp %175 : vector<8x128xf32>
    %177 = arith.mulf %176, %127 : vector<8x128xf32>
    %cst_81 = arith.constant dense<0.000000e+00> : vector<8xf32>
    %178 = vector.multi_reduction <add>, %177, %cst_81 [1] : vector<8x128xf32> to vector<8xf32>
    %179 = vector.shape_cast %178 : vector<8xf32> to vector<8x1xf32>
    %180 = arith.addf %36, %179 : vector<8x1xf32>
    %cst_82 = arith.constant 1.975000e+00 : f32
    %181 = vector.broadcast %cst_82 : f32 to vector<8x128xf32>
    %182 = arith.subf %102, %181 : vector<8x128xf32>
    %cst_83 = arith.constant -1.600000e+01 : f32
    %183 = vector.broadcast %cst_83 : f32 to vector<8x128xf32>
    %184 = arith.mulf %183, %182 : vector<8x128xf32>
    %185 = arith.mulf %184, %182 : vector<8x128xf32>
    %186 = math.exp %185 : vector<8x128xf32>
    %187 = arith.mulf %186, %127 : vector<8x128xf32>
    %cst_84 = arith.constant dense<0.000000e+00> : vector<8xf32>
    %188 = vector.multi_reduction <add>, %187, %cst_84 [1] : vector<8x128xf32> to vector<8xf32>
    %189 = vector.shape_cast %188 : vector<8xf32> to vector<8x1xf32>
    %190 = arith.addf %37, %189 : vector<8x1xf32>
    %cst_85 = arith.constant 2.243750e+00 : f32
    %191 = vector.broadcast %cst_85 : f32 to vector<8x128xf32>
    %192 = arith.subf %102, %191 : vector<8x128xf32>
    %cst_86 = arith.constant -1.600000e+01 : f32
    %193 = vector.broadcast %cst_86 : f32 to vector<8x128xf32>
    %194 = arith.mulf %193, %192 : vector<8x128xf32>
    %195 = arith.mulf %194, %192 : vector<8x128xf32>
    %196 = math.exp %195 : vector<8x128xf32>
    %197 = arith.mulf %196, %127 : vector<8x128xf32>
    %cst_87 = arith.constant dense<0.000000e+00> : vector<8xf32>
    %198 = vector.multi_reduction <add>, %197, %cst_87 [1] : vector<8x128xf32> to vector<8xf32>
    %199 = vector.shape_cast %198 : vector<8xf32> to vector<8x1xf32>
    %200 = arith.addf %38, %199 : vector<8x1xf32>
    %cst_88 = arith.constant 2.512500e+00 : f32
    %201 = vector.broadcast %cst_88 : f32 to vector<8x128xf32>
    %202 = arith.subf %102, %201 : vector<8x128xf32>
    %cst_89 = arith.constant -1.600000e+01 : f32
    %203 = vector.broadcast %cst_89 : f32 to vector<8x128xf32>
    %204 = arith.mulf %203, %202 : vector<8x128xf32>
    %205 = arith.mulf %204, %202 : vector<8x128xf32>
    %206 = math.exp %205 : vector<8x128xf32>
    %207 = arith.mulf %206, %127 : vector<8x128xf32>
    %cst_90 = arith.constant dense<0.000000e+00> : vector<8xf32>
    %208 = vector.multi_reduction <add>, %207, %cst_90 [1] : vector<8x128xf32> to vector<8xf32>
    %209 = vector.shape_cast %208 : vector<8xf32> to vector<8x1xf32>
    %210 = arith.addf %39, %209 : vector<8x1xf32>
    %cst_91 = arith.constant 2.781250e+00 : f32
    %211 = vector.broadcast %cst_91 : f32 to vector<8x128xf32>
    %212 = arith.subf %102, %211 : vector<8x128xf32>
    %cst_92 = arith.constant -1.600000e+01 : f32
    %213 = vector.broadcast %cst_92 : f32 to vector<8x128xf32>
    %214 = arith.mulf %213, %212 : vector<8x128xf32>
    %215 = arith.mulf %214, %212 : vector<8x128xf32>
    %216 = math.exp %215 : vector<8x128xf32>
    %217 = arith.mulf %216, %127 : vector<8x128xf32>
    %cst_93 = arith.constant dense<0.000000e+00> : vector<8xf32>
    %218 = vector.multi_reduction <add>, %217, %cst_93 [1] : vector<8x128xf32> to vector<8xf32>
    %219 = vector.shape_cast %218 : vector<8xf32> to vector<8x1xf32>
    %220 = arith.addf %40, %219 : vector<8x1xf32>
    %cst_94 = arith.constant 3.050000e+00 : f32
    %221 = vector.broadcast %cst_94 : f32 to vector<8x128xf32>
    %222 = arith.subf %102, %221 : vector<8x128xf32>
    %cst_95 = arith.constant -1.600000e+01 : f32
    %223 = vector.broadcast %cst_95 : f32 to vector<8x128xf32>
    %224 = arith.mulf %223, %222 : vector<8x128xf32>
    %225 = arith.mulf %224, %222 : vector<8x128xf32>
    %226 = math.exp %225 : vector<8x128xf32>
    %227 = arith.mulf %226, %127 : vector<8x128xf32>
    %cst_96 = arith.constant dense<0.000000e+00> : vector<8xf32>
    %228 = vector.multi_reduction <add>, %227, %cst_96 [1] : vector<8x128xf32> to vector<8xf32>
    %229 = vector.shape_cast %228 : vector<8xf32> to vector<8x1xf32>
    %230 = arith.addf %41, %229 : vector<8x1xf32>
    %cst_97 = arith.constant 3.318750e+00 : f32
    %231 = vector.broadcast %cst_97 : f32 to vector<8x128xf32>
    %232 = arith.subf %102, %231 : vector<8x128xf32>
    %cst_98 = arith.constant -1.600000e+01 : f32
    %233 = vector.broadcast %cst_98 : f32 to vector<8x128xf32>
    %234 = arith.mulf %233, %232 : vector<8x128xf32>
    %235 = arith.mulf %234, %232 : vector<8x128xf32>
    %236 = math.exp %235 : vector<8x128xf32>
    %237 = arith.mulf %236, %127 : vector<8x128xf32>
    %cst_99 = arith.constant dense<0.000000e+00> : vector<8xf32>
    %238 = vector.multi_reduction <add>, %237, %cst_99 [1] : vector<8x128xf32> to vector<8xf32>
    %239 = vector.shape_cast %238 : vector<8xf32> to vector<8x1xf32>
    %240 = arith.addf %42, %239 : vector<8x1xf32>
    %cst_100 = arith.constant 3.587500e+00 : f32
    %241 = vector.broadcast %cst_100 : f32 to vector<8x128xf32>
    %242 = arith.subf %102, %241 : vector<8x128xf32>
    %cst_101 = arith.constant -1.600000e+01 : f32
    %243 = vector.broadcast %cst_101 : f32 to vector<8x128xf32>
    %244 = arith.mulf %243, %242 : vector<8x128xf32>
    %245 = arith.mulf %244, %242 : vector<8x128xf32>
    %246 = math.exp %245 : vector<8x128xf32>
    %247 = arith.mulf %246, %127 : vector<8x128xf32>
    %cst_102 = arith.constant dense<0.000000e+00> : vector<8xf32>
    %248 = vector.multi_reduction <add>, %247, %cst_102 [1] : vector<8x128xf32> to vector<8xf32>
    %249 = vector.shape_cast %248 : vector<8xf32> to vector<8x1xf32>
    %250 = arith.addf %43, %249 : vector<8x1xf32>
    %cst_103 = arith.constant 3.856250e+00 : f32
    %251 = vector.broadcast %cst_103 : f32 to vector<8x128xf32>
    %252 = arith.subf %102, %251 : vector<8x128xf32>
    %cst_104 = arith.constant -1.600000e+01 : f32
    %253 = vector.broadcast %cst_104 : f32 to vector<8x128xf32>
    %254 = arith.mulf %253, %252 : vector<8x128xf32>
    %255 = arith.mulf %254, %252 : vector<8x128xf32>
    %256 = math.exp %255 : vector<8x128xf32>
    %257 = arith.mulf %256, %127 : vector<8x128xf32>
    %cst_105 = arith.constant dense<0.000000e+00> : vector<8xf32>
    %258 = vector.multi_reduction <add>, %257, %cst_105 [1] : vector<8x128xf32> to vector<8xf32>
    %259 = vector.shape_cast %258 : vector<8xf32> to vector<8x1xf32>
    %260 = arith.addf %44, %259 : vector<8x1xf32>
    %cst_106 = arith.constant 4.125000e+00 : f32
    %261 = vector.broadcast %cst_106 : f32 to vector<8x128xf32>
    %262 = arith.subf %102, %261 : vector<8x128xf32>
    %cst_107 = arith.constant -1.600000e+01 : f32
    %263 = vector.broadcast %cst_107 : f32 to vector<8x128xf32>
    %264 = arith.mulf %263, %262 : vector<8x128xf32>
    %265 = arith.mulf %264, %262 : vector<8x128xf32>
    %266 = math.exp %265 : vector<8x128xf32>
    %267 = arith.mulf %266, %127 : vector<8x128xf32>
    %cst_108 = arith.constant dense<0.000000e+00> : vector<8xf32>
    %268 = vector.multi_reduction <add>, %267, %cst_108 [1] : vector<8x128xf32> to vector<8xf32>
    %269 = vector.shape_cast %268 : vector<8xf32> to vector<8x1xf32>
    %270 = arith.addf %45, %269 : vector<8x1xf32>
    %cst_109 = arith.constant 4.393750e+00 : f32
    %271 = vector.broadcast %cst_109 : f32 to vector<8x128xf32>
    %272 = arith.subf %102, %271 : vector<8x128xf32>
    %cst_110 = arith.constant -1.600000e+01 : f32
    %273 = vector.broadcast %cst_110 : f32 to vector<8x128xf32>
    %274 = arith.mulf %273, %272 : vector<8x128xf32>
    %275 = arith.mulf %274, %272 : vector<8x128xf32>
    %276 = math.exp %275 : vector<8x128xf32>
    %277 = arith.mulf %276, %127 : vector<8x128xf32>
    %cst_111 = arith.constant dense<0.000000e+00> : vector<8xf32>
    %278 = vector.multi_reduction <add>, %277, %cst_111 [1] : vector<8x128xf32> to vector<8xf32>
    %279 = vector.shape_cast %278 : vector<8xf32> to vector<8x1xf32>
    %280 = arith.addf %46, %279 : vector<8x1xf32>
    %cst_112 = arith.constant 4.662500e+00 : f32
    %281 = vector.broadcast %cst_112 : f32 to vector<8x128xf32>
    %282 = arith.subf %102, %281 : vector<8x128xf32>
    %cst_113 = arith.constant -1.600000e+01 : f32
    %283 = vector.broadcast %cst_113 : f32 to vector<8x128xf32>
    %284 = arith.mulf %283, %282 : vector<8x128xf32>
    %285 = arith.mulf %284, %282 : vector<8x128xf32>
    %286 = math.exp %285 : vector<8x128xf32>
    %287 = arith.mulf %286, %127 : vector<8x128xf32>
    %cst_114 = arith.constant dense<0.000000e+00> : vector<8xf32>
    %288 = vector.multi_reduction <add>, %287, %cst_114 [1] : vector<8x128xf32> to vector<8xf32>
    %289 = vector.shape_cast %288 : vector<8xf32> to vector<8x1xf32>
    %290 = arith.addf %47, %289 : vector<8x1xf32>
    %cst_115 = arith.constant 4.931250e+00 : f32
    %291 = vector.broadcast %cst_115 : f32 to vector<8x128xf32>
    %292 = arith.subf %102, %291 : vector<8x128xf32>
    %cst_116 = arith.constant -1.600000e+01 : f32
    %293 = vector.broadcast %cst_116 : f32 to vector<8x128xf32>
    %294 = arith.mulf %293, %292 : vector<8x128xf32>
    %295 = arith.mulf %294, %292 : vector<8x128xf32>
    %296 = math.exp %295 : vector<8x128xf32>
    %297 = arith.mulf %296, %127 : vector<8x128xf32>
    %cst_117 = arith.constant dense<0.000000e+00> : vector<8xf32>
    %298 = vector.multi_reduction <add>, %297, %cst_117 [1] : vector<8x128xf32> to vector<8xf32>
    %299 = vector.shape_cast %298 : vector<8xf32> to vector<8x1xf32>
    %300 = arith.addf %48, %299 : vector<8x1xf32>
    %cst_118 = arith.constant 0.000000e+00 : f32
    %301 = vector.broadcast %cst_118 : f32 to vector<32x8x128xf32>
    %c0_119 = arith.constant 0 : index
    %c0_120 = arith.constant 0 : index
    %c0_121 = arith.constant 0 : index
    %302 = vector.load %arg7[%c0_119, %c0_120, %c0_121] : memref<32x8x128xf32, #tpu.memory_space<vmem>>, vector<32x8x128xf32>
    tpu.vector_store %arg7[%c0_119, %c0_120, %c0_121], %301 {strides = array<i32>} : memref<32x8x128xf32, #tpu.memory_space<vmem>>, vector<32x8x128xf32>,
    %c0_i32_122 = arith.constant 0 : i32
    %c16_i32 = arith.constant 16 : i32
    %303 = arith.addi %c0_i32_122, %c16_i32 : i32
    %c1_i32_123 = arith.constant 1 : i32
    scf.for %arg8 = %c0_i32_122 to %303 step %c1_i32_123  : i32 {
      %850 = arith.index_cast %arg8 : i32 to index
      %851 = memref.load %arg4[%850] : memref<384xi32, #tpu.memory_space<smem>>
      %c128_i32 = arith.constant 128 : i32
      %852 = arith.addi %c128_i32, %arg8 : i32
      %853 = arith.index_cast %852 : i32 to index
      %854 = memref.load %arg4[%853] : memref<384xi32, #tpu.memory_space<smem>>
      %c256_i32 = arith.constant 256 : i32
      %855 = arith.addi %c256_i32, %arg8 : i32
      %856 = arith.index_cast %855 : i32 to index
      %857 = memref.load %arg4[%856] : memref<384xi32, #tpu.memory_space<smem>>
      %858 = arith.cmpi sge, %851, %12 : i32
      %859 = arith.cmpi sle, %851, %24 : i32
      %860 = arith.andi %858, %859 : i1
      %861 = arith.cmpi sge, %854, %16 : i32
      %862 = arith.andi %860, %861 : i1
      %863 = arith.cmpi sle, %854, %28 : i32
      %864 = arith.andi %862, %863 : i1
      %865 = arith.cmpi sge, %857, %20 : i32
      %866 = arith.andi %864, %865 : i1
      %867 = arith.cmpi sle, %857, %32 : i32
      %868 = arith.andi %866, %867 : i1
      %869 = arith.extui %868 : i1 to i32
      %c0_i32_235 = arith.constant 0 : i32
      %870 = arith.cmpi ne, %869, %c0_i32_235 : i32
      scf.if %870 {
        %871 = arith.index_cast %arg8 : i32 to index
        %872 = memref.load %arg3[%871] : memref<512xf32, #tpu.memory_space<smem>>
        %c128_i32_236 = arith.constant 128 : i32
        %873 = arith.addi %c128_i32_236, %arg8 : i32
        %874 = arith.index_cast %873 : i32 to index
        %875 = memref.load %arg3[%874] : memref<512xf32, #tpu.memory_space<smem>>
        %c256_i32_237 = arith.constant 256 : i32
        %876 = arith.addi %c256_i32_237, %arg8 : i32
        %877 = arith.index_cast %876 : i32 to index
        %878 = memref.load %arg3[%877] : memref<512xf32, #tpu.memory_space<smem>>
        %c384_i32 = arith.constant 384 : i32
        %879 = arith.addi %c384_i32, %arg8 : i32
        %880 = arith.index_cast %879 : i32 to index
        %881 = memref.load %arg3[%880] : memref<512xf32, #tpu.memory_space<smem>>
        %882 = vector.broadcast %872 : f32 to vector<8x1xf32>
        %883 = arith.subf %0, %882 : vector<8x1xf32>
        %884 = vector.broadcast %875 : f32 to vector<8x1xf32>
        %885 = arith.subf %1, %884 : vector<8x1xf32>
        %886 = vector.broadcast %878 : f32 to vector<8x1xf32>
        %887 = arith.subf %2, %886 : vector<8x1xf32>
        %888 = arith.mulf %883, %883 : vector<8x1xf32>
        %889 = arith.mulf %885, %885 : vector<8x1xf32>
        %890 = arith.addf %888, %889 : vector<8x1xf32>
        %891 = arith.mulf %887, %887 : vector<8x1xf32>
        %892 = arith.addf %890, %891 : vector<8x1xf32>
        %cst_238 = arith.constant 9.99999996E-13 : f32
        %893 = vector.broadcast %cst_238 : f32 to vector<8x1xf32>
        %894 = arith.addf %892, %893 : vector<8x1xf32>
        %895 = math.sqrt %894 : vector<8x1xf32>
        %896 = vector.broadcast %arg8 : i32 to vector<8x1xi32>
        %897 = arith.cmpi ne, %6, %896 : vector<8x1xi32>
        %898 = arith.extui %897 : vector<8x1xi1> to vector<8x1xi32>
        %899 = arith.sitofp %898 : vector<8x1xi32> to vector<8x1xf32>
        %cst_239 = arith.constant 0.897597908 : f32
        %900 = vector.broadcast %cst_239 : f32 to vector<8x1xf32>
        %901 = arith.mulf %900, %895 : vector<8x1xf32>
        %902 = math.cos %901 : vector<8x1xf32>
        %cst_240 = arith.constant 5.000000e-01 : f32
        %903 = vector.broadcast %cst_240 : f32 to vector<8x1xf32>
        %904 = arith.mulf %903, %902 : vector<8x1xf32>
        %cst_241 = arith.constant 5.000000e-01 : f32
        %905 = vector.broadcast %cst_241 : f32 to vector<8x1xf32>
        %906 = arith.addf %904, %905 : vector<8x1xf32>
        %cst_242 = arith.constant 3.500000e+00 : f32
        %907 = vector.broadcast %cst_242 : f32 to vector<8x1xf32>
        %908 = arith.cmpf olt, %895, %907 : vector<8x1xf32>
        %909 = arith.extui %908 : vector<8x1xi1> to vector<8x1xi32>
        %910 = arith.sitofp %909 : vector<8x1xi32> to vector<8x1xf32>
        %911 = arith.mulf %906, %910 : vector<8x1xf32>
        %cst_243 = arith.constant 2.000000e+00 : f32
        %912 = vector.broadcast %cst_243 : f32 to vector<8x1xf32>
        %913 = arith.mulf %912, %911 : vector<8x1xf32>
        %914 = vector.broadcast %881 : f32 to vector<8x1xf32>
        %915 = arith.mulf %913, %914 : vector<8x1xf32>
        %916 = arith.mulf %915, %899 : vector<8x1xf32>
        %c0_i32_244 = arith.constant 0 : i32
        %917 = vector.broadcast %c0_i32_244 : i32 to vector<1x128xi32>
        %918 = arith.addi %917, %8 : vector<1x128xi32>
        %919 = vector.broadcast %arg8 : i32 to vector<1x128xi32>
        %920 = arith.cmpi sgt, %918, %919 : vector<1x128xi32>
        %921 = arith.extui %920 : vector<1x128xi1> to vector<1x128xi32>
        %922 = arith.sitofp %921 : vector<1x128xi32> to vector<1x128xf32>
        %923 = vector.broadcast %916 : vector<8x1xf32> to vector<8x128xf32>
        %924 = vector.broadcast %922 : vector<1x128xf32> to vector<8x128xf32>
        %925 = arith.mulf %923, %924 : vector<8x128xf32>
        %926 = arith.mulf %925, %140 : vector<8x128xf32>
        %927 = vector.broadcast %883 : vector<8x1xf32> to vector<8x128xf32>
        %928 = arith.mulf %927, %86 : vector<8x128xf32>
        %929 = vector.broadcast %885 : vector<8x1xf32> to vector<8x128xf32>
        %930 = arith.mulf %929, %90 : vector<8x128xf32>
        %931 = arith.addf %928, %930 : vector<8x128xf32>
        %932 = vector.broadcast %887 : vector<8x1xf32> to vector<8x128xf32>
        %933 = arith.mulf %932, %94 : vector<8x128xf32>
        %934 = arith.addf %931, %933 : vector<8x128xf32>
        %cst_245 = arith.constant 0.949999988 : f32
        %935 = vector.broadcast %cst_245 : f32 to vector<8x128xf32>
        %936 = arith.mulf %935, %934 : vector<8x128xf32>
        %937 = vector.broadcast %895 : vector<8x1xf32> to vector<8x128xf32>
        %938 = arith.mulf %937, %102 : vector<8x128xf32>
        %cst_246 = arith.constant 9.99999996E-13 : f32
        %939 = vector.broadcast %cst_246 : f32 to vector<8x128xf32>
        %940 = arith.addf %938, %939 : vector<8x128xf32>
        %941 = tpu.reciprocal %940 {approx = true} : vector<8x128xf32> -> vector<8x128xf32>
        %942 = arith.mulf %936, %941 : vector<8x128xf32>
        %943 = arith.mulf %942, %942 : vector<8x128xf32>
        %cst_247 = arith.constant 1.000000e+00 : f32
        %944 = vector.broadcast %cst_247 : f32 to vector<8x128xf32>
        %945 = arith.subf %944, %943 : vector<8x128xf32>
        %cst_248 = arith.constant 0.000000e+00 : f32
        %946 = vector.broadcast %cst_248 : f32 to vector<8x128xf32>
        %947 = arith.maximumf %945, %946 : vector<8x128xf32>
        %948 = math.sqrt %947 : vector<8x128xf32>
        %cst_249 = arith.constant 5.000000e-01 : f32
        %949 = vector.broadcast %cst_249 : f32 to vector<8x128xf32>
        %950 = arith.mulf %949, %942 : vector<8x128xf32>
        %cst_250 = arith.constant 5.000000e-01 : f32
        %951 = vector.broadcast %cst_250 : f32 to vector<8x128xf32>
        %952 = arith.mulf %951, %948 : vector<8x128xf32>
        %953 = vector.broadcast %895 : vector<8x1xf32> to vector<8x128xf32>
        %954 = arith.addf %953, %102 : vector<8x128xf32>
        %cst_251 = arith.constant 5.000000e-01 : f32
        %955 = vector.broadcast %cst_251 : f32 to vector<8x128xf32>
        %956 = arith.mulf %955, %954 : vector<8x128xf32>
        %cst_252 = arith.constant 0.899999976 : f32
        %957 = vector.broadcast %cst_252 : f32 to vector<8x128xf32>
        %958 = arith.subf %956, %957 : vector<8x128xf32>
        %cst_253 = arith.constant -8.000000e+00 : f32
        %959 = vector.broadcast %cst_253 : f32 to vector<8x128xf32>
        %960 = arith.mulf %959, %958 : vector<8x128xf32>
        %961 = arith.mulf %960, %958 : vector<8x128xf32>
        %962 = math.exp %961 : vector<8x128xf32>
        %963 = arith.mulf %962, %926 : vector<8x128xf32>
        %cst_254 = arith.constant 0.98078525 : f32
        %964 = vector.broadcast %cst_254 : f32 to vector<8x128xf32>
        %965 = arith.mulf %950, %964 : vector<8x128xf32>
        %cst_255 = arith.constant 5.000000e-01 : f32
        %966 = vector.broadcast %cst_255 : f32 to vector<8x128xf32>
        %967 = arith.addf %966, %965 : vector<8x128xf32>
        %cst_256 = arith.constant 0.195090324 : f32
        %968 = vector.broadcast %cst_256 : f32 to vector<8x128xf32>
        %969 = arith.mulf %952, %968 : vector<8x128xf32>
        %970 = arith.addf %967, %969 : vector<8x128xf32>
        %c0_257 = arith.constant 0 : index
        %c0_258 = arith.constant 0 : index
        %c0_259 = arith.constant 0 : index
        %971 = vector.load %arg7[%c0_257, %c0_258, %c0_259] : memref<32x8x128xf32, #tpu.memory_space<vmem>>, vector<1x8x128xf32>
        %972 = vector.shape_cast %971 : vector<1x8x128xf32> to vector<8x128xf32>
        %973 = arith.mulf %970, %970 : vector<8x128xf32>
        %974 = arith.mulf %973, %973 : vector<8x128xf32>
        %975 = arith.mulf %974, %974 : vector<8x128xf32>
        %976 = arith.mulf %975, %975 : vector<8x128xf32>
        %977 = arith.mulf %976, %976 : vector<8x128xf32>
        %978 = arith.mulf %977, %963 : vector<8x128xf32>
        %979 = arith.addf %972, %978 : vector<8x128xf32>
        %c0_260 = arith.constant 0 : index
        %c0_261 = arith.constant 0 : index
        %c0_262 = arith.constant 0 : index
        %980 = vector.load %arg7[%c0_260, %c0_261, %c0_262] : memref<32x8x128xf32, #tpu.memory_space<vmem>>, vector<1x8x128xf32>
        %981 = vector.shape_cast %980 : vector<1x8x128xf32> to vector<8x128xf32>
        %982 = vector.shape_cast %979 : vector<8x128xf32> to vector<1x8x128xf32>
        tpu.vector_store %arg7[%c0_260, %c0_261, %c0_262], %982 {strides = array<i32>} : memref<32x8x128xf32, #tpu.memory_space<vmem>>, vector<1x8x128xf32>,
        %cst_263 = arith.constant 0.831469595 : f32
        %983 = vector.broadcast %cst_263 : f32 to vector<8x128xf32>
        %984 = arith.mulf %950, %983 : vector<8x128xf32>
        %cst_264 = arith.constant 5.000000e-01 : f32
        %985 = vector.broadcast %cst_264 : f32 to vector<8x128xf32>
        %986 = arith.addf %985, %984 : vector<8x128xf32>
        %cst_265 = arith.constant 0.555570245 : f32
        %987 = vector.broadcast %cst_265 : f32 to vector<8x128xf32>
        %988 = arith.mulf %952, %987 : vector<8x128xf32>
        %989 = arith.addf %986, %988 : vector<8x128xf32>
        %c1_266 = arith.constant 1 : index
        %c0_267 = arith.constant 0 : index
        %c0_268 = arith.constant 0 : index
        %990 = vector.load %arg7[%c1_266, %c0_267, %c0_268] : memref<32x8x128xf32, #tpu.memory_space<vmem>>, vector<1x8x128xf32>
        %991 = vector.shape_cast %990 : vector<1x8x128xf32> to vector<8x128xf32>
        %992 = arith.mulf %989, %989 : vector<8x128xf32>
        %993 = arith.mulf %992, %992 : vector<8x128xf32>
        %994 = arith.mulf %993, %993 : vector<8x128xf32>
        %995 = arith.mulf %994, %994 : vector<8x128xf32>
        %996 = arith.mulf %995, %995 : vector<8x128xf32>
        %997 = arith.mulf %996, %963 : vector<8x128xf32>
        %998 = arith.addf %991, %997 : vector<8x128xf32>
        %c1_269 = arith.constant 1 : index
        %c0_270 = arith.constant 0 : index
        %c0_271 = arith.constant 0 : index
        %999 = vector.load %arg7[%c1_269, %c0_270, %c0_271] : memref<32x8x128xf32, #tpu.memory_space<vmem>>, vector<1x8x128xf32>
        %1000 = vector.shape_cast %999 : vector<1x8x128xf32> to vector<8x128xf32>
        %1001 = vector.shape_cast %998 : vector<8x128xf32> to vector<1x8x128xf32>
        tpu.vector_store %arg7[%c1_269, %c0_270, %c0_271], %1001 {strides = array<i32>} : memref<32x8x128xf32, #tpu.memory_space<vmem>>, vector<1x8x128xf32>,
        %cst_272 = arith.constant 0.555570245 : f32
        %1002 = vector.broadcast %cst_272 : f32 to vector<8x128xf32>
        %1003 = arith.mulf %950, %1002 : vector<8x128xf32>
        %cst_273 = arith.constant 5.000000e-01 : f32
        %1004 = vector.broadcast %cst_273 : f32 to vector<8x128xf32>
        %1005 = arith.addf %1004, %1003 : vector<8x128xf32>
        %cst_274 = arith.constant 0.831469595 : f32
        %1006 = vector.broadcast %cst_274 : f32 to vector<8x128xf32>
        %1007 = arith.mulf %952, %1006 : vector<8x128xf32>
        %1008 = arith.addf %1005, %1007 : vector<8x128xf32>
        %c2_275 = arith.constant 2 : index
        %c0_276 = arith.constant 0 : index
        %c0_277 = arith.constant 0 : index
        %1009 = vector.load %arg7[%c2_275, %c0_276, %c0_277] : memref<32x8x128xf32, #tpu.memory_space<vmem>>, vector<1x8x128xf32>
        %1010 = vector.shape_cast %1009 : vector<1x8x128xf32> to vector<8x128xf32>
        %1011 = arith.mulf %1008, %1008 : vector<8x128xf32>
        %1012 = arith.mulf %1011, %1011 : vector<8x128xf32>
        %1013 = arith.mulf %1012, %1012 : vector<8x128xf32>
        %1014 = arith.mulf %1013, %1013 : vector<8x128xf32>
        %1015 = arith.mulf %1014, %1014 : vector<8x128xf32>
        %1016 = arith.mulf %1015, %963 : vector<8x128xf32>
        %1017 = arith.addf %1010, %1016 : vector<8x128xf32>
        %c2_278 = arith.constant 2 : index
        %c0_279 = arith.constant 0 : index
        %c0_280 = arith.constant 0 : index
        %1018 = vector.load %arg7[%c2_278, %c0_279, %c0_280] : memref<32x8x128xf32, #tpu.memory_space<vmem>>, vector<1x8x128xf32>
        %1019 = vector.shape_cast %1018 : vector<1x8x128xf32> to vector<8x128xf32>
        %1020 = vector.shape_cast %1017 : vector<8x128xf32> to vector<1x8x128xf32>
        tpu.vector_store %arg7[%c2_278, %c0_279, %c0_280], %1020 {strides = array<i32>} : memref<32x8x128xf32, #tpu.memory_space<vmem>>, vector<1x8x128xf32>,
        %cst_281 = arith.constant 0.195090324 : f32
        %1021 = vector.broadcast %cst_281 : f32 to vector<8x128xf32>
        %1022 = arith.mulf %950, %1021 : vector<8x128xf32>
        %cst_282 = arith.constant 5.000000e-01 : f32
        %1023 = vector.broadcast %cst_282 : f32 to vector<8x128xf32>
        %1024 = arith.addf %1023, %1022 : vector<8x128xf32>
        %cst_283 = arith.constant 0.98078525 : f32
        %1025 = vector.broadcast %cst_283 : f32 to vector<8x128xf32>
        %1026 = arith.mulf %952, %1025 : vector<8x128xf32>
        %1027 = arith.addf %1024, %1026 : vector<8x128xf32>
        %c3_284 = arith.constant 3 : index
        %c0_285 = arith.constant 0 : index
        %c0_286 = arith.constant 0 : index
        %1028 = vector.load %arg7[%c3_284, %c0_285, %c0_286] : memref<32x8x128xf32, #tpu.memory_space<vmem>>, vector<1x8x128xf32>
        %1029 = vector.shape_cast %1028 : vector<1x8x128xf32> to vector<8x128xf32>
        %1030 = arith.mulf %1027, %1027 : vector<8x128xf32>
        %1031 = arith.mulf %1030, %1030 : vector<8x128xf32>
        %1032 = arith.mulf %1031, %1031 : vector<8x128xf32>
        %1033 = arith.mulf %1032, %1032 : vector<8x128xf32>
        %1034 = arith.mulf %1033, %1033 : vector<8x128xf32>
        %1035 = arith.mulf %1034, %963 : vector<8x128xf32>
        %1036 = arith.addf %1029, %1035 : vector<8x128xf32>
        %c3_287 = arith.constant 3 : index
        %c0_288 = arith.constant 0 : index
        %c0_289 = arith.constant 0 : index
        %1037 = vector.load %arg7[%c3_287, %c0_288, %c0_289] : memref<32x8x128xf32, #tpu.memory_space<vmem>>, vector<1x8x128xf32>
        %1038 = vector.shape_cast %1037 : vector<1x8x128xf32> to vector<8x128xf32>
        %1039 = vector.shape_cast %1036 : vector<8x128xf32> to vector<1x8x128xf32>
        tpu.vector_store %arg7[%c3_287, %c0_288, %c0_289], %1039 {strides = array<i32>} : memref<32x8x128xf32, #tpu.memory_space<vmem>>, vector<1x8x128xf32>,
        %cst_290 = arith.constant -0.195090324 : f32
        %1040 = vector.broadcast %cst_290 : f32 to vector<8x128xf32>
        %1041 = arith.mulf %950, %1040 : vector<8x128xf32>
        %cst_291 = arith.constant 5.000000e-01 : f32
        %1042 = vector.broadcast %cst_291 : f32 to vector<8x128xf32>
        %1043 = arith.addf %1042, %1041 : vector<8x128xf32>
        %cst_292 = arith.constant 0.98078525 : f32
        %1044 = vector.broadcast %cst_292 : f32 to vector<8x128xf32>
        %1045 = arith.mulf %952, %1044 : vector<8x128xf32>
        %1046 = arith.addf %1043, %1045 : vector<8x128xf32>
        %c4_293 = arith.constant 4 : index
        %c0_294 = arith.constant 0 : index
        %c0_295 = arith.constant 0 : index
        %1047 = vector.load %arg7[%c4_293, %c0_294, %c0_295] : memref<32x8x128xf32, #tpu.memory_space<vmem>>, vector<1x8x128xf32>
        %1048 = vector.shape_cast %1047 : vector<1x8x128xf32> to vector<8x128xf32>
        %1049 = arith.mulf %1046, %1046 : vector<8x128xf32>
        %1050 = arith.mulf %1049, %1049 : vector<8x128xf32>
        %1051 = arith.mulf %1050, %1050 : vector<8x128xf32>
        %1052 = arith.mulf %1051, %1051 : vector<8x128xf32>
        %1053 = arith.mulf %1052, %1052 : vector<8x128xf32>
        %1054 = arith.mulf %1053, %963 : vector<8x128xf32>
        %1055 = arith.addf %1048, %1054 : vector<8x128xf32>
        %c4_296 = arith.constant 4 : index
        %c0_297 = arith.constant 0 : index
        %c0_298 = arith.constant 0 : index
        %1056 = vector.load %arg7[%c4_296, %c0_297, %c0_298] : memref<32x8x128xf32, #tpu.memory_space<vmem>>, vector<1x8x128xf32>
        %1057 = vector.shape_cast %1056 : vector<1x8x128xf32> to vector<8x128xf32>
        %1058 = vector.shape_cast %1055 : vector<8x128xf32> to vector<1x8x128xf32>
        tpu.vector_store %arg7[%c4_296, %c0_297, %c0_298], %1058 {strides = array<i32>} : memref<32x8x128xf32, #tpu.memory_space<vmem>>, vector<1x8x128xf32>,
        %cst_299 = arith.constant -0.555570245 : f32
        %1059 = vector.broadcast %cst_299 : f32 to vector<8x128xf32>
        %1060 = arith.mulf %950, %1059 : vector<8x128xf32>
        %cst_300 = arith.constant 5.000000e-01 : f32
        %1061 = vector.broadcast %cst_300 : f32 to vector<8x128xf32>
        %1062 = arith.addf %1061, %1060 : vector<8x128xf32>
        %cst_301 = arith.constant 0.831469595 : f32
        %1063 = vector.broadcast %cst_301 : f32 to vector<8x128xf32>
        %1064 = arith.mulf %952, %1063 : vector<8x128xf32>
        %1065 = arith.addf %1062, %1064 : vector<8x128xf32>
        %c5_302 = arith.constant 5 : index
        %c0_303 = arith.constant 0 : index
        %c0_304 = arith.constant 0 : index
        %1066 = vector.load %arg7[%c5_302, %c0_303, %c0_304] : memref<32x8x128xf32, #tpu.memory_space<vmem>>, vector<1x8x128xf32>
        %1067 = vector.shape_cast %1066 : vector<1x8x128xf32> to vector<8x128xf32>
        %1068 = arith.mulf %1065, %1065 : vector<8x128xf32>
        %1069 = arith.mulf %1068, %1068 : vector<8x128xf32>
        %1070 = arith.mulf %1069, %1069 : vector<8x128xf32>
        %1071 = arith.mulf %1070, %1070 : vector<8x128xf32>
        %1072 = arith.mulf %1071, %1071 : vector<8x128xf32>
        %1073 = arith.mulf %1072, %963 : vector<8x128xf32>
        %1074 = arith.addf %1067, %1073 : vector<8x128xf32>
        %c5_305 = arith.constant 5 : index
        %c0_306 = arith.constant 0 : index
        %c0_307 = arith.constant 0 : index
        %1075 = vector.load %arg7[%c5_305, %c0_306, %c0_307] : memref<32x8x128xf32, #tpu.memory_space<vmem>>, vector<1x8x128xf32>
        %1076 = vector.shape_cast %1075 : vector<1x8x128xf32> to vector<8x128xf32>
        %1077 = vector.shape_cast %1074 : vector<8x128xf32> to vector<1x8x128xf32>
        tpu.vector_store %arg7[%c5_305, %c0_306, %c0_307], %1077 {strides = array<i32>} : memref<32x8x128xf32, #tpu.memory_space<vmem>>, vector<1x8x128xf32>,
        %cst_308 = arith.constant -0.831469595 : f32
        %1078 = vector.broadcast %cst_308 : f32 to vector<8x128xf32>
        %1079 = arith.mulf %950, %1078 : vector<8x128xf32>
        %cst_309 = arith.constant 5.000000e-01 : f32
        %1080 = vector.broadcast %cst_309 : f32 to vector<8x128xf32>
        %1081 = arith.addf %1080, %1079 : vector<8x128xf32>
        %cst_310 = arith.constant 0.555570245 : f32
        %1082 = vector.broadcast %cst_310 : f32 to vector<8x128xf32>
        %1083 = arith.mulf %952, %1082 : vector<8x128xf32>
        %1084 = arith.addf %1081, %1083 : vector<8x128xf32>
        %c6_311 = arith.constant 6 : index
        %c0_312 = arith.constant 0 : index
        %c0_313 = arith.constant 0 : index
        %1085 = vector.load %arg7[%c6_311, %c0_312, %c0_313] : memref<32x8x128xf32, #tpu.memory_space<vmem>>, vector<1x8x128xf32>
        %1086 = vector.shape_cast %1085 : vector<1x8x128xf32> to vector<8x128xf32>
        %1087 = arith.mulf %1084, %1084 : vector<8x128xf32>
        %1088 = arith.mulf %1087, %1087 : vector<8x128xf32>
        %1089 = arith.mulf %1088, %1088 : vector<8x128xf32>
        %1090 = arith.mulf %1089, %1089 : vector<8x128xf32>
        %1091 = arith.mulf %1090, %1090 : vector<8x128xf32>
        %1092 = arith.mulf %1091, %963 : vector<8x128xf32>
        %1093 = arith.addf %1086, %1092 : vector<8x128xf32>
        %c6_314 = arith.constant 6 : index
        %c0_315 = arith.constant 0 : index
        %c0_316 = arith.constant 0 : index
        %1094 = vector.load %arg7[%c6_314, %c0_315, %c0_316] : memref<32x8x128xf32, #tpu.memory_space<vmem>>, vector<1x8x128xf32>
        %1095 = vector.shape_cast %1094 : vector<1x8x128xf32> to vector<8x128xf32>
        %1096 = vector.shape_cast %1093 : vector<8x128xf32> to vector<1x8x128xf32>
        tpu.vector_store %arg7[%c6_314, %c0_315, %c0_316], %1096 {strides = array<i32>} : memref<32x8x128xf32, #tpu.memory_space<vmem>>, vector<1x8x128xf32>,
        %cst_317 = arith.constant -0.98078525 : f32
        %1097 = vector.broadcast %cst_317 : f32 to vector<8x128xf32>
        %1098 = arith.mulf %950, %1097 : vector<8x128xf32>
        %cst_318 = arith.constant 5.000000e-01 : f32
        %1099 = vector.broadcast %cst_318 : f32 to vector<8x128xf32>
        %1100 = arith.addf %1099, %1098 : vector<8x128xf32>
        %cst_319 = arith.constant 0.195090324 : f32
        %1101 = vector.broadcast %cst_319 : f32 to vector<8x128xf32>
        %1102 = arith.mulf %952, %1101 : vector<8x128xf32>
        %1103 = arith.addf %1100, %1102 : vector<8x128xf32>
        %c7_320 = arith.constant 7 : index
        %c0_321 = arith.constant 0 : index
        %c0_322 = arith.constant 0 : index
        %1104 = vector.load %arg7[%c7_320, %c0_321, %c0_322] : memref<32x8x128xf32, #tpu.memory_space<vmem>>, vector<1x8x128xf32>
        %1105 = vector.shape_cast %1104 : vector<1x8x128xf32> to vector<8x128xf32>
        %1106 = arith.mulf %1103, %1103 : vector<8x128xf32>
        %1107 = arith.mulf %1106, %1106 : vector<8x128xf32>
        %1108 = arith.mulf %1107, %1107 : vector<8x128xf32>
        %1109 = arith.mulf %1108, %1108 : vector<8x128xf32>
        %1110 = arith.mulf %1109, %1109 : vector<8x128xf32>
        %1111 = arith.mulf %1110, %963 : vector<8x128xf32>
        %1112 = arith.addf %1105, %1111 : vector<8x128xf32>
        %c7_323 = arith.constant 7 : index
        %c0_324 = arith.constant 0 : index
        %c0_325 = arith.constant 0 : index
        %1113 = vector.load %arg7[%c7_323, %c0_324, %c0_325] : memref<32x8x128xf32, #tpu.memory_space<vmem>>, vector<1x8x128xf32>
        %1114 = vector.shape_cast %1113 : vector<1x8x128xf32> to vector<8x128xf32>
        %1115 = vector.shape_cast %1112 : vector<8x128xf32> to vector<1x8x128xf32>
        tpu.vector_store %arg7[%c7_323, %c0_324, %c0_325], %1115 {strides = array<i32>} : memref<32x8x128xf32, #tpu.memory_space<vmem>>, vector<1x8x128xf32>,
        %cst_326 = arith.constant 1.550000e+00 : f32
        %1116 = vector.broadcast %cst_326 : f32 to vector<8x128xf32>
        %1117 = arith.subf %956, %1116 : vector<8x128xf32>
        %cst_327 = arith.constant -8.000000e+00 : f32
        %1118 = vector.broadcast %cst_327 : f32 to vector<8x128xf32>
        %1119 = arith.mulf %1118, %1117 : vector<8x128xf32>
        %1120 = arith.mulf %1119, %1117 : vector<8x128xf32>
        %1121 = math.exp %1120 : vector<8x128xf32>
        %1122 = arith.mulf %1121, %926 : vector<8x128xf32>
        %cst_328 = arith.constant 0.98078525 : f32
        %1123 = vector.broadcast %cst_328 : f32 to vector<8x128xf32>
        %1124 = arith.mulf %950, %1123 : vector<8x128xf32>
        %cst_329 = arith.constant 5.000000e-01 : f32
        %1125 = vector.broadcast %cst_329 : f32 to vector<8x128xf32>
        %1126 = arith.addf %1125, %1124 : vector<8x128xf32>
        %cst_330 = arith.constant 0.195090324 : f32
        %1127 = vector.broadcast %cst_330 : f32 to vector<8x128xf32>
        %1128 = arith.mulf %952, %1127 : vector<8x128xf32>
        %1129 = arith.addf %1126, %1128 : vector<8x128xf32>
        %c8_331 = arith.constant 8 : index
        %c0_332 = arith.constant 0 : index
        %c0_333 = arith.constant 0 : index
        %1130 = vector.load %arg7[%c8_331, %c0_332, %c0_333] : memref<32x8x128xf32, #tpu.memory_space<vmem>>, vector<1x8x128xf32>
        %1131 = vector.shape_cast %1130 : vector<1x8x128xf32> to vector<8x128xf32>
        %1132 = arith.mulf %1129, %1129 : vector<8x128xf32>
        %1133 = arith.mulf %1132, %1132 : vector<8x128xf32>
        %1134 = arith.mulf %1133, %1133 : vector<8x128xf32>
        %1135 = arith.mulf %1134, %1134 : vector<8x128xf32>
        %1136 = arith.mulf %1135, %1135 : vector<8x128xf32>
        %1137 = arith.mulf %1136, %1122 : vector<8x128xf32>
        %1138 = arith.addf %1131, %1137 : vector<8x128xf32>
        %c8_334 = arith.constant 8 : index
        %c0_335 = arith.constant 0 : index
        %c0_336 = arith.constant 0 : index
        %1139 = vector.load %arg7[%c8_334, %c0_335, %c0_336] : memref<32x8x128xf32, #tpu.memory_space<vmem>>, vector<1x8x128xf32>
        %1140 = vector.shape_cast %1139 : vector<1x8x128xf32> to vector<8x128xf32>
        %1141 = vector.shape_cast %1138 : vector<8x128xf32> to vector<1x8x128xf32>
        tpu.vector_store %arg7[%c8_334, %c0_335, %c0_336], %1141 {strides = array<i32>} : memref<32x8x128xf32, #tpu.memory_space<vmem>>, vector<1x8x128xf32>,
        %cst_337 = arith.constant 0.831469595 : f32
        %1142 = vector.broadcast %cst_337 : f32 to vector<8x128xf32>
        %1143 = arith.mulf %950, %1142 : vector<8x128xf32>
        %cst_338 = arith.constant 5.000000e-01 : f32
        %1144 = vector.broadcast %cst_338 : f32 to vector<8x128xf32>
        %1145 = arith.addf %1144, %1143 : vector<8x128xf32>
        %cst_339 = arith.constant 0.555570245 : f32
        %1146 = vector.broadcast %cst_339 : f32 to vector<8x128xf32>
        %1147 = arith.mulf %952, %1146 : vector<8x128xf32>
        %1148 = arith.addf %1145, %1147 : vector<8x128xf32>
        %c9_340 = arith.constant 9 : index
        %c0_341 = arith.constant 0 : index
        %c0_342 = arith.constant 0 : index
        %1149 = vector.load %arg7[%c9_340, %c0_341, %c0_342] : memref<32x8x128xf32, #tpu.memory_space<vmem>>, vector<1x8x128xf32>
        %1150 = vector.shape_cast %1149 : vector<1x8x128xf32> to vector<8x128xf32>
        %1151 = arith.mulf %1148, %1148 : vector<8x128xf32>
        %1152 = arith.mulf %1151, %1151 : vector<8x128xf32>
        %1153 = arith.mulf %1152, %1152 : vector<8x128xf32>
        %1154 = arith.mulf %1153, %1153 : vector<8x128xf32>
        %1155 = arith.mulf %1154, %1154 : vector<8x128xf32>
        %1156 = arith.mulf %1155, %1122 : vector<8x128xf32>
        %1157 = arith.addf %1150, %1156 : vector<8x128xf32>
        %c9_343 = arith.constant 9 : index
        %c0_344 = arith.constant 0 : index
        %c0_345 = arith.constant 0 : index
        %1158 = vector.load %arg7[%c9_343, %c0_344, %c0_345] : memref<32x8x128xf32, #tpu.memory_space<vmem>>, vector<1x8x128xf32>
        %1159 = vector.shape_cast %1158 : vector<1x8x128xf32> to vector<8x128xf32>
        %1160 = vector.shape_cast %1157 : vector<8x128xf32> to vector<1x8x128xf32>
        tpu.vector_store %arg7[%c9_343, %c0_344, %c0_345], %1160 {strides = array<i32>} : memref<32x8x128xf32, #tpu.memory_space<vmem>>, vector<1x8x128xf32>,
        %cst_346 = arith.constant 0.555570245 : f32
        %1161 = vector.broadcast %cst_346 : f32 to vector<8x128xf32>
        %1162 = arith.mulf %950, %1161 : vector<8x128xf32>
        %cst_347 = arith.constant 5.000000e-01 : f32
        %1163 = vector.broadcast %cst_347 : f32 to vector<8x128xf32>
        %1164 = arith.addf %1163, %1162 : vector<8x128xf32>
        %cst_348 = arith.constant 0.831469595 : f32
        %1165 = vector.broadcast %cst_348 : f32 to vector<8x128xf32>
        %1166 = arith.mulf %952, %1165 : vector<8x128xf32>
        %1167 = arith.addf %1164, %1166 : vector<8x128xf32>
        %c10_349 = arith.constant 10 : index
        %c0_350 = arith.constant 0 : index
        %c0_351 = arith.constant 0 : index
        %1168 = vector.load %arg7[%c10_349, %c0_350, %c0_351] : memref<32x8x128xf32, #tpu.memory_space<vmem>>, vector<1x8x128xf32>
        %1169 = vector.shape_cast %1168 : vector<1x8x128xf32> to vector<8x128xf32>
        %1170 = arith.mulf %1167, %1167 : vector<8x128xf32>
        %1171 = arith.mulf %1170, %1170 : vector<8x128xf32>
        %1172 = arith.mulf %1171, %1171 : vector<8x128xf32>
        %1173 = arith.mulf %1172, %1172 : vector<8x128xf32>
        %1174 = arith.mulf %1173, %1173 : vector<8x128xf32>
        %1175 = arith.mulf %1174, %1122 : vector<8x128xf32>
        %1176 = arith.addf %1169, %1175 : vector<8x128xf32>
        %c10_352 = arith.constant 10 : index
        %c0_353 = arith.constant 0 : index
        %c0_354 = arith.constant 0 : index
        %1177 = vector.load %arg7[%c10_352, %c0_353, %c0_354] : memref<32x8x128xf32, #tpu.memory_space<vmem>>, vector<1x8x128xf32>
        %1178 = vector.shape_cast %1177 : vector<1x8x128xf32> to vector<8x128xf32>
        %1179 = vector.shape_cast %1176 : vector<8x128xf32> to vector<1x8x128xf32>
        tpu.vector_store %arg7[%c10_352, %c0_353, %c0_354], %1179 {strides = array<i32>} : memref<32x8x128xf32, #tpu.memory_space<vmem>>, vector<1x8x128xf32>,
        %cst_355 = arith.constant 0.195090324 : f32
        %1180 = vector.broadcast %cst_355 : f32 to vector<8x128xf32>
        %1181 = arith.mulf %950, %1180 : vector<8x128xf32>
        %cst_356 = arith.constant 5.000000e-01 : f32
        %1182 = vector.broadcast %cst_356 : f32 to vector<8x128xf32>
        %1183 = arith.addf %1182, %1181 : vector<8x128xf32>
        %cst_357 = arith.constant 0.98078525 : f32
        %1184 = vector.broadcast %cst_357 : f32 to vector<8x128xf32>
        %1185 = arith.mulf %952, %1184 : vector<8x128xf32>
        %1186 = arith.addf %1183, %1185 : vector<8x128xf32>
        %c11_358 = arith.constant 11 : index
        %c0_359 = arith.constant 0 : index
        %c0_360 = arith.constant 0 : index
        %1187 = vector.load %arg7[%c11_358, %c0_359, %c0_360] : memref<32x8x128xf32, #tpu.memory_space<vmem>>, vector<1x8x128xf32>
        %1188 = vector.shape_cast %1187 : vector<1x8x128xf32> to vector<8x128xf32>
        %1189 = arith.mulf %1186, %1186 : vector<8x128xf32>
        %1190 = arith.mulf %1189, %1189 : vector<8x128xf32>
        %1191 = arith.mulf %1190, %1190 : vector<8x128xf32>
        %1192 = arith.mulf %1191, %1191 : vector<8x128xf32>
        %1193 = arith.mulf %1192, %1192 : vector<8x128xf32>
        %1194 = arith.mulf %1193, %1122 : vector<8x128xf32>
        %1195 = arith.addf %1188, %1194 : vector<8x128xf32>
        %c11_361 = arith.constant 11 : index
        %c0_362 = arith.constant 0 : index
        %c0_363 = arith.constant 0 : index
        %1196 = vector.load %arg7[%c11_361, %c0_362, %c0_363] : memref<32x8x128xf32, #tpu.memory_space<vmem>>, vector<1x8x128xf32>
        %1197 = vector.shape_cast %1196 : vector<1x8x128xf32> to vector<8x128xf32>
        %1198 = vector.shape_cast %1195 : vector<8x128xf32> to vector<1x8x128xf32>
        tpu.vector_store %arg7[%c11_361, %c0_362, %c0_363], %1198 {strides = array<i32>} : memref<32x8x128xf32, #tpu.memory_space<vmem>>, vector<1x8x128xf32>,
        %cst_364 = arith.constant -0.195090324 : f32
        %1199 = vector.broadcast %cst_364 : f32 to vector<8x128xf32>
        %1200 = arith.mulf %950, %1199 : vector<8x128xf32>
        %cst_365 = arith.constant 5.000000e-01 : f32
        %1201 = vector.broadcast %cst_365 : f32 to vector<8x128xf32>
        %1202 = arith.addf %1201, %1200 : vector<8x128xf32>
        %cst_366 = arith.constant 0.98078525 : f32
        %1203 = vector.broadcast %cst_366 : f32 to vector<8x128xf32>
        %1204 = arith.mulf %952, %1203 : vector<8x128xf32>
        %1205 = arith.addf %1202, %1204 : vector<8x128xf32>
        %c12_367 = arith.constant 12 : index
        %c0_368 = arith.constant 0 : index
        %c0_369 = arith.constant 0 : index
        %1206 = vector.load %arg7[%c12_367, %c0_368, %c0_369] : memref<32x8x128xf32, #tpu.memory_space<vmem>>, vector<1x8x128xf32>
        %1207 = vector.shape_cast %1206 : vector<1x8x128xf32> to vector<8x128xf32>
        %1208 = arith.mulf %1205, %1205 : vector<8x128xf32>
        %1209 = arith.mulf %1208, %1208 : vector<8x128xf32>
        %1210 = arith.mulf %1209, %1209 : vector<8x128xf32>
        %1211 = arith.mulf %1210, %1210 : vector<8x128xf32>
        %1212 = arith.mulf %1211, %1211 : vector<8x128xf32>
        %1213 = arith.mulf %1212, %1122 : vector<8x128xf32>
        %1214 = arith.addf %1207, %1213 : vector<8x128xf32>
        %c12_370 = arith.constant 12 : index
        %c0_371 = arith.constant 0 : index
        %c0_372 = arith.constant 0 : index
        %1215 = vector.load %arg7[%c12_370, %c0_371, %c0_372] : memref<32x8x128xf32, #tpu.memory_space<vmem>>, vector<1x8x128xf32>
        %1216 = vector.shape_cast %1215 : vector<1x8x128xf32> to vector<8x128xf32>
        %1217 = vector.shape_cast %1214 : vector<8x128xf32> to vector<1x8x128xf32>
        tpu.vector_store %arg7[%c12_370, %c0_371, %c0_372], %1217 {strides = array<i32>} : memref<32x8x128xf32, #tpu.memory_space<vmem>>, vector<1x8x128xf32>,
        %cst_373 = arith.constant -0.555570245 : f32
        %1218 = vector.broadcast %cst_373 : f32 to vector<8x128xf32>
        %1219 = arith.mulf %950, %1218 : vector<8x128xf32>
        %cst_374 = arith.constant 5.000000e-01 : f32
        %1220 = vector.broadcast %cst_374 : f32 to vector<8x128xf32>
        %1221 = arith.addf %1220, %1219 : vector<8x128xf32>
        %cst_375 = arith.constant 0.831469595 : f32
        %1222 = vector.broadcast %cst_375 : f32 to vector<8x128xf32>
        %1223 = arith.mulf %952, %1222 : vector<8x128xf32>
        %1224 = arith.addf %1221, %1223 : vector<8x128xf32>
        %c13_376 = arith.constant 13 : index
        %c0_377 = arith.constant 0 : index
        %c0_378 = arith.constant 0 : index
        %1225 = vector.load %arg7[%c13_376, %c0_377, %c0_378] : memref<32x8x128xf32, #tpu.memory_space<vmem>>, vector<1x8x128xf32>
        %1226 = vector.shape_cast %1225 : vector<1x8x128xf32> to vector<8x128xf32>
        %1227 = arith.mulf %1224, %1224 : vector<8x128xf32>
        %1228 = arith.mulf %1227, %1227 : vector<8x128xf32>
        %1229 = arith.mulf %1228, %1228 : vector<8x128xf32>
        %1230 = arith.mulf %1229, %1229 : vector<8x128xf32>
        %1231 = arith.mulf %1230, %1230 : vector<8x128xf32>
        %1232 = arith.mulf %1231, %1122 : vector<8x128xf32>
        %1233 = arith.addf %1226, %1232 : vector<8x128xf32>
        %c13_379 = arith.constant 13 : index
        %c0_380 = arith.constant 0 : index
        %c0_381 = arith.constant 0 : index
        %1234 = vector.load %arg7[%c13_379, %c0_380, %c0_381] : memref<32x8x128xf32, #tpu.memory_space<vmem>>, vector<1x8x128xf32>
        %1235 = vector.shape_cast %1234 : vector<1x8x128xf32> to vector<8x128xf32>
        %1236 = vector.shape_cast %1233 : vector<8x128xf32> to vector<1x8x128xf32>
        tpu.vector_store %arg7[%c13_379, %c0_380, %c0_381], %1236 {strides = array<i32>} : memref<32x8x128xf32, #tpu.memory_space<vmem>>, vector<1x8x128xf32>,
        %cst_382 = arith.constant -0.831469595 : f32
        %1237 = vector.broadcast %cst_382 : f32 to vector<8x128xf32>
        %1238 = arith.mulf %950, %1237 : vector<8x128xf32>
        %cst_383 = arith.constant 5.000000e-01 : f32
        %1239 = vector.broadcast %cst_383 : f32 to vector<8x128xf32>
        %1240 = arith.addf %1239, %1238 : vector<8x128xf32>
        %cst_384 = arith.constant 0.555570245 : f32
        %1241 = vector.broadcast %cst_384 : f32 to vector<8x128xf32>
        %1242 = arith.mulf %952, %1241 : vector<8x128xf32>
        %1243 = arith.addf %1240, %1242 : vector<8x128xf32>
        %c14_385 = arith.constant 14 : index
        %c0_386 = arith.constant 0 : index
        %c0_387 = arith.constant 0 : index
        %1244 = vector.load %arg7[%c14_385, %c0_386, %c0_387] : memref<32x8x128xf32, #tpu.memory_space<vmem>>, vector<1x8x128xf32>
        %1245 = vector.shape_cast %1244 : vector<1x8x128xf32> to vector<8x128xf32>
        %1246 = arith.mulf %1243, %1243 : vector<8x128xf32>
        %1247 = arith.mulf %1246, %1246 : vector<8x128xf32>
        %1248 = arith.mulf %1247, %1247 : vector<8x128xf32>
        %1249 = arith.mulf %1248, %1248 : vector<8x128xf32>
        %1250 = arith.mulf %1249, %1249 : vector<8x128xf32>
        %1251 = arith.mulf %1250, %1122 : vector<8x128xf32>
        %1252 = arith.addf %1245, %1251 : vector<8x128xf32>
        %c14_388 = arith.constant 14 : index
        %c0_389 = arith.constant 0 : index
        %c0_390 = arith.constant 0 : index
        %1253 = vector.load %arg7[%c14_388, %c0_389, %c0_390] : memref<32x8x128xf32, #tpu.memory_space<vmem>>, vector<1x8x128xf32>
        %1254 = vector.shape_cast %1253 : vector<1x8x128xf32> to vector<8x128xf32>
        %1255 = vector.shape_cast %1252 : vector<8x128xf32> to vector<1x8x128xf32>
        tpu.vector_store %arg7[%c14_388, %c0_389, %c0_390], %1255 {strides = array<i32>} : memref<32x8x128xf32, #tpu.memory_space<vmem>>, vector<1x8x128xf32>,
        %cst_391 = arith.constant -0.98078525 : f32
        %1256 = vector.broadcast %cst_391 : f32 to vector<8x128xf32>
        %1257 = arith.mulf %950, %1256 : vector<8x128xf32>
        %cst_392 = arith.constant 5.000000e-01 : f32
        %1258 = vector.broadcast %cst_392 : f32 to vector<8x128xf32>
        %1259 = arith.addf %1258, %1257 : vector<8x128xf32>
        %cst_393 = arith.constant 0.195090324 : f32
        %1260 = vector.broadcast %cst_393 : f32 to vector<8x128xf32>
        %1261 = arith.mulf %952, %1260 : vector<8x128xf32>
        %1262 = arith.addf %1259, %1261 : vector<8x128xf32>
        %c15_394 = arith.constant 15 : index
        %c0_395 = arith.constant 0 : index
        %c0_396 = arith.constant 0 : index
        %1263 = vector.load %arg7[%c15_394, %c0_395, %c0_396] : memref<32x8x128xf32, #tpu.memory_space<vmem>>, vector<1x8x128xf32>
        %1264 = vector.shape_cast %1263 : vector<1x8x128xf32> to vector<8x128xf32>
        %1265 = arith.mulf %1262, %1262 : vector<8x128xf32>
        %1266 = arith.mulf %1265, %1265 : vector<8x128xf32>
        %1267 = arith.mulf %1266, %1266 : vector<8x128xf32>
        %1268 = arith.mulf %1267, %1267 : vector<8x128xf32>
        %1269 = arith.mulf %1268, %1268 : vector<8x128xf32>
        %1270 = arith.mulf %1269, %1122 : vector<8x128xf32>
        %1271 = arith.addf %1264, %1270 : vector<8x128xf32>
        %c15_397 = arith.constant 15 : index
        %c0_398 = arith.constant 0 : index
        %c0_399 = arith.constant 0 : index
        %1272 = vector.load %arg7[%c15_397, %c0_398, %c0_399] : memref<32x8x128xf32, #tpu.memory_space<vmem>>, vector<1x8x128xf32>
        %1273 = vector.shape_cast %1272 : vector<1x8x128xf32> to vector<8x128xf32>
        %1274 = vector.shape_cast %1271 : vector<8x128xf32> to vector<1x8x128xf32>
        tpu.vector_store %arg7[%c15_397, %c0_398, %c0_399], %1274 {strides = array<i32>} : memref<32x8x128xf32, #tpu.memory_space<vmem>>, vector<1x8x128xf32>,
        %cst_400 = arith.constant 2.200000e+00 : f32
        %1275 = vector.broadcast %cst_400 : f32 to vector<8x128xf32>
        %1276 = arith.subf %956, %1275 : vector<8x128xf32>
        %cst_401 = arith.constant -8.000000e+00 : f32
        %1277 = vector.broadcast %cst_401 : f32 to vector<8x128xf32>
        %1278 = arith.mulf %1277, %1276 : vector<8x128xf32>
        %1279 = arith.mulf %1278, %1276 : vector<8x128xf32>
        %1280 = math.exp %1279 : vector<8x128xf32>
        %1281 = arith.mulf %1280, %926 : vector<8x128xf32>
        %cst_402 = arith.constant 0.98078525 : f32
        %1282 = vector.broadcast %cst_402 : f32 to vector<8x128xf32>
        %1283 = arith.mulf %950, %1282 : vector<8x128xf32>
        %cst_403 = arith.constant 5.000000e-01 : f32
        %1284 = vector.broadcast %cst_403 : f32 to vector<8x128xf32>
        %1285 = arith.addf %1284, %1283 : vector<8x128xf32>
        %cst_404 = arith.constant 0.195090324 : f32
        %1286 = vector.broadcast %cst_404 : f32 to vector<8x128xf32>
        %1287 = arith.mulf %952, %1286 : vector<8x128xf32>
        %1288 = arith.addf %1285, %1287 : vector<8x128xf32>
        %c16_405 = arith.constant 16 : index
        %c0_406 = arith.constant 0 : index
        %c0_407 = arith.constant 0 : index
        %1289 = vector.load %arg7[%c16_405, %c0_406, %c0_407] : memref<32x8x128xf32, #tpu.memory_space<vmem>>, vector<1x8x128xf32>
        %1290 = vector.shape_cast %1289 : vector<1x8x128xf32> to vector<8x128xf32>
        %1291 = arith.mulf %1288, %1288 : vector<8x128xf32>
        %1292 = arith.mulf %1291, %1291 : vector<8x128xf32>
        %1293 = arith.mulf %1292, %1292 : vector<8x128xf32>
        %1294 = arith.mulf %1293, %1293 : vector<8x128xf32>
        %1295 = arith.mulf %1294, %1294 : vector<8x128xf32>
        %1296 = arith.mulf %1295, %1281 : vector<8x128xf32>
        %1297 = arith.addf %1290, %1296 : vector<8x128xf32>
        %c16_408 = arith.constant 16 : index
        %c0_409 = arith.constant 0 : index
        %c0_410 = arith.constant 0 : index
        %1298 = vector.load %arg7[%c16_408, %c0_409, %c0_410] : memref<32x8x128xf32, #tpu.memory_space<vmem>>, vector<1x8x128xf32>
        %1299 = vector.shape_cast %1298 : vector<1x8x128xf32> to vector<8x128xf32>
        %1300 = vector.shape_cast %1297 : vector<8x128xf32> to vector<1x8x128xf32>
        tpu.vector_store %arg7[%c16_408, %c0_409, %c0_410], %1300 {strides = array<i32>} : memref<32x8x128xf32, #tpu.memory_space<vmem>>, vector<1x8x128xf32>,
        %cst_411 = arith.constant 0.831469595 : f32
        %1301 = vector.broadcast %cst_411 : f32 to vector<8x128xf32>
        %1302 = arith.mulf %950, %1301 : vector<8x128xf32>
        %cst_412 = arith.constant 5.000000e-01 : f32
        %1303 = vector.broadcast %cst_412 : f32 to vector<8x128xf32>
        %1304 = arith.addf %1303, %1302 : vector<8x128xf32>
        %cst_413 = arith.constant 0.555570245 : f32
        %1305 = vector.broadcast %cst_413 : f32 to vector<8x128xf32>
        %1306 = arith.mulf %952, %1305 : vector<8x128xf32>
        %1307 = arith.addf %1304, %1306 : vector<8x128xf32>
        %c17_414 = arith.constant 17 : index
        %c0_415 = arith.constant 0 : index
        %c0_416 = arith.constant 0 : index
        %1308 = vector.load %arg7[%c17_414, %c0_415, %c0_416] : memref<32x8x128xf32, #tpu.memory_space<vmem>>, vector<1x8x128xf32>
        %1309 = vector.shape_cast %1308 : vector<1x8x128xf32> to vector<8x128xf32>
        %1310 = arith.mulf %1307, %1307 : vector<8x128xf32>
        %1311 = arith.mulf %1310, %1310 : vector<8x128xf32>
        %1312 = arith.mulf %1311, %1311 : vector<8x128xf32>
        %1313 = arith.mulf %1312, %1312 : vector<8x128xf32>
        %1314 = arith.mulf %1313, %1313 : vector<8x128xf32>
        %1315 = arith.mulf %1314, %1281 : vector<8x128xf32>
        %1316 = arith.addf %1309, %1315 : vector<8x128xf32>
        %c17_417 = arith.constant 17 : index
        %c0_418 = arith.constant 0 : index
        %c0_419 = arith.constant 0 : index
        %1317 = vector.load %arg7[%c17_417, %c0_418, %c0_419] : memref<32x8x128xf32, #tpu.memory_space<vmem>>, vector<1x8x128xf32>
        %1318 = vector.shape_cast %1317 : vector<1x8x128xf32> to vector<8x128xf32>
        %1319 = vector.shape_cast %1316 : vector<8x128xf32> to vector<1x8x128xf32>
        tpu.vector_store %arg7[%c17_417, %c0_418, %c0_419], %1319 {strides = array<i32>} : memref<32x8x128xf32, #tpu.memory_space<vmem>>, vector<1x8x128xf32>,
        %cst_420 = arith.constant 0.555570245 : f32
        %1320 = vector.broadcast %cst_420 : f32 to vector<8x128xf32>
        %1321 = arith.mulf %950, %1320 : vector<8x128xf32>
        %cst_421 = arith.constant 5.000000e-01 : f32
        %1322 = vector.broadcast %cst_421 : f32 to vector<8x128xf32>
        %1323 = arith.addf %1322, %1321 : vector<8x128xf32>
        %cst_422 = arith.constant 0.831469595 : f32
        %1324 = vector.broadcast %cst_422 : f32 to vector<8x128xf32>
        %1325 = arith.mulf %952, %1324 : vector<8x128xf32>
        %1326 = arith.addf %1323, %1325 : vector<8x128xf32>
        %c18_423 = arith.constant 18 : index
        %c0_424 = arith.constant 0 : index
        %c0_425 = arith.constant 0 : index
        %1327 = vector.load %arg7[%c18_423, %c0_424, %c0_425] : memref<32x8x128xf32, #tpu.memory_space<vmem>>, vector<1x8x128xf32>
        %1328 = vector.shape_cast %1327 : vector<1x8x128xf32> to vector<8x128xf32>
        %1329 = arith.mulf %1326, %1326 : vector<8x128xf32>
        %1330 = arith.mulf %1329, %1329 : vector<8x128xf32>
        %1331 = arith.mulf %1330, %1330 : vector<8x128xf32>
        %1332 = arith.mulf %1331, %1331 : vector<8x128xf32>
        %1333 = arith.mulf %1332, %1332 : vector<8x128xf32>
        %1334 = arith.mulf %1333, %1281 : vector<8x128xf32>
        %1335 = arith.addf %1328, %1334 : vector<8x128xf32>
        %c18_426 = arith.constant 18 : index
        %c0_427 = arith.constant 0 : index
        %c0_428 = arith.constant 0 : index
        %1336 = vector.load %arg7[%c18_426, %c0_427, %c0_428] : memref<32x8x128xf32, #tpu.memory_space<vmem>>, vector<1x8x128xf32>
        %1337 = vector.shape_cast %1336 : vector<1x8x128xf32> to vector<8x128xf32>
        %1338 = vector.shape_cast %1335 : vector<8x128xf32> to vector<1x8x128xf32>
        tpu.vector_store %arg7[%c18_426, %c0_427, %c0_428], %1338 {strides = array<i32>} : memref<32x8x128xf32, #tpu.memory_space<vmem>>, vector<1x8x128xf32>,
        %cst_429 = arith.constant 0.195090324 : f32
        %1339 = vector.broadcast %cst_429 : f32 to vector<8x128xf32>
        %1340 = arith.mulf %950, %1339 : vector<8x128xf32>
        %cst_430 = arith.constant 5.000000e-01 : f32
        %1341 = vector.broadcast %cst_430 : f32 to vector<8x128xf32>
        %1342 = arith.addf %1341, %1340 : vector<8x128xf32>
        %cst_431 = arith.constant 0.98078525 : f32
        %1343 = vector.broadcast %cst_431 : f32 to vector<8x128xf32>
        %1344 = arith.mulf %952, %1343 : vector<8x128xf32>
        %1345 = arith.addf %1342, %1344 : vector<8x128xf32>
        %c19_432 = arith.constant 19 : index
        %c0_433 = arith.constant 0 : index
        %c0_434 = arith.constant 0 : index
        %1346 = vector.load %arg7[%c19_432, %c0_433, %c0_434] : memref<32x8x128xf32, #tpu.memory_space<vmem>>, vector<1x8x128xf32>
        %1347 = vector.shape_cast %1346 : vector<1x8x128xf32> to vector<8x128xf32>
        %1348 = arith.mulf %1345, %1345 : vector<8x128xf32>
        %1349 = arith.mulf %1348, %1348 : vector<8x128xf32>
        %1350 = arith.mulf %1349, %1349 : vector<8x128xf32>
        %1351 = arith.mulf %1350, %1350 : vector<8x128xf32>
        %1352 = arith.mulf %1351, %1351 : vector<8x128xf32>
        %1353 = arith.mulf %1352, %1281 : vector<8x128xf32>
        %1354 = arith.addf %1347, %1353 : vector<8x128xf32>
        %c19_435 = arith.constant 19 : index
        %c0_436 = arith.constant 0 : index
        %c0_437 = arith.constant 0 : index
        %1355 = vector.load %arg7[%c19_435, %c0_436, %c0_437] : memref<32x8x128xf32, #tpu.memory_space<vmem>>, vector<1x8x128xf32>
        %1356 = vector.shape_cast %1355 : vector<1x8x128xf32> to vector<8x128xf32>
        %1357 = vector.shape_cast %1354 : vector<8x128xf32> to vector<1x8x128xf32>
        tpu.vector_store %arg7[%c19_435, %c0_436, %c0_437], %1357 {strides = array<i32>} : memref<32x8x128xf32, #tpu.memory_space<vmem>>, vector<1x8x128xf32>,
        %cst_438 = arith.constant -0.195090324 : f32
        %1358 = vector.broadcast %cst_438 : f32 to vector<8x128xf32>
        %1359 = arith.mulf %950, %1358 : vector<8x128xf32>
        %cst_439 = arith.constant 5.000000e-01 : f32
        %1360 = vector.broadcast %cst_439 : f32 to vector<8x128xf32>
        %1361 = arith.addf %1360, %1359 : vector<8x128xf32>
        %cst_440 = arith.constant 0.98078525 : f32
        %1362 = vector.broadcast %cst_440 : f32 to vector<8x128xf32>
        %1363 = arith.mulf %952, %1362 : vector<8x128xf32>
        %1364 = arith.addf %1361, %1363 : vector<8x128xf32>
        %c20_441 = arith.constant 20 : index
        %c0_442 = arith.constant 0 : index
        %c0_443 = arith.constant 0 : index
        %1365 = vector.load %arg7[%c20_441, %c0_442, %c0_443] : memref<32x8x128xf32, #tpu.memory_space<vmem>>, vector<1x8x128xf32>
        %1366 = vector.shape_cast %1365 : vector<1x8x128xf32> to vector<8x128xf32>
        %1367 = arith.mulf %1364, %1364 : vector<8x128xf32>
        %1368 = arith.mulf %1367, %1367 : vector<8x128xf32>
        %1369 = arith.mulf %1368, %1368 : vector<8x128xf32>
        %1370 = arith.mulf %1369, %1369 : vector<8x128xf32>
        %1371 = arith.mulf %1370, %1370 : vector<8x128xf32>
        %1372 = arith.mulf %1371, %1281 : vector<8x128xf32>
        %1373 = arith.addf %1366, %1372 : vector<8x128xf32>
        %c20_444 = arith.constant 20 : index
        %c0_445 = arith.constant 0 : index
        %c0_446 = arith.constant 0 : index
        %1374 = vector.load %arg7[%c20_444, %c0_445, %c0_446] : memref<32x8x128xf32, #tpu.memory_space<vmem>>, vector<1x8x128xf32>
        %1375 = vector.shape_cast %1374 : vector<1x8x128xf32> to vector<8x128xf32>
        %1376 = vector.shape_cast %1373 : vector<8x128xf32> to vector<1x8x128xf32>
        tpu.vector_store %arg7[%c20_444, %c0_445, %c0_446], %1376 {strides = array<i32>} : memref<32x8x128xf32, #tpu.memory_space<vmem>>, vector<1x8x128xf32>,
        %cst_447 = arith.constant -0.555570245 : f32
        %1377 = vector.broadcast %cst_447 : f32 to vector<8x128xf32>
        %1378 = arith.mulf %950, %1377 : vector<8x128xf32>
        %cst_448 = arith.constant 5.000000e-01 : f32
        %1379 = vector.broadcast %cst_448 : f32 to vector<8x128xf32>
        %1380 = arith.addf %1379, %1378 : vector<8x128xf32>
        %cst_449 = arith.constant 0.831469595 : f32
        %1381 = vector.broadcast %cst_449 : f32 to vector<8x128xf32>
        %1382 = arith.mulf %952, %1381 : vector<8x128xf32>
        %1383 = arith.addf %1380, %1382 : vector<8x128xf32>
        %c21_450 = arith.constant 21 : index
        %c0_451 = arith.constant 0 : index
        %c0_452 = arith.constant 0 : index
        %1384 = vector.load %arg7[%c21_450, %c0_451, %c0_452] : memref<32x8x128xf32, #tpu.memory_space<vmem>>, vector<1x8x128xf32>
        %1385 = vector.shape_cast %1384 : vector<1x8x128xf32> to vector<8x128xf32>
        %1386 = arith.mulf %1383, %1383 : vector<8x128xf32>
        %1387 = arith.mulf %1386, %1386 : vector<8x128xf32>
        %1388 = arith.mulf %1387, %1387 : vector<8x128xf32>
        %1389 = arith.mulf %1388, %1388 : vector<8x128xf32>
        %1390 = arith.mulf %1389, %1389 : vector<8x128xf32>
        %1391 = arith.mulf %1390, %1281 : vector<8x128xf32>
        %1392 = arith.addf %1385, %1391 : vector<8x128xf32>
        %c21_453 = arith.constant 21 : index
        %c0_454 = arith.constant 0 : index
        %c0_455 = arith.constant 0 : index
        %1393 = vector.load %arg7[%c21_453, %c0_454, %c0_455] : memref<32x8x128xf32, #tpu.memory_space<vmem>>, vector<1x8x128xf32>
        %1394 = vector.shape_cast %1393 : vector<1x8x128xf32> to vector<8x128xf32>
        %1395 = vector.shape_cast %1392 : vector<8x128xf32> to vector<1x8x128xf32>
        tpu.vector_store %arg7[%c21_453, %c0_454, %c0_455], %1395 {strides = array<i32>} : memref<32x8x128xf32, #tpu.memory_space<vmem>>, vector<1x8x128xf32>,
        %cst_456 = arith.constant -0.831469595 : f32
        %1396 = vector.broadcast %cst_456 : f32 to vector<8x128xf32>
        %1397 = arith.mulf %950, %1396 : vector<8x128xf32>
        %cst_457 = arith.constant 5.000000e-01 : f32
        %1398 = vector.broadcast %cst_457 : f32 to vector<8x128xf32>
        %1399 = arith.addf %1398, %1397 : vector<8x128xf32>
        %cst_458 = arith.constant 0.555570245 : f32
        %1400 = vector.broadcast %cst_458 : f32 to vector<8x128xf32>
        %1401 = arith.mulf %952, %1400 : vector<8x128xf32>
        %1402 = arith.addf %1399, %1401 : vector<8x128xf32>
        %c22_459 = arith.constant 22 : index
        %c0_460 = arith.constant 0 : index
        %c0_461 = arith.constant 0 : index
        %1403 = vector.load %arg7[%c22_459, %c0_460, %c0_461] : memref<32x8x128xf32, #tpu.memory_space<vmem>>, vector<1x8x128xf32>
        %1404 = vector.shape_cast %1403 : vector<1x8x128xf32> to vector<8x128xf32>
        %1405 = arith.mulf %1402, %1402 : vector<8x128xf32>
        %1406 = arith.mulf %1405, %1405 : vector<8x128xf32>
        %1407 = arith.mulf %1406, %1406 : vector<8x128xf32>
        %1408 = arith.mulf %1407, %1407 : vector<8x128xf32>
        %1409 = arith.mulf %1408, %1408 : vector<8x128xf32>
        %1410 = arith.mulf %1409, %1281 : vector<8x128xf32>
        %1411 = arith.addf %1404, %1410 : vector<8x128xf32>
        %c22_462 = arith.constant 22 : index
        %c0_463 = arith.constant 0 : index
        %c0_464 = arith.constant 0 : index
        %1412 = vector.load %arg7[%c22_462, %c0_463, %c0_464] : memref<32x8x128xf32, #tpu.memory_space<vmem>>, vector<1x8x128xf32>
        %1413 = vector.shape_cast %1412 : vector<1x8x128xf32> to vector<8x128xf32>
        %1414 = vector.shape_cast %1411 : vector<8x128xf32> to vector<1x8x128xf32>
        tpu.vector_store %arg7[%c22_462, %c0_463, %c0_464], %1414 {strides = array<i32>} : memref<32x8x128xf32, #tpu.memory_space<vmem>>, vector<1x8x128xf32>,
        %cst_465 = arith.constant -0.98078525 : f32
        %1415 = vector.broadcast %cst_465 : f32 to vector<8x128xf32>
        %1416 = arith.mulf %950, %1415 : vector<8x128xf32>
        %cst_466 = arith.constant 5.000000e-01 : f32
        %1417 = vector.broadcast %cst_466 : f32 to vector<8x128xf32>
        %1418 = arith.addf %1417, %1416 : vector<8x128xf32>
        %cst_467 = arith.constant 0.195090324 : f32
        %1419 = vector.broadcast %cst_467 : f32 to vector<8x128xf32>
        %1420 = arith.mulf %952, %1419 : vector<8x128xf32>
        %1421 = arith.addf %1418, %1420 : vector<8x128xf32>
        %c23_468 = arith.constant 23 : index
        %c0_469 = arith.constant 0 : index
        %c0_470 = arith.constant 0 : index
        %1422 = vector.load %arg7[%c23_468, %c0_469, %c0_470] : memref<32x8x128xf32, #tpu.memory_space<vmem>>, vector<1x8x128xf32>
        %1423 = vector.shape_cast %1422 : vector<1x8x128xf32> to vector<8x128xf32>
        %1424 = arith.mulf %1421, %1421 : vector<8x128xf32>
        %1425 = arith.mulf %1424, %1424 : vector<8x128xf32>
        %1426 = arith.mulf %1425, %1425 : vector<8x128xf32>
        %1427 = arith.mulf %1426, %1426 : vector<8x128xf32>
        %1428 = arith.mulf %1427, %1427 : vector<8x128xf32>
        %1429 = arith.mulf %1428, %1281 : vector<8x128xf32>
        %1430 = arith.addf %1423, %1429 : vector<8x128xf32>
        %c23_471 = arith.constant 23 : index
        %c0_472 = arith.constant 0 : index
        %c0_473 = arith.constant 0 : index
        %1431 = vector.load %arg7[%c23_471, %c0_472, %c0_473] : memref<32x8x128xf32, #tpu.memory_space<vmem>>, vector<1x8x128xf32>
        %1432 = vector.shape_cast %1431 : vector<1x8x128xf32> to vector<8x128xf32>
        %1433 = vector.shape_cast %1430 : vector<8x128xf32> to vector<1x8x128xf32>
        tpu.vector_store %arg7[%c23_471, %c0_472, %c0_473], %1433 {strides = array<i32>} : memref<32x8x128xf32, #tpu.memory_space<vmem>>, vector<1x8x128xf32>,
        %cst_474 = arith.constant 2.850000e+00 : f32
        %1434 = vector.broadcast %cst_474 : f32 to vector<8x128xf32>
        %1435 = arith.subf %956, %1434 : vector<8x128xf32>
        %cst_475 = arith.constant -8.000000e+00 : f32
        %1436 = vector.broadcast %cst_475 : f32 to vector<8x128xf32>
        %1437 = arith.mulf %1436, %1435 : vector<8x128xf32>
        %1438 = arith.mulf %1437, %1435 : vector<8x128xf32>
        %1439 = math.exp %1438 : vector<8x128xf32>
        %1440 = arith.mulf %1439, %926 : vector<8x128xf32>
        %cst_476 = arith.constant 0.98078525 : f32
        %1441 = vector.broadcast %cst_476 : f32 to vector<8x128xf32>
        %1442 = arith.mulf %950, %1441 : vector<8x128xf32>
        %cst_477 = arith.constant 5.000000e-01 : f32
        %1443 = vector.broadcast %cst_477 : f32 to vector<8x128xf32>
        %1444 = arith.addf %1443, %1442 : vector<8x128xf32>
        %cst_478 = arith.constant 0.195090324 : f32
        %1445 = vector.broadcast %cst_478 : f32 to vector<8x128xf32>
        %1446 = arith.mulf %952, %1445 : vector<8x128xf32>
        %1447 = arith.addf %1444, %1446 : vector<8x128xf32>
        %c24_479 = arith.constant 24 : index
        %c0_480 = arith.constant 0 : index
        %c0_481 = arith.constant 0 : index
        %1448 = vector.load %arg7[%c24_479, %c0_480, %c0_481] : memref<32x8x128xf32, #tpu.memory_space<vmem>>, vector<1x8x128xf32>
        %1449 = vector.shape_cast %1448 : vector<1x8x128xf32> to vector<8x128xf32>
        %1450 = arith.mulf %1447, %1447 : vector<8x128xf32>
        %1451 = arith.mulf %1450, %1450 : vector<8x128xf32>
        %1452 = arith.mulf %1451, %1451 : vector<8x128xf32>
        %1453 = arith.mulf %1452, %1452 : vector<8x128xf32>
        %1454 = arith.mulf %1453, %1453 : vector<8x128xf32>
        %1455 = arith.mulf %1454, %1440 : vector<8x128xf32>
        %1456 = arith.addf %1449, %1455 : vector<8x128xf32>
        %c24_482 = arith.constant 24 : index
        %c0_483 = arith.constant 0 : index
        %c0_484 = arith.constant 0 : index
        %1457 = vector.load %arg7[%c24_482, %c0_483, %c0_484] : memref<32x8x128xf32, #tpu.memory_space<vmem>>, vector<1x8x128xf32>
        %1458 = vector.shape_cast %1457 : vector<1x8x128xf32> to vector<8x128xf32>
        %1459 = vector.shape_cast %1456 : vector<8x128xf32> to vector<1x8x128xf32>
        tpu.vector_store %arg7[%c24_482, %c0_483, %c0_484], %1459 {strides = array<i32>} : memref<32x8x128xf32, #tpu.memory_space<vmem>>, vector<1x8x128xf32>,
        %cst_485 = arith.constant 0.831469595 : f32
        %1460 = vector.broadcast %cst_485 : f32 to vector<8x128xf32>
        %1461 = arith.mulf %950, %1460 : vector<8x128xf32>
        %cst_486 = arith.constant 5.000000e-01 : f32
        %1462 = vector.broadcast %cst_486 : f32 to vector<8x128xf32>
        %1463 = arith.addf %1462, %1461 : vector<8x128xf32>
        %cst_487 = arith.constant 0.555570245 : f32
        %1464 = vector.broadcast %cst_487 : f32 to vector<8x128xf32>
        %1465 = arith.mulf %952, %1464 : vector<8x128xf32>
        %1466 = arith.addf %1463, %1465 : vector<8x128xf32>
        %c25_488 = arith.constant 25 : index
        %c0_489 = arith.constant 0 : index
        %c0_490 = arith.constant 0 : index
        %1467 = vector.load %arg7[%c25_488, %c0_489, %c0_490] : memref<32x8x128xf32, #tpu.memory_space<vmem>>, vector<1x8x128xf32>
        %1468 = vector.shape_cast %1467 : vector<1x8x128xf32> to vector<8x128xf32>
        %1469 = arith.mulf %1466, %1466 : vector<8x128xf32>
        %1470 = arith.mulf %1469, %1469 : vector<8x128xf32>
        %1471 = arith.mulf %1470, %1470 : vector<8x128xf32>
        %1472 = arith.mulf %1471, %1471 : vector<8x128xf32>
        %1473 = arith.mulf %1472, %1472 : vector<8x128xf32>
        %1474 = arith.mulf %1473, %1440 : vector<8x128xf32>
        %1475 = arith.addf %1468, %1474 : vector<8x128xf32>
        %c25_491 = arith.constant 25 : index
        %c0_492 = arith.constant 0 : index
        %c0_493 = arith.constant 0 : index
        %1476 = vector.load %arg7[%c25_491, %c0_492, %c0_493] : memref<32x8x128xf32, #tpu.memory_space<vmem>>, vector<1x8x128xf32>
        %1477 = vector.shape_cast %1476 : vector<1x8x128xf32> to vector<8x128xf32>
        %1478 = vector.shape_cast %1475 : vector<8x128xf32> to vector<1x8x128xf32>
        tpu.vector_store %arg7[%c25_491, %c0_492, %c0_493], %1478 {strides = array<i32>} : memref<32x8x128xf32, #tpu.memory_space<vmem>>, vector<1x8x128xf32>,
        %cst_494 = arith.constant 0.555570245 : f32
        %1479 = vector.broadcast %cst_494 : f32 to vector<8x128xf32>
        %1480 = arith.mulf %950, %1479 : vector<8x128xf32>
        %cst_495 = arith.constant 5.000000e-01 : f32
        %1481 = vector.broadcast %cst_495 : f32 to vector<8x128xf32>
        %1482 = arith.addf %1481, %1480 : vector<8x128xf32>
        %cst_496 = arith.constant 0.831469595 : f32
        %1483 = vector.broadcast %cst_496 : f32 to vector<8x128xf32>
        %1484 = arith.mulf %952, %1483 : vector<8x128xf32>
        %1485 = arith.addf %1482, %1484 : vector<8x128xf32>
        %c26_497 = arith.constant 26 : index
        %c0_498 = arith.constant 0 : index
        %c0_499 = arith.constant 0 : index
        %1486 = vector.load %arg7[%c26_497, %c0_498, %c0_499] : memref<32x8x128xf32, #tpu.memory_space<vmem>>, vector<1x8x128xf32>
        %1487 = vector.shape_cast %1486 : vector<1x8x128xf32> to vector<8x128xf32>
        %1488 = arith.mulf %1485, %1485 : vector<8x128xf32>
        %1489 = arith.mulf %1488, %1488 : vector<8x128xf32>
        %1490 = arith.mulf %1489, %1489 : vector<8x128xf32>
        %1491 = arith.mulf %1490, %1490 : vector<8x128xf32>
        %1492 = arith.mulf %1491, %1491 : vector<8x128xf32>
        %1493 = arith.mulf %1492, %1440 : vector<8x128xf32>
        %1494 = arith.addf %1487, %1493 : vector<8x128xf32>
        %c26_500 = arith.constant 26 : index
        %c0_501 = arith.constant 0 : index
        %c0_502 = arith.constant 0 : index
        %1495 = vector.load %arg7[%c26_500, %c0_501, %c0_502] : memref<32x8x128xf32, #tpu.memory_space<vmem>>, vector<1x8x128xf32>
        %1496 = vector.shape_cast %1495 : vector<1x8x128xf32> to vector<8x128xf32>
        %1497 = vector.shape_cast %1494 : vector<8x128xf32> to vector<1x8x128xf32>
        tpu.vector_store %arg7[%c26_500, %c0_501, %c0_502], %1497 {strides = array<i32>} : memref<32x8x128xf32, #tpu.memory_space<vmem>>, vector<1x8x128xf32>,
        %cst_503 = arith.constant 0.195090324 : f32
        %1498 = vector.broadcast %cst_503 : f32 to vector<8x128xf32>
        %1499 = arith.mulf %950, %1498 : vector<8x128xf32>
        %cst_504 = arith.constant 5.000000e-01 : f32
        %1500 = vector.broadcast %cst_504 : f32 to vector<8x128xf32>
        %1501 = arith.addf %1500, %1499 : vector<8x128xf32>
        %cst_505 = arith.constant 0.98078525 : f32
        %1502 = vector.broadcast %cst_505 : f32 to vector<8x128xf32>
        %1503 = arith.mulf %952, %1502 : vector<8x128xf32>
        %1504 = arith.addf %1501, %1503 : vector<8x128xf32>
        %c27_506 = arith.constant 27 : index
        %c0_507 = arith.constant 0 : index
        %c0_508 = arith.constant 0 : index
        %1505 = vector.load %arg7[%c27_506, %c0_507, %c0_508] : memref<32x8x128xf32, #tpu.memory_space<vmem>>, vector<1x8x128xf32>
        %1506 = vector.shape_cast %1505 : vector<1x8x128xf32> to vector<8x128xf32>
        %1507 = arith.mulf %1504, %1504 : vector<8x128xf32>
        %1508 = arith.mulf %1507, %1507 : vector<8x128xf32>
        %1509 = arith.mulf %1508, %1508 : vector<8x128xf32>
        %1510 = arith.mulf %1509, %1509 : vector<8x128xf32>
        %1511 = arith.mulf %1510, %1510 : vector<8x128xf32>
        %1512 = arith.mulf %1511, %1440 : vector<8x128xf32>
        %1513 = arith.addf %1506, %1512 : vector<8x128xf32>
        %c27_509 = arith.constant 27 : index
        %c0_510 = arith.constant 0 : index
        %c0_511 = arith.constant 0 : index
        %1514 = vector.load %arg7[%c27_509, %c0_510, %c0_511] : memref<32x8x128xf32, #tpu.memory_space<vmem>>, vector<1x8x128xf32>
        %1515 = vector.shape_cast %1514 : vector<1x8x128xf32> to vector<8x128xf32>
        %1516 = vector.shape_cast %1513 : vector<8x128xf32> to vector<1x8x128xf32>
        tpu.vector_store %arg7[%c27_509, %c0_510, %c0_511], %1516 {strides = array<i32>} : memref<32x8x128xf32, #tpu.memory_space<vmem>>, vector<1x8x128xf32>,
        %cst_512 = arith.constant -0.195090324 : f32
        %1517 = vector.broadcast %cst_512 : f32 to vector<8x128xf32>
        %1518 = arith.mulf %950, %1517 : vector<8x128xf32>
        %cst_513 = arith.constant 5.000000e-01 : f32
        %1519 = vector.broadcast %cst_513 : f32 to vector<8x128xf32>
        %1520 = arith.addf %1519, %1518 : vector<8x128xf32>
        %cst_514 = arith.constant 0.98078525 : f32
        %1521 = vector.broadcast %cst_514 : f32 to vector<8x128xf32>
        %1522 = arith.mulf %952, %1521 : vector<8x128xf32>
        %1523 = arith.addf %1520, %1522 : vector<8x128xf32>
        %c28_515 = arith.constant 28 : index
        %c0_516 = arith.constant 0 : index
        %c0_517 = arith.constant 0 : index
        %1524 = vector.load %arg7[%c28_515, %c0_516, %c0_517] : memref<32x8x128xf32, #tpu.memory_space<vmem>>, vector<1x8x128xf32>
        %1525 = vector.shape_cast %1524 : vector<1x8x128xf32> to vector<8x128xf32>
        %1526 = arith.mulf %1523, %1523 : vector<8x128xf32>
        %1527 = arith.mulf %1526, %1526 : vector<8x128xf32>
        %1528 = arith.mulf %1527, %1527 : vector<8x128xf32>
        %1529 = arith.mulf %1528, %1528 : vector<8x128xf32>
        %1530 = arith.mulf %1529, %1529 : vector<8x128xf32>
        %1531 = arith.mulf %1530, %1440 : vector<8x128xf32>
        %1532 = arith.addf %1525, %1531 : vector<8x128xf32>
        %c28_518 = arith.constant 28 : index
        %c0_519 = arith.constant 0 : index
        %c0_520 = arith.constant 0 : index
        %1533 = vector.load %arg7[%c28_518, %c0_519, %c0_520] : memref<32x8x128xf32, #tpu.memory_space<vmem>>, vector<1x8x128xf32>
        %1534 = vector.shape_cast %1533 : vector<1x8x128xf32> to vector<8x128xf32>
        %1535 = vector.shape_cast %1532 : vector<8x128xf32> to vector<1x8x128xf32>
        tpu.vector_store %arg7[%c28_518, %c0_519, %c0_520], %1535 {strides = array<i32>} : memref<32x8x128xf32, #tpu.memory_space<vmem>>, vector<1x8x128xf32>,
        %cst_521 = arith.constant -0.555570245 : f32
        %1536 = vector.broadcast %cst_521 : f32 to vector<8x128xf32>
        %1537 = arith.mulf %950, %1536 : vector<8x128xf32>
        %cst_522 = arith.constant 5.000000e-01 : f32
        %1538 = vector.broadcast %cst_522 : f32 to vector<8x128xf32>
        %1539 = arith.addf %1538, %1537 : vector<8x128xf32>
        %cst_523 = arith.constant 0.831469595 : f32
        %1540 = vector.broadcast %cst_523 : f32 to vector<8x128xf32>
        %1541 = arith.mulf %952, %1540 : vector<8x128xf32>
        %1542 = arith.addf %1539, %1541 : vector<8x128xf32>
        %c29_524 = arith.constant 29 : index
        %c0_525 = arith.constant 0 : index
        %c0_526 = arith.constant 0 : index
        %1543 = vector.load %arg7[%c29_524, %c0_525, %c0_526] : memref<32x8x128xf32, #tpu.memory_space<vmem>>, vector<1x8x128xf32>
        %1544 = vector.shape_cast %1543 : vector<1x8x128xf32> to vector<8x128xf32>
        %1545 = arith.mulf %1542, %1542 : vector<8x128xf32>
        %1546 = arith.mulf %1545, %1545 : vector<8x128xf32>
        %1547 = arith.mulf %1546, %1546 : vector<8x128xf32>
        %1548 = arith.mulf %1547, %1547 : vector<8x128xf32>
        %1549 = arith.mulf %1548, %1548 : vector<8x128xf32>
        %1550 = arith.mulf %1549, %1440 : vector<8x128xf32>
        %1551 = arith.addf %1544, %1550 : vector<8x128xf32>
        %c29_527 = arith.constant 29 : index
        %c0_528 = arith.constant 0 : index
        %c0_529 = arith.constant 0 : index
        %1552 = vector.load %arg7[%c29_527, %c0_528, %c0_529] : memref<32x8x128xf32, #tpu.memory_space<vmem>>, vector<1x8x128xf32>
        %1553 = vector.shape_cast %1552 : vector<1x8x128xf32> to vector<8x128xf32>
        %1554 = vector.shape_cast %1551 : vector<8x128xf32> to vector<1x8x128xf32>
        tpu.vector_store %arg7[%c29_527, %c0_528, %c0_529], %1554 {strides = array<i32>} : memref<32x8x128xf32, #tpu.memory_space<vmem>>, vector<1x8x128xf32>,
        %cst_530 = arith.constant -0.831469595 : f32
        %1555 = vector.broadcast %cst_530 : f32 to vector<8x128xf32>
        %1556 = arith.mulf %950, %1555 : vector<8x128xf32>
        %cst_531 = arith.constant 5.000000e-01 : f32
        %1557 = vector.broadcast %cst_531 : f32 to vector<8x128xf32>
        %1558 = arith.addf %1557, %1556 : vector<8x128xf32>
        %cst_532 = arith.constant 0.555570245 : f32
        %1559 = vector.broadcast %cst_532 : f32 to vector<8x128xf32>
        %1560 = arith.mulf %952, %1559 : vector<8x128xf32>
        %1561 = arith.addf %1558, %1560 : vector<8x128xf32>
        %c30_533 = arith.constant 30 : index
        %c0_534 = arith.constant 0 : index
        %c0_535 = arith.constant 0 : index
        %1562 = vector.load %arg7[%c30_533, %c0_534, %c0_535] : memref<32x8x128xf32, #tpu.memory_space<vmem>>, vector<1x8x128xf32>
        %1563 = vector.shape_cast %1562 : vector<1x8x128xf32> to vector<8x128xf32>
        %1564 = arith.mulf %1561, %1561 : vector<8x128xf32>
        %1565 = arith.mulf %1564, %1564 : vector<8x128xf32>
        %1566 = arith.mulf %1565, %1565 : vector<8x128xf32>
        %1567 = arith.mulf %1566, %1566 : vector<8x128xf32>
        %1568 = arith.mulf %1567, %1567 : vector<8x128xf32>
        %1569 = arith.mulf %1568, %1440 : vector<8x128xf32>
        %1570 = arith.addf %1563, %1569 : vector<8x128xf32>
        %c30_536 = arith.constant 30 : index
        %c0_537 = arith.constant 0 : index
        %c0_538 = arith.constant 0 : index
        %1571 = vector.load %arg7[%c30_536, %c0_537, %c0_538] : memref<32x8x128xf32, #tpu.memory_space<vmem>>, vector<1x8x128xf32>
        %1572 = vector.shape_cast %1571 : vector<1x8x128xf32> to vector<8x128xf32>
        %1573 = vector.shape_cast %1570 : vector<8x128xf32> to vector<1x8x128xf32>
        tpu.vector_store %arg7[%c30_536, %c0_537, %c0_538], %1573 {strides = array<i32>} : memref<32x8x128xf32, #tpu.memory_space<vmem>>, vector<1x8x128xf32>,
        %cst_539 = arith.constant -0.98078525 : f32
        %1574 = vector.broadcast %cst_539 : f32 to vector<8x128xf32>
        %1575 = arith.mulf %950, %1574 : vector<8x128xf32>
        %cst_540 = arith.constant 5.000000e-01 : f32
        %1576 = vector.broadcast %cst_540 : f32 to vector<8x128xf32>
        %1577 = arith.addf %1576, %1575 : vector<8x128xf32>
        %cst_541 = arith.constant 0.195090324 : f32
        %1578 = vector.broadcast %cst_541 : f32 to vector<8x128xf32>
        %1579 = arith.mulf %952, %1578 : vector<8x128xf32>
        %1580 = arith.addf %1577, %1579 : vector<8x128xf32>
        %c31_542 = arith.constant 31 : index
        %c0_543 = arith.constant 0 : index
        %c0_544 = arith.constant 0 : index
        %1581 = vector.load %arg7[%c31_542, %c0_543, %c0_544] : memref<32x8x128xf32, #tpu.memory_space<vmem>>, vector<1x8x128xf32>
        %1582 = vector.shape_cast %1581 : vector<1x8x128xf32> to vector<8x128xf32>
        %1583 = arith.mulf %1580, %1580 : vector<8x128xf32>
        %1584 = arith.mulf %1583, %1583 : vector<8x128xf32>
        %1585 = arith.mulf %1584, %1584 : vector<8x128xf32>
        %1586 = arith.mulf %1585, %1585 : vector<8x128xf32>
        %1587 = arith.mulf %1586, %1586 : vector<8x128xf32>
        %1588 = arith.mulf %1587, %1440 : vector<8x128xf32>
        %1589 = arith.addf %1582, %1588 : vector<8x128xf32>
        %c31_545 = arith.constant 31 : index
        %c0_546 = arith.constant 0 : index
        %c0_547 = arith.constant 0 : index
        %1590 = vector.load %arg7[%c31_545, %c0_546, %c0_547] : memref<32x8x128xf32, #tpu.memory_space<vmem>>, vector<1x8x128xf32>
        %1591 = vector.shape_cast %1590 : vector<1x8x128xf32> to vector<8x128xf32>
        %1592 = vector.shape_cast %1589 : vector<8x128xf32> to vector<1x8x128xf32>
        tpu.vector_store %arg7[%c31_545, %c0_546, %c0_547], %1592 {strides = array<i32>} : memref<32x8x128xf32, #tpu.memory_space<vmem>>, vector<1x8x128xf32>,
      } else {
      }
    }
    %c16_i32_124 = arith.constant 16 : i32
    %c0_125 = arith.constant 0 : index
    %c0_126 = arith.constant 0 : index
    %c0_127 = arith.constant 0 : index
    %304 = vector.load %arg7[%c0_125, %c0_126, %c0_127] : memref<32x8x128xf32, #tpu.memory_space<vmem>>, vector<1x8x128xf32>
    %305 = vector.shape_cast %304 : vector<1x8x128xf32> to vector<8x128xf32>
    %cst_128 = arith.constant dense<0.000000e+00> : vector<8xf32>
    %306 = vector.multi_reduction <add>, %305, %cst_128 [1] : vector<8x128xf32> to vector<8xf32>
    %307 = vector.shape_cast %306 : vector<8xf32> to vector<8x1xf32>
    %308 = arith.addf %49, %307 : vector<8x1xf32>
    %c1_129 = arith.constant 1 : index
    %c0_130 = arith.constant 0 : index
    %c0_131 = arith.constant 0 : index
    %309 = vector.load %arg7[%c1_129, %c0_130, %c0_131] : memref<32x8x128xf32, #tpu.memory_space<vmem>>, vector<1x8x128xf32>
    %310 = vector.shape_cast %309 : vector<1x8x128xf32> to vector<8x128xf32>
    %cst_132 = arith.constant dense<0.000000e+00> : vector<8xf32>
    %311 = vector.multi_reduction <add>, %310, %cst_132 [1] : vector<8x128xf32> to vector<8xf32>
    %312 = vector.shape_cast %311 : vector<8xf32> to vector<8x1xf32>
    %313 = arith.addf %50, %312 : vector<8x1xf32>
    %c2_133 = arith.constant 2 : index
    %c0_134 = arith.constant 0 : index
    %c0_135 = arith.constant 0 : index
    %314 = vector.load %arg7[%c2_133, %c0_134, %c0_135] : memref<32x8x128xf32, #tpu.memory_space<vmem>>, vector<1x8x128xf32>
    %315 = vector.shape_cast %314 : vector<1x8x128xf32> to vector<8x128xf32>
    %cst_136 = arith.constant dense<0.000000e+00> : vector<8xf32>
    %316 = vector.multi_reduction <add>, %315, %cst_136 [1] : vector<8x128xf32> to vector<8xf32>
    %317 = vector.shape_cast %316 : vector<8xf32> to vector<8x1xf32>
    %318 = arith.addf %51, %317 : vector<8x1xf32>
    %c3 = arith.constant 3 : index
    %c0_137 = arith.constant 0 : index
    %c0_138 = arith.constant 0 : index
    %319 = vector.load %arg7[%c3, %c0_137, %c0_138] : memref<32x8x128xf32, #tpu.memory_space<vmem>>, vector<1x8x128xf32>
    %320 = vector.shape_cast %319 : vector<1x8x128xf32> to vector<8x128xf32>
    %cst_139 = arith.constant dense<0.000000e+00> : vector<8xf32>
    %321 = vector.multi_reduction <add>, %320, %cst_139 [1] : vector<8x128xf32> to vector<8xf32>
    %322 = vector.shape_cast %321 : vector<8xf32> to vector<8x1xf32>
    %323 = arith.addf %52, %322 : vector<8x1xf32>
    %c4 = arith.constant 4 : index
    %c0_140 = arith.constant 0 : index
    %c0_141 = arith.constant 0 : index
    %324 = vector.load %arg7[%c4, %c0_140, %c0_141] : memref<32x8x128xf32, #tpu.memory_space<vmem>>, vector<1x8x128xf32>
    %325 = vector.shape_cast %324 : vector<1x8x128xf32> to vector<8x128xf32>
    %cst_142 = arith.constant dense<0.000000e+00> : vector<8xf32>
    %326 = vector.multi_reduction <add>, %325, %cst_142 [1] : vector<8x128xf32> to vector<8xf32>
    %327 = vector.shape_cast %326 : vector<8xf32> to vector<8x1xf32>
    %328 = arith.addf %53, %327 : vector<8x1xf32>
    %c5 = arith.constant 5 : index
    %c0_143 = arith.constant 0 : index
    %c0_144 = arith.constant 0 : index
    %329 = vector.load %arg7[%c5, %c0_143, %c0_144] : memref<32x8x128xf32, #tpu.memory_space<vmem>>, vector<1x8x128xf32>
    %330 = vector.shape_cast %329 : vector<1x8x128xf32> to vector<8x128xf32>
    %cst_145 = arith.constant dense<0.000000e+00> : vector<8xf32>
    %331 = vector.multi_reduction <add>, %330, %cst_145 [1] : vector<8x128xf32> to vector<8xf32>
    %332 = vector.shape_cast %331 : vector<8xf32> to vector<8x1xf32>
    %333 = arith.addf %54, %332 : vector<8x1xf32>
    %c6 = arith.constant 6 : index
    %c0_146 = arith.constant 0 : index
    %c0_147 = arith.constant 0 : index
    %334 = vector.load %arg7[%c6, %c0_146, %c0_147] : memref<32x8x128xf32, #tpu.memory_space<vmem>>, vector<1x8x128xf32>
    %335 = vector.shape_cast %334 : vector<1x8x128xf32> to vector<8x128xf32>
    %cst_148 = arith.constant dense<0.000000e+00> : vector<8xf32>
    %336 = vector.multi_reduction <add>, %335, %cst_148 [1] : vector<8x128xf32> to vector<8xf32>
    %337 = vector.shape_cast %336 : vector<8xf32> to vector<8x1xf32>
    %338 = arith.addf %55, %337 : vector<8x1xf32>
    %c7 = arith.constant 7 : index
    %c0_149 = arith.constant 0 : index
    %c0_150 = arith.constant 0 : index
    %339 = vector.load %arg7[%c7, %c0_149, %c0_150] : memref<32x8x128xf32, #tpu.memory_space<vmem>>, vector<1x8x128xf32>
    %340 = vector.shape_cast %339 : vector<1x8x128xf32> to vector<8x128xf32>
    %cst_151 = arith.constant dense<0.000000e+00> : vector<8xf32>
    %341 = vector.multi_reduction <add>, %340, %cst_151 [1] : vector<8x128xf32> to vector<8xf32>
    %342 = vector.shape_cast %341 : vector<8xf32> to vector<8x1xf32>
    %343 = arith.addf %56, %342 : vector<8x1xf32>
    %c8 = arith.constant 8 : index
    %c0_152 = arith.constant 0 : index
    %c0_153 = arith.constant 0 : index
    %344 = vector.load %arg7[%c8, %c0_152, %c0_153] : memref<32x8x128xf32, #tpu.memory_space<vmem>>, vector<1x8x128xf32>
    %345 = vector.shape_cast %344 : vector<1x8x128xf32> to vector<8x128xf32>
    %cst_154 = arith.constant dense<0.000000e+00> : vector<8xf32>
    %346 = vector.multi_reduction <add>, %345, %cst_154 [1] : vector<8x128xf32> to vector<8xf32>
    %347 = vector.shape_cast %346 : vector<8xf32> to vector<8x1xf32>
    %348 = arith.addf %57, %347 : vector<8x1xf32>
    %c9 = arith.constant 9 : index
    %c0_155 = arith.constant 0 : index
    %c0_156 = arith.constant 0 : index
    %349 = vector.load %arg7[%c9, %c0_155, %c0_156] : memref<32x8x128xf32, #tpu.memory_space<vmem>>, vector<1x8x128xf32>
    %350 = vector.shape_cast %349 : vector<1x8x128xf32> to vector<8x128xf32>
    %cst_157 = arith.constant dense<0.000000e+00> : vector<8xf32>
    %351 = vector.multi_reduction <add>, %350, %cst_157 [1] : vector<8x128xf32> to vector<8xf32>
    %352 = vector.shape_cast %351 : vector<8xf32> to vector<8x1xf32>
    %353 = arith.addf %58, %352 : vector<8x1xf32>
    %c10 = arith.constant 10 : index
    %c0_158 = arith.constant 0 : index
    %c0_159 = arith.constant 0 : index
    %354 = vector.load %arg7[%c10, %c0_158, %c0_159] : memref<32x8x128xf32, #tpu.memory_space<vmem>>, vector<1x8x128xf32>
    %355 = vector.shape_cast %354 : vector<1x8x128xf32> to vector<8x128xf32>
    %cst_160 = arith.constant dense<0.000000e+00> : vector<8xf32>
    %356 = vector.multi_reduction <add>, %355, %cst_160 [1] : vector<8x128xf32> to vector<8xf32>
    %357 = vector.shape_cast %356 : vector<8xf32> to vector<8x1xf32>
    %358 = arith.addf %59, %357 : vector<8x1xf32>
    %c11 = arith.constant 11 : index
    %c0_161 = arith.constant 0 : index
    %c0_162 = arith.constant 0 : index
    %359 = vector.load %arg7[%c11, %c0_161, %c0_162] : memref<32x8x128xf32, #tpu.memory_space<vmem>>, vector<1x8x128xf32>
    %360 = vector.shape_cast %359 : vector<1x8x128xf32> to vector<8x128xf32>
    %cst_163 = arith.constant dense<0.000000e+00> : vector<8xf32>
    %361 = vector.multi_reduction <add>, %360, %cst_163 [1] : vector<8x128xf32> to vector<8xf32>
    %362 = vector.shape_cast %361 : vector<8xf32> to vector<8x1xf32>
    %363 = arith.addf %60, %362 : vector<8x1xf32>
    %c12 = arith.constant 12 : index
    %c0_164 = arith.constant 0 : index
    %c0_165 = arith.constant 0 : index
    %364 = vector.load %arg7[%c12, %c0_164, %c0_165] : memref<32x8x128xf32, #tpu.memory_space<vmem>>, vector<1x8x128xf32>
    %365 = vector.shape_cast %364 : vector<1x8x128xf32> to vector<8x128xf32>
    %cst_166 = arith.constant dense<0.000000e+00> : vector<8xf32>
    %366 = vector.multi_reduction <add>, %365, %cst_166 [1] : vector<8x128xf32> to vector<8xf32>
    %367 = vector.shape_cast %366 : vector<8xf32> to vector<8x1xf32>
    %368 = arith.addf %61, %367 : vector<8x1xf32>
    %c13 = arith.constant 13 : index
    %c0_167 = arith.constant 0 : index
    %c0_168 = arith.constant 0 : index
    %369 = vector.load %arg7[%c13, %c0_167, %c0_168] : memref<32x8x128xf32, #tpu.memory_space<vmem>>, vector<1x8x128xf32>
    %370 = vector.shape_cast %369 : vector<1x8x128xf32> to vector<8x128xf32>
    %cst_169 = arith.constant dense<0.000000e+00> : vector<8xf32>
    %371 = vector.multi_reduction <add>, %370, %cst_169 [1] : vector<8x128xf32> to vector<8xf32>
    %372 = vector.shape_cast %371 : vector<8xf32> to vector<8x1xf32>
    %373 = arith.addf %62, %372 : vector<8x1xf32>
    %c14 = arith.constant 14 : index
    %c0_170 = arith.constant 0 : index
    %c0_171 = arith.constant 0 : index
    %374 = vector.load %arg7[%c14, %c0_170, %c0_171] : memref<32x8x128xf32, #tpu.memory_space<vmem>>, vector<1x8x128xf32>
    %375 = vector.shape_cast %374 : vector<1x8x128xf32> to vector<8x128xf32>
    %cst_172 = arith.constant dense<0.000000e+00> : vector<8xf32>
    %376 = vector.multi_reduction <add>, %375, %cst_172 [1] : vector<8x128xf32> to vector<8xf32>
    %377 = vector.shape_cast %376 : vector<8xf32> to vector<8x1xf32>
    %378 = arith.addf %63, %377 : vector<8x1xf32>
    %c15 = arith.constant 15 : index
    %c0_173 = arith.constant 0 : index
    %c0_174 = arith.constant 0 : index
    %379 = vector.load %arg7[%c15, %c0_173, %c0_174] : memref<32x8x128xf32, #tpu.memory_space<vmem>>, vector<1x8x128xf32>
    %380 = vector.shape_cast %379 : vector<1x8x128xf32> to vector<8x128xf32>
    %cst_175 = arith.constant dense<0.000000e+00> : vector<8xf32>
    %381 = vector.multi_reduction <add>, %380, %cst_175 [1] : vector<8x128xf32> to vector<8xf32>
    %382 = vector.shape_cast %381 : vector<8xf32> to vector<8x1xf32>
    %383 = arith.addf %64, %382 : vector<8x1xf32>
    %c16 = arith.constant 16 : index
    %c0_176 = arith.constant 0 : index
    %c0_177 = arith.constant 0 : index
    %384 = vector.load %arg7[%c16, %c0_176, %c0_177] : memref<32x8x128xf32, #tpu.memory_space<vmem>>, vector<1x8x128xf32>
    %385 = vector.shape_cast %384 : vector<1x8x128xf32> to vector<8x128xf32>
    %cst_178 = arith.constant dense<0.000000e+00> : vector<8xf32>
    %386 = vector.multi_reduction <add>, %385, %cst_178 [1] : vector<8x128xf32> to vector<8xf32>
    %387 = vector.shape_cast %386 : vector<8xf32> to vector<8x1xf32>
    %388 = arith.addf %65, %387 : vector<8x1xf32>
    %c17 = arith.constant 17 : index
    %c0_179 = arith.constant 0 : index
    %c0_180 = arith.constant 0 : index
    %389 = vector.load %arg7[%c17, %c0_179, %c0_180] : memref<32x8x128xf32, #tpu.memory_space<vmem>>, vector<1x8x128xf32>
    %390 = vector.shape_cast %389 : vector<1x8x128xf32> to vector<8x128xf32>
    %cst_181 = arith.constant dense<0.000000e+00> : vector<8xf32>
    %391 = vector.multi_reduction <add>, %390, %cst_181 [1] : vector<8x128xf32> to vector<8xf32>
    %392 = vector.shape_cast %391 : vector<8xf32> to vector<8x1xf32>
    %393 = arith.addf %66, %392 : vector<8x1xf32>
    %c18 = arith.constant 18 : index
    %c0_182 = arith.constant 0 : index
    %c0_183 = arith.constant 0 : index
    %394 = vector.load %arg7[%c18, %c0_182, %c0_183] : memref<32x8x128xf32, #tpu.memory_space<vmem>>, vector<1x8x128xf32>
    %395 = vector.shape_cast %394 : vector<1x8x128xf32> to vector<8x128xf32>
    %cst_184 = arith.constant dense<0.000000e+00> : vector<8xf32>
    %396 = vector.multi_reduction <add>, %395, %cst_184 [1] : vector<8x128xf32> to vector<8xf32>
    %397 = vector.shape_cast %396 : vector<8xf32> to vector<8x1xf32>
    %398 = arith.addf %67, %397 : vector<8x1xf32>
    %c19 = arith.constant 19 : index
    %c0_185 = arith.constant 0 : index
    %c0_186 = arith.constant 0 : index
    %399 = vector.load %arg7[%c19, %c0_185, %c0_186] : memref<32x8x128xf32, #tpu.memory_space<vmem>>, vector<1x8x128xf32>
    %400 = vector.shape_cast %399 : vector<1x8x128xf32> to vector<8x128xf32>
    %cst_187 = arith.constant dense<0.000000e+00> : vector<8xf32>
    %401 = vector.multi_reduction <add>, %400, %cst_187 [1] : vector<8x128xf32> to vector<8xf32>
    %402 = vector.shape_cast %401 : vector<8xf32> to vector<8x1xf32>
    %403 = arith.addf %68, %402 : vector<8x1xf32>
    %c20 = arith.constant 20 : index
    %c0_188 = arith.constant 0 : index
    %c0_189 = arith.constant 0 : index
    %404 = vector.load %arg7[%c20, %c0_188, %c0_189] : memref<32x8x128xf32, #tpu.memory_space<vmem>>, vector<1x8x128xf32>
    %405 = vector.shape_cast %404 : vector<1x8x128xf32> to vector<8x128xf32>
    %cst_190 = arith.constant dense<0.000000e+00> : vector<8xf32>
    %406 = vector.multi_reduction <add>, %405, %cst_190 [1] : vector<8x128xf32> to vector<8xf32>
    %407 = vector.shape_cast %406 : vector<8xf32> to vector<8x1xf32>
    %408 = arith.addf %69, %407 : vector<8x1xf32>
    %c21 = arith.constant 21 : index
    %c0_191 = arith.constant 0 : index
    %c0_192 = arith.constant 0 : index
    %409 = vector.load %arg7[%c21, %c0_191, %c0_192] : memref<32x8x128xf32, #tpu.memory_space<vmem>>, vector<1x8x128xf32>
    %410 = vector.shape_cast %409 : vector<1x8x128xf32> to vector<8x128xf32>
    %cst_193 = arith.constant dense<0.000000e+00> : vector<8xf32>
    %411 = vector.multi_reduction <add>, %410, %cst_193 [1] : vector<8x128xf32> to vector<8xf32>
    %412 = vector.shape_cast %411 : vector<8xf32> to vector<8x1xf32>
    %413 = arith.addf %70, %412 : vector<8x1xf32>
    %c22 = arith.constant 22 : index
    %c0_194 = arith.constant 0 : index
    %c0_195 = arith.constant 0 : index
    %414 = vector.load %arg7[%c22, %c0_194, %c0_195] : memref<32x8x128xf32, #tpu.memory_space<vmem>>, vector<1x8x128xf32>
    %415 = vector.shape_cast %414 : vector<1x8x128xf32> to vector<8x128xf32>
    %cst_196 = arith.constant dense<0.000000e+00> : vector<8xf32>
    %416 = vector.multi_reduction <add>, %415, %cst_196 [1] : vector<8x128xf32> to vector<8xf32>
    %417 = vector.shape_cast %416 : vector<8xf32> to vector<8x1xf32>
    %418 = arith.addf %71, %417 : vector<8x1xf32>
    %c23 = arith.constant 23 : index
    %c0_197 = arith.constant 0 : index
    %c0_198 = arith.constant 0 : index
    %419 = vector.load %arg7[%c23, %c0_197, %c0_198] : memref<32x8x128xf32, #tpu.memory_space<vmem>>, vector<1x8x128xf32>
    %420 = vector.shape_cast %419 : vector<1x8x128xf32> to vector<8x128xf32>
    %cst_199 = arith.constant dense<0.000000e+00> : vector<8xf32>
    %421 = vector.multi_reduction <add>, %420, %cst_199 [1] : vector<8x128xf32> to vector<8xf32>
    %422 = vector.shape_cast %421 : vector<8xf32> to vector<8x1xf32>
    %423 = arith.addf %72, %422 : vector<8x1xf32>
    %c24 = arith.constant 24 : index
    %c0_200 = arith.constant 0 : index
    %c0_201 = arith.constant 0 : index
    %424 = vector.load %arg7[%c24, %c0_200, %c0_201] : memref<32x8x128xf32, #tpu.memory_space<vmem>>, vector<1x8x128xf32>
    %425 = vector.shape_cast %424 : vector<1x8x128xf32> to vector<8x128xf32>
    %cst_202 = arith.constant dense<0.000000e+00> : vector<8xf32>
    %426 = vector.multi_reduction <add>, %425, %cst_202 [1] : vector<8x128xf32> to vector<8xf32>
    %427 = vector.shape_cast %426 : vector<8xf32> to vector<8x1xf32>
    %428 = arith.addf %73, %427 : vector<8x1xf32>
    %c25 = arith.constant 25 : index
    %c0_203 = arith.constant 0 : index
    %c0_204 = arith.constant 0 : index
    %429 = vector.load %arg7[%c25, %c0_203, %c0_204] : memref<32x8x128xf32, #tpu.memory_space<vmem>>, vector<1x8x128xf32>
    %430 = vector.shape_cast %429 : vector<1x8x128xf32> to vector<8x128xf32>
    %cst_205 = arith.constant dense<0.000000e+00> : vector<8xf32>
    %431 = vector.multi_reduction <add>, %430, %cst_205 [1] : vector<8x128xf32> to vector<8xf32>
    %432 = vector.shape_cast %431 : vector<8xf32> to vector<8x1xf32>
    %433 = arith.addf %74, %432 : vector<8x1xf32>
    %c26 = arith.constant 26 : index
    %c0_206 = arith.constant 0 : index
    %c0_207 = arith.constant 0 : index
    %434 = vector.load %arg7[%c26, %c0_206, %c0_207] : memref<32x8x128xf32, #tpu.memory_space<vmem>>, vector<1x8x128xf32>
    %435 = vector.shape_cast %434 : vector<1x8x128xf32> to vector<8x128xf32>
    %cst_208 = arith.constant dense<0.000000e+00> : vector<8xf32>
    %436 = vector.multi_reduction <add>, %435, %cst_208 [1] : vector<8x128xf32> to vector<8xf32>
    %437 = vector.shape_cast %436 : vector<8xf32> to vector<8x1xf32>
    %438 = arith.addf %75, %437 : vector<8x1xf32>
    %c27 = arith.constant 27 : index
    %c0_209 = arith.constant 0 : index
    %c0_210 = arith.constant 0 : index
    %439 = vector.load %arg7[%c27, %c0_209, %c0_210] : memref<32x8x128xf32, #tpu.memory_space<vmem>>, vector<1x8x128xf32>
    %440 = vector.shape_cast %439 : vector<1x8x128xf32> to vector<8x128xf32>
    %cst_211 = arith.constant dense<0.000000e+00> : vector<8xf32>
    %441 = vector.multi_reduction <add>, %440, %cst_211 [1] : vector<8x128xf32> to vector<8xf32>
    %442 = vector.shape_cast %441 : vector<8xf32> to vector<8x1xf32>
    %443 = arith.addf %76, %442 : vector<8x1xf32>
    %c28 = arith.constant 28 : index
    %c0_212 = arith.constant 0 : index
    %c0_213 = arith.constant 0 : index
    %444 = vector.load %arg7[%c28, %c0_212, %c0_213] : memref<32x8x128xf32, #tpu.memory_space<vmem>>, vector<1x8x128xf32>
    %445 = vector.shape_cast %444 : vector<1x8x128xf32> to vector<8x128xf32>
    %cst_214 = arith.constant dense<0.000000e+00> : vector<8xf32>
    %446 = vector.multi_reduction <add>, %445, %cst_214 [1] : vector<8x128xf32> to vector<8xf32>
    %447 = vector.shape_cast %446 : vector<8xf32> to vector<8x1xf32>
    %448 = arith.addf %77, %447 : vector<8x1xf32>
    %c29 = arith.constant 29 : index
    %c0_215 = arith.constant 0 : index
    %c0_216 = arith.constant 0 : index
    %449 = vector.load %arg7[%c29, %c0_215, %c0_216] : memref<32x8x128xf32, #tpu.memory_space<vmem>>, vector<1x8x128xf32>
    %450 = vector.shape_cast %449 : vector<1x8x128xf32> to vector<8x128xf32>
    %cst_217 = arith.constant dense<0.000000e+00> : vector<8xf32>
    %451 = vector.multi_reduction <add>, %450, %cst_217 [1] : vector<8x128xf32> to vector<8xf32>
    %452 = vector.shape_cast %451 : vector<8xf32> to vector<8x1xf32>
    %453 = arith.addf %78, %452 : vector<8x1xf32>
    %c30 = arith.constant 30 : index
    %c0_218 = arith.constant 0 : index
    %c0_219 = arith.constant 0 : index
    %454 = vector.load %arg7[%c30, %c0_218, %c0_219] : memref<32x8x128xf32, #tpu.memory_space<vmem>>, vector<1x8x128xf32>
    %455 = vector.shape_cast %454 : vector<1x8x128xf32> to vector<8x128xf32>
    %cst_220 = arith.constant dense<0.000000e+00> : vector<8xf32>
    %456 = vector.multi_reduction <add>, %455, %cst_220 [1] : vector<8x128xf32> to vector<8xf32>
    %457 = vector.shape_cast %456 : vector<8xf32> to vector<8x1xf32>
    %458 = arith.addf %79, %457 : vector<8x1xf32>
    %c31 = arith.constant 31 : index
    %c0_221 = arith.constant 0 : index
    %c0_222 = arith.constant 0 : index
    %459 = vector.load %arg7[%c31, %c0_221, %c0_222] : memref<32x8x128xf32, #tpu.memory_space<vmem>>, vector<1x8x128xf32>
    %460 = vector.shape_cast %459 : vector<1x8x128xf32> to vector<8x128xf32>
    %cst_223 = arith.constant dense<0.000000e+00> : vector<8xf32>
    %461 = vector.multi_reduction <add>, %460, %cst_223 [1] : vector<8x128xf32> to vector<8xf32>
    %462 = vector.shape_cast %461 : vector<8xf32> to vector<8x1xf32>
    %463 = arith.addf %80, %462 : vector<8x1xf32>
    %cst_224 = arith.constant 0.000000e+00 : f32
    %464 = vector.broadcast %cst_224 : f32 to vector<8x128xf32>
    %c0_i32_225 = arith.constant 0 : i32
    %465 = vector.broadcast %c0_i32_225 : i32 to vector<1x128xi32>
    %466 = arith.cmpi eq, %7, %465 : vector<1x128xi32>
    %467 = arith.extui %466 : vector<1x128xi1> to vector<1x128xi32>
    %468 = arith.sitofp %467 : vector<1x128xi32> to vector<1x128xf32>
    %469 = vector.broadcast %150 : vector<8x1xf32> to vector<8x128xf32>
    %470 = vector.broadcast %468 : vector<1x128xf32> to vector<8x128xf32>
    %471 = arith.mulf %469, %470 : vector<8x128xf32>
    %472 = arith.addf %464, %471 : vector<8x128xf32>
    %c1_i32_226 = arith.constant 1 : i32
    %473 = vector.broadcast %c1_i32_226 : i32 to vector<1x128xi32>
    %474 = arith.cmpi eq, %7, %473 : vector<1x128xi32>
    %475 = arith.extui %474 : vector<1x128xi1> to vector<1x128xi32>
    %476 = arith.sitofp %475 : vector<1x128xi32> to vector<1x128xf32>
    %477 = vector.broadcast %160 : vector<8x1xf32> to vector<8x128xf32>
    %478 = vector.broadcast %476 : vector<1x128xf32> to vector<8x128xf32>
    %479 = arith.mulf %477, %478 : vector<8x128xf32>
    %480 = arith.addf %472, %479 : vector<8x128xf32>
    %c2_i32_227 = arith.constant 2 : i32
    %481 = vector.broadcast %c2_i32_227 : i32 to vector<1x128xi32>
    %482 = arith.cmpi eq, %7, %481 : vector<1x128xi32>
    %483 = arith.extui %482 : vector<1x128xi1> to vector<1x128xi32>
    %484 = arith.sitofp %483 : vector<1x128xi32> to vector<1x128xf32>
    %485 = vector.broadcast %170 : vector<8x1xf32> to vector<8x128xf32>
    %486 = vector.broadcast %484 : vector<1x128xf32> to vector<8x128xf32>
    %487 = arith.mulf %485, %486 : vector<8x128xf32>
    %488 = arith.addf %480, %487 : vector<8x128xf32>
    %c3_i32_228 = arith.constant 3 : i32
    %489 = vector.broadcast %c3_i32_228 : i32 to vector<1x128xi32>
    %490 = arith.cmpi eq, %7, %489 : vector<1x128xi32>
    %491 = arith.extui %490 : vector<1x128xi1> to vector<1x128xi32>
    %492 = arith.sitofp %491 : vector<1x128xi32> to vector<1x128xf32>
    %493 = vector.broadcast %180 : vector<8x1xf32> to vector<8x128xf32>
    %494 = vector.broadcast %492 : vector<1x128xf32> to vector<8x128xf32>
    %495 = arith.mulf %493, %494 : vector<8x128xf32>
    %496 = arith.addf %488, %495 : vector<8x128xf32>
    %c4_i32_229 = arith.constant 4 : i32
    %497 = vector.broadcast %c4_i32_229 : i32 to vector<1x128xi32>
    %498 = arith.cmpi eq, %7, %497 : vector<1x128xi32>
    %499 = arith.extui %498 : vector<1x128xi1> to vector<1x128xi32>
    %500 = arith.sitofp %499 : vector<1x128xi32> to vector<1x128xf32>
    %501 = vector.broadcast %190 : vector<8x1xf32> to vector<8x128xf32>
    %502 = vector.broadcast %500 : vector<1x128xf32> to vector<8x128xf32>
    %503 = arith.mulf %501, %502 : vector<8x128xf32>
    %504 = arith.addf %496, %503 : vector<8x128xf32>
    %c5_i32_230 = arith.constant 5 : i32
    %505 = vector.broadcast %c5_i32_230 : i32 to vector<1x128xi32>
    %506 = arith.cmpi eq, %7, %505 : vector<1x128xi32>
    %507 = arith.extui %506 : vector<1x128xi1> to vector<1x128xi32>
    %508 = arith.sitofp %507 : vector<1x128xi32> to vector<1x128xf32>
    %509 = vector.broadcast %200 : vector<8x1xf32> to vector<8x128xf32>
    %510 = vector.broadcast %508 : vector<1x128xf32> to vector<8x128xf32>
    %511 = arith.mulf %509, %510 : vector<8x128xf32>
    %512 = arith.addf %504, %511 : vector<8x128xf32>
    %c6_i32 = arith.constant 6 : i32
    %513 = vector.broadcast %c6_i32 : i32 to vector<1x128xi32>
    %514 = arith.cmpi eq, %7, %513 : vector<1x128xi32>
    %515 = arith.extui %514 : vector<1x128xi1> to vector<1x128xi32>
    %516 = arith.sitofp %515 : vector<1x128xi32> to vector<1x128xf32>
    %517 = vector.broadcast %210 : vector<8x1xf32> to vector<8x128xf32>
    %518 = vector.broadcast %516 : vector<1x128xf32> to vector<8x128xf32>
    %519 = arith.mulf %517, %518 : vector<8x128xf32>
    %520 = arith.addf %512, %519 : vector<8x128xf32>
    %c7_i32 = arith.constant 7 : i32
    %521 = vector.broadcast %c7_i32 : i32 to vector<1x128xi32>
    %522 = arith.cmpi eq, %7, %521 : vector<1x128xi32>
    %523 = arith.extui %522 : vector<1x128xi1> to vector<1x128xi32>
    %524 = arith.sitofp %523 : vector<1x128xi32> to vector<1x128xf32>
    %525 = vector.broadcast %220 : vector<8x1xf32> to vector<8x128xf32>
    %526 = vector.broadcast %524 : vector<1x128xf32> to vector<8x128xf32>
    %527 = arith.mulf %525, %526 : vector<8x128xf32>
    %528 = arith.addf %520, %527 : vector<8x128xf32>
    %c8_i32_231 = arith.constant 8 : i32
    %529 = vector.broadcast %c8_i32_231 : i32 to vector<1x128xi32>
    %530 = arith.cmpi eq, %7, %529 : vector<1x128xi32>
    %531 = arith.extui %530 : vector<1x128xi1> to vector<1x128xi32>
    %532 = arith.sitofp %531 : vector<1x128xi32> to vector<1x128xf32>
    %533 = vector.broadcast %230 : vector<8x1xf32> to vector<8x128xf32>
    %534 = vector.broadcast %532 : vector<1x128xf32> to vector<8x128xf32>
    %535 = arith.mulf %533, %534 : vector<8x128xf32>
    %536 = arith.addf %528, %535 : vector<8x128xf32>
    %c9_i32 = arith.constant 9 : i32
    %537 = vector.broadcast %c9_i32 : i32 to vector<1x128xi32>
    %538 = arith.cmpi eq, %7, %537 : vector<1x128xi32>
    %539 = arith.extui %538 : vector<1x128xi1> to vector<1x128xi32>
    %540 = arith.sitofp %539 : vector<1x128xi32> to vector<1x128xf32>
    %541 = vector.broadcast %240 : vector<8x1xf32> to vector<8x128xf32>
    %542 = vector.broadcast %540 : vector<1x128xf32> to vector<8x128xf32>
    %543 = arith.mulf %541, %542 : vector<8x128xf32>
    %544 = arith.addf %536, %543 : vector<8x128xf32>
    %c10_i32 = arith.constant 10 : i32
    %545 = vector.broadcast %c10_i32 : i32 to vector<1x128xi32>
    %546 = arith.cmpi eq, %7, %545 : vector<1x128xi32>
    %547 = arith.extui %546 : vector<1x128xi1> to vector<1x128xi32>
    %548 = arith.sitofp %547 : vector<1x128xi32> to vector<1x128xf32>
    %549 = vector.broadcast %250 : vector<8x1xf32> to vector<8x128xf32>
    %550 = vector.broadcast %548 : vector<1x128xf32> to vector<8x128xf32>
    %551 = arith.mulf %549, %550 : vector<8x128xf32>
    %552 = arith.addf %544, %551 : vector<8x128xf32>
    %c11_i32 = arith.constant 11 : i32
    %553 = vector.broadcast %c11_i32 : i32 to vector<1x128xi32>
    %554 = arith.cmpi eq, %7, %553 : vector<1x128xi32>
    %555 = arith.extui %554 : vector<1x128xi1> to vector<1x128xi32>
    %556 = arith.sitofp %555 : vector<1x128xi32> to vector<1x128xf32>
    %557 = vector.broadcast %260 : vector<8x1xf32> to vector<8x128xf32>
    %558 = vector.broadcast %556 : vector<1x128xf32> to vector<8x128xf32>
    %559 = arith.mulf %557, %558 : vector<8x128xf32>
    %560 = arith.addf %552, %559 : vector<8x128xf32>
    %c12_i32 = arith.constant 12 : i32
    %561 = vector.broadcast %c12_i32 : i32 to vector<1x128xi32>
    %562 = arith.cmpi eq, %7, %561 : vector<1x128xi32>
    %563 = arith.extui %562 : vector<1x128xi1> to vector<1x128xi32>
    %564 = arith.sitofp %563 : vector<1x128xi32> to vector<1x128xf32>
    %565 = vector.broadcast %270 : vector<8x1xf32> to vector<8x128xf32>
    %566 = vector.broadcast %564 : vector<1x128xf32> to vector<8x128xf32>
    %567 = arith.mulf %565, %566 : vector<8x128xf32>
    %568 = arith.addf %560, %567 : vector<8x128xf32>
    %c13_i32 = arith.constant 13 : i32
    %569 = vector.broadcast %c13_i32 : i32 to vector<1x128xi32>
    %570 = arith.cmpi eq, %7, %569 : vector<1x128xi32>
    %571 = arith.extui %570 : vector<1x128xi1> to vector<1x128xi32>
    %572 = arith.sitofp %571 : vector<1x128xi32> to vector<1x128xf32>
    %573 = vector.broadcast %280 : vector<8x1xf32> to vector<8x128xf32>
    %574 = vector.broadcast %572 : vector<1x128xf32> to vector<8x128xf32>
    %575 = arith.mulf %573, %574 : vector<8x128xf32>
    %576 = arith.addf %568, %575 : vector<8x128xf32>
    %c14_i32 = arith.constant 14 : i32
    %577 = vector.broadcast %c14_i32 : i32 to vector<1x128xi32>
    %578 = arith.cmpi eq, %7, %577 : vector<1x128xi32>
    %579 = arith.extui %578 : vector<1x128xi1> to vector<1x128xi32>
    %580 = arith.sitofp %579 : vector<1x128xi32> to vector<1x128xf32>
    %581 = vector.broadcast %290 : vector<8x1xf32> to vector<8x128xf32>
    %582 = vector.broadcast %580 : vector<1x128xf32> to vector<8x128xf32>
    %583 = arith.mulf %581, %582 : vector<8x128xf32>
    %584 = arith.addf %576, %583 : vector<8x128xf32>
    %c15_i32 = arith.constant 15 : i32
    %585 = vector.broadcast %c15_i32 : i32 to vector<1x128xi32>
    %586 = arith.cmpi eq, %7, %585 : vector<1x128xi32>
    %587 = arith.extui %586 : vector<1x128xi1> to vector<1x128xi32>
    %588 = arith.sitofp %587 : vector<1x128xi32> to vector<1x128xf32>
    %589 = vector.broadcast %300 : vector<8x1xf32> to vector<8x128xf32>
    %590 = vector.broadcast %588 : vector<1x128xf32> to vector<8x128xf32>
    %591 = arith.mulf %589, %590 : vector<8x128xf32>
    %592 = arith.addf %584, %591 : vector<8x128xf32>
    %c16_i32_232 = arith.constant 16 : i32
    %593 = vector.broadcast %c16_i32_232 : i32 to vector<1x128xi32>
    %594 = arith.cmpi eq, %7, %593 : vector<1x128xi32>
    %595 = arith.extui %594 : vector<1x128xi1> to vector<1x128xi32>
    %596 = arith.sitofp %595 : vector<1x128xi32> to vector<1x128xf32>
    %597 = vector.broadcast %308 : vector<8x1xf32> to vector<8x128xf32>
    %598 = vector.broadcast %596 : vector<1x128xf32> to vector<8x128xf32>
    %599 = arith.mulf %597, %598 : vector<8x128xf32>
    %600 = arith.addf %592, %599 : vector<8x128xf32>
    %c17_i32 = arith.constant 17 : i32
    %601 = vector.broadcast %c17_i32 : i32 to vector<1x128xi32>
    %602 = arith.cmpi eq, %7, %601 : vector<1x128xi32>
    %603 = arith.extui %602 : vector<1x128xi1> to vector<1x128xi32>
    %604 = arith.sitofp %603 : vector<1x128xi32> to vector<1x128xf32>
    %605 = vector.broadcast %313 : vector<8x1xf32> to vector<8x128xf32>
    %606 = vector.broadcast %604 : vector<1x128xf32> to vector<8x128xf32>
    %607 = arith.mulf %605, %606 : vector<8x128xf32>
    %608 = arith.addf %600, %607 : vector<8x128xf32>
    %c18_i32 = arith.constant 18 : i32
    %609 = vector.broadcast %c18_i32 : i32 to vector<1x128xi32>
    %610 = arith.cmpi eq, %7, %609 : vector<1x128xi32>
    %611 = arith.extui %610 : vector<1x128xi1> to vector<1x128xi32>
    %612 = arith.sitofp %611 : vector<1x128xi32> to vector<1x128xf32>
    %613 = vector.broadcast %318 : vector<8x1xf32> to vector<8x128xf32>
    %614 = vector.broadcast %612 : vector<1x128xf32> to vector<8x128xf32>
    %615 = arith.mulf %613, %614 : vector<8x128xf32>
    %616 = arith.addf %608, %615 : vector<8x128xf32>
    %c19_i32 = arith.constant 19 : i32
    %617 = vector.broadcast %c19_i32 : i32 to vector<1x128xi32>
    %618 = arith.cmpi eq, %7, %617 : vector<1x128xi32>
    %619 = arith.extui %618 : vector<1x128xi1> to vector<1x128xi32>
    %620 = arith.sitofp %619 : vector<1x128xi32> to vector<1x128xf32>
    %621 = vector.broadcast %323 : vector<8x1xf32> to vector<8x128xf32>
    %622 = vector.broadcast %620 : vector<1x128xf32> to vector<8x128xf32>
    %623 = arith.mulf %621, %622 : vector<8x128xf32>
    %624 = arith.addf %616, %623 : vector<8x128xf32>
    %c20_i32 = arith.constant 20 : i32
    %625 = vector.broadcast %c20_i32 : i32 to vector<1x128xi32>
    %626 = arith.cmpi eq, %7, %625 : vector<1x128xi32>
    %627 = arith.extui %626 : vector<1x128xi1> to vector<1x128xi32>
    %628 = arith.sitofp %627 : vector<1x128xi32> to vector<1x128xf32>
    %629 = vector.broadcast %328 : vector<8x1xf32> to vector<8x128xf32>
    %630 = vector.broadcast %628 : vector<1x128xf32> to vector<8x128xf32>
    %631 = arith.mulf %629, %630 : vector<8x128xf32>
    %632 = arith.addf %624, %631 : vector<8x128xf32>
    %c21_i32 = arith.constant 21 : i32
    %633 = vector.broadcast %c21_i32 : i32 to vector<1x128xi32>
    %634 = arith.cmpi eq, %7, %633 : vector<1x128xi32>
    %635 = arith.extui %634 : vector<1x128xi1> to vector<1x128xi32>
    %636 = arith.sitofp %635 : vector<1x128xi32> to vector<1x128xf32>
    %637 = vector.broadcast %333 : vector<8x1xf32> to vector<8x128xf32>
    %638 = vector.broadcast %636 : vector<1x128xf32> to vector<8x128xf32>
    %639 = arith.mulf %637, %638 : vector<8x128xf32>
    %640 = arith.addf %632, %639 : vector<8x128xf32>
    %c22_i32 = arith.constant 22 : i32
    %641 = vector.broadcast %c22_i32 : i32 to vector<1x128xi32>
    %642 = arith.cmpi eq, %7, %641 : vector<1x128xi32>
    %643 = arith.extui %642 : vector<1x128xi1> to vector<1x128xi32>
    %644 = arith.sitofp %643 : vector<1x128xi32> to vector<1x128xf32>
    %645 = vector.broadcast %338 : vector<8x1xf32> to vector<8x128xf32>
    %646 = vector.broadcast %644 : vector<1x128xf32> to vector<8x128xf32>
    %647 = arith.mulf %645, %646 : vector<8x128xf32>
    %648 = arith.addf %640, %647 : vector<8x128xf32>
    %c23_i32 = arith.constant 23 : i32
    %649 = vector.broadcast %c23_i32 : i32 to vector<1x128xi32>
    %650 = arith.cmpi eq, %7, %649 : vector<1x128xi32>
    %651 = arith.extui %650 : vector<1x128xi1> to vector<1x128xi32>
    %652 = arith.sitofp %651 : vector<1x128xi32> to vector<1x128xf32>
    %653 = vector.broadcast %343 : vector<8x1xf32> to vector<8x128xf32>
    %654 = vector.broadcast %652 : vector<1x128xf32> to vector<8x128xf32>
    %655 = arith.mulf %653, %654 : vector<8x128xf32>
    %656 = arith.addf %648, %655 : vector<8x128xf32>
    %c24_i32 = arith.constant 24 : i32
    %657 = vector.broadcast %c24_i32 : i32 to vector<1x128xi32>
    %658 = arith.cmpi eq, %7, %657 : vector<1x128xi32>
    %659 = arith.extui %658 : vector<1x128xi1> to vector<1x128xi32>
    %660 = arith.sitofp %659 : vector<1x128xi32> to vector<1x128xf32>
    %661 = vector.broadcast %348 : vector<8x1xf32> to vector<8x128xf32>
    %662 = vector.broadcast %660 : vector<1x128xf32> to vector<8x128xf32>
    %663 = arith.mulf %661, %662 : vector<8x128xf32>
    %664 = arith.addf %656, %663 : vector<8x128xf32>
    %c25_i32 = arith.constant 25 : i32
    %665 = vector.broadcast %c25_i32 : i32 to vector<1x128xi32>
    %666 = arith.cmpi eq, %7, %665 : vector<1x128xi32>
    %667 = arith.extui %666 : vector<1x128xi1> to vector<1x128xi32>
    %668 = arith.sitofp %667 : vector<1x128xi32> to vector<1x128xf32>
    %669 = vector.broadcast %353 : vector<8x1xf32> to vector<8x128xf32>
    %670 = vector.broadcast %668 : vector<1x128xf32> to vector<8x128xf32>
    %671 = arith.mulf %669, %670 : vector<8x128xf32>
    %672 = arith.addf %664, %671 : vector<8x128xf32>
    %c26_i32 = arith.constant 26 : i32
    %673 = vector.broadcast %c26_i32 : i32 to vector<1x128xi32>
    %674 = arith.cmpi eq, %7, %673 : vector<1x128xi32>
    %675 = arith.extui %674 : vector<1x128xi1> to vector<1x128xi32>
    %676 = arith.sitofp %675 : vector<1x128xi32> to vector<1x128xf32>
    %677 = vector.broadcast %358 : vector<8x1xf32> to vector<8x128xf32>
    %678 = vector.broadcast %676 : vector<1x128xf32> to vector<8x128xf32>
    %679 = arith.mulf %677, %678 : vector<8x128xf32>
    %680 = arith.addf %672, %679 : vector<8x128xf32>
    %c27_i32 = arith.constant 27 : i32
    %681 = vector.broadcast %c27_i32 : i32 to vector<1x128xi32>
    %682 = arith.cmpi eq, %7, %681 : vector<1x128xi32>
    %683 = arith.extui %682 : vector<1x128xi1> to vector<1x128xi32>
    %684 = arith.sitofp %683 : vector<1x128xi32> to vector<1x128xf32>
    %685 = vector.broadcast %363 : vector<8x1xf32> to vector<8x128xf32>
    %686 = vector.broadcast %684 : vector<1x128xf32> to vector<8x128xf32>
    %687 = arith.mulf %685, %686 : vector<8x128xf32>
    %688 = arith.addf %680, %687 : vector<8x128xf32>
    %c28_i32 = arith.constant 28 : i32
    %689 = vector.broadcast %c28_i32 : i32 to vector<1x128xi32>
    %690 = arith.cmpi eq, %7, %689 : vector<1x128xi32>
    %691 = arith.extui %690 : vector<1x128xi1> to vector<1x128xi32>
    %692 = arith.sitofp %691 : vector<1x128xi32> to vector<1x128xf32>
    %693 = vector.broadcast %368 : vector<8x1xf32> to vector<8x128xf32>
    %694 = vector.broadcast %692 : vector<1x128xf32> to vector<8x128xf32>
    %695 = arith.mulf %693, %694 : vector<8x128xf32>
    %696 = arith.addf %688, %695 : vector<8x128xf32>
    %c29_i32 = arith.constant 29 : i32
    %697 = vector.broadcast %c29_i32 : i32 to vector<1x128xi32>
    %698 = arith.cmpi eq, %7, %697 : vector<1x128xi32>
    %699 = arith.extui %698 : vector<1x128xi1> to vector<1x128xi32>
    %700 = arith.sitofp %699 : vector<1x128xi32> to vector<1x128xf32>
    %701 = vector.broadcast %373 : vector<8x1xf32> to vector<8x128xf32>
    %702 = vector.broadcast %700 : vector<1x128xf32> to vector<8x128xf32>
    %703 = arith.mulf %701, %702 : vector<8x128xf32>
    %704 = arith.addf %696, %703 : vector<8x128xf32>
    %c30_i32 = arith.constant 30 : i32
    %705 = vector.broadcast %c30_i32 : i32 to vector<1x128xi32>
    %706 = arith.cmpi eq, %7, %705 : vector<1x128xi32>
    %707 = arith.extui %706 : vector<1x128xi1> to vector<1x128xi32>
    %708 = arith.sitofp %707 : vector<1x128xi32> to vector<1x128xf32>
    %709 = vector.broadcast %378 : vector<8x1xf32> to vector<8x128xf32>
    %710 = vector.broadcast %708 : vector<1x128xf32> to vector<8x128xf32>
    %711 = arith.mulf %709, %710 : vector<8x128xf32>
    %712 = arith.addf %704, %711 : vector<8x128xf32>
    %c31_i32 = arith.constant 31 : i32
    %713 = vector.broadcast %c31_i32 : i32 to vector<1x128xi32>
    %714 = arith.cmpi eq, %7, %713 : vector<1x128xi32>
    %715 = arith.extui %714 : vector<1x128xi1> to vector<1x128xi32>
    %716 = arith.sitofp %715 : vector<1x128xi32> to vector<1x128xf32>
    %717 = vector.broadcast %383 : vector<8x1xf32> to vector<8x128xf32>
    %718 = vector.broadcast %716 : vector<1x128xf32> to vector<8x128xf32>
    %719 = arith.mulf %717, %718 : vector<8x128xf32>
    %720 = arith.addf %712, %719 : vector<8x128xf32>
    %c32_i32 = arith.constant 32 : i32
    %721 = vector.broadcast %c32_i32 : i32 to vector<1x128xi32>
    %722 = arith.cmpi eq, %7, %721 : vector<1x128xi32>
    %723 = arith.extui %722 : vector<1x128xi1> to vector<1x128xi32>
    %724 = arith.sitofp %723 : vector<1x128xi32> to vector<1x128xf32>
    %725 = vector.broadcast %388 : vector<8x1xf32> to vector<8x128xf32>
    %726 = vector.broadcast %724 : vector<1x128xf32> to vector<8x128xf32>
    %727 = arith.mulf %725, %726 : vector<8x128xf32>
    %728 = arith.addf %720, %727 : vector<8x128xf32>
    %c33_i32 = arith.constant 33 : i32
    %729 = vector.broadcast %c33_i32 : i32 to vector<1x128xi32>
    %730 = arith.cmpi eq, %7, %729 : vector<1x128xi32>
    %731 = arith.extui %730 : vector<1x128xi1> to vector<1x128xi32>
    %732 = arith.sitofp %731 : vector<1x128xi32> to vector<1x128xf32>
    %733 = vector.broadcast %393 : vector<8x1xf32> to vector<8x128xf32>
    %734 = vector.broadcast %732 : vector<1x128xf32> to vector<8x128xf32>
    %735 = arith.mulf %733, %734 : vector<8x128xf32>
    %736 = arith.addf %728, %735 : vector<8x128xf32>
    %c34_i32 = arith.constant 34 : i32
    %737 = vector.broadcast %c34_i32 : i32 to vector<1x128xi32>
    %738 = arith.cmpi eq, %7, %737 : vector<1x128xi32>
    %739 = arith.extui %738 : vector<1x128xi1> to vector<1x128xi32>
    %740 = arith.sitofp %739 : vector<1x128xi32> to vector<1x128xf32>
    %741 = vector.broadcast %398 : vector<8x1xf32> to vector<8x128xf32>
    %742 = vector.broadcast %740 : vector<1x128xf32> to vector<8x128xf32>
    %743 = arith.mulf %741, %742 : vector<8x128xf32>
    %744 = arith.addf %736, %743 : vector<8x128xf32>
    %c35_i32 = arith.constant 35 : i32
    %745 = vector.broadcast %c35_i32 : i32 to vector<1x128xi32>
    %746 = arith.cmpi eq, %7, %745 : vector<1x128xi32>
    %747 = arith.extui %746 : vector<1x128xi1> to vector<1x128xi32>
    %748 = arith.sitofp %747 : vector<1x128xi32> to vector<1x128xf32>
    %749 = vector.broadcast %403 : vector<8x1xf32> to vector<8x128xf32>
    %750 = vector.broadcast %748 : vector<1x128xf32> to vector<8x128xf32>
    %751 = arith.mulf %749, %750 : vector<8x128xf32>
    %752 = arith.addf %744, %751 : vector<8x128xf32>
    %c36_i32 = arith.constant 36 : i32
    %753 = vector.broadcast %c36_i32 : i32 to vector<1x128xi32>
    %754 = arith.cmpi eq, %7, %753 : vector<1x128xi32>
    %755 = arith.extui %754 : vector<1x128xi1> to vector<1x128xi32>
    %756 = arith.sitofp %755 : vector<1x128xi32> to vector<1x128xf32>
    %757 = vector.broadcast %408 : vector<8x1xf32> to vector<8x128xf32>
    %758 = vector.broadcast %756 : vector<1x128xf32> to vector<8x128xf32>
    %759 = arith.mulf %757, %758 : vector<8x128xf32>
    %760 = arith.addf %752, %759 : vector<8x128xf32>
    %c37_i32 = arith.constant 37 : i32
    %761 = vector.broadcast %c37_i32 : i32 to vector<1x128xi32>
    %762 = arith.cmpi eq, %7, %761 : vector<1x128xi32>
    %763 = arith.extui %762 : vector<1x128xi1> to vector<1x128xi32>
    %764 = arith.sitofp %763 : vector<1x128xi32> to vector<1x128xf32>
    %765 = vector.broadcast %413 : vector<8x1xf32> to vector<8x128xf32>
    %766 = vector.broadcast %764 : vector<1x128xf32> to vector<8x128xf32>
    %767 = arith.mulf %765, %766 : vector<8x128xf32>
    %768 = arith.addf %760, %767 : vector<8x128xf32>
    %c38_i32 = arith.constant 38 : i32
    %769 = vector.broadcast %c38_i32 : i32 to vector<1x128xi32>
    %770 = arith.cmpi eq, %7, %769 : vector<1x128xi32>
    %771 = arith.extui %770 : vector<1x128xi1> to vector<1x128xi32>
    %772 = arith.sitofp %771 : vector<1x128xi32> to vector<1x128xf32>
    %773 = vector.broadcast %418 : vector<8x1xf32> to vector<8x128xf32>
    %774 = vector.broadcast %772 : vector<1x128xf32> to vector<8x128xf32>
    %775 = arith.mulf %773, %774 : vector<8x128xf32>
    %776 = arith.addf %768, %775 : vector<8x128xf32>
    %c39_i32 = arith.constant 39 : i32
    %777 = vector.broadcast %c39_i32 : i32 to vector<1x128xi32>
    %778 = arith.cmpi eq, %7, %777 : vector<1x128xi32>
    %779 = arith.extui %778 : vector<1x128xi1> to vector<1x128xi32>
    %780 = arith.sitofp %779 : vector<1x128xi32> to vector<1x128xf32>
    %781 = vector.broadcast %423 : vector<8x1xf32> to vector<8x128xf32>
    %782 = vector.broadcast %780 : vector<1x128xf32> to vector<8x128xf32>
    %783 = arith.mulf %781, %782 : vector<8x128xf32>
    %784 = arith.addf %776, %783 : vector<8x128xf32>
    %c40_i32 = arith.constant 40 : i32
    %785 = vector.broadcast %c40_i32 : i32 to vector<1x128xi32>
    %786 = arith.cmpi eq, %7, %785 : vector<1x128xi32>
    %787 = arith.extui %786 : vector<1x128xi1> to vector<1x128xi32>
    %788 = arith.sitofp %787 : vector<1x128xi32> to vector<1x128xf32>
    %789 = vector.broadcast %428 : vector<8x1xf32> to vector<8x128xf32>
    %790 = vector.broadcast %788 : vector<1x128xf32> to vector<8x128xf32>
    %791 = arith.mulf %789, %790 : vector<8x128xf32>
    %792 = arith.addf %784, %791 : vector<8x128xf32>
    %c41_i32 = arith.constant 41 : i32
    %793 = vector.broadcast %c41_i32 : i32 to vector<1x128xi32>
    %794 = arith.cmpi eq, %7, %793 : vector<1x128xi32>
    %795 = arith.extui %794 : vector<1x128xi1> to vector<1x128xi32>
    %796 = arith.sitofp %795 : vector<1x128xi32> to vector<1x128xf32>
    %797 = vector.broadcast %433 : vector<8x1xf32> to vector<8x128xf32>
    %798 = vector.broadcast %796 : vector<1x128xf32> to vector<8x128xf32>
    %799 = arith.mulf %797, %798 : vector<8x128xf32>
    %800 = arith.addf %792, %799 : vector<8x128xf32>
    %c42_i32 = arith.constant 42 : i32
    %801 = vector.broadcast %c42_i32 : i32 to vector<1x128xi32>
    %802 = arith.cmpi eq, %7, %801 : vector<1x128xi32>
    %803 = arith.extui %802 : vector<1x128xi1> to vector<1x128xi32>
    %804 = arith.sitofp %803 : vector<1x128xi32> to vector<1x128xf32>
    %805 = vector.broadcast %438 : vector<8x1xf32> to vector<8x128xf32>
    %806 = vector.broadcast %804 : vector<1x128xf32> to vector<8x128xf32>
    %807 = arith.mulf %805, %806 : vector<8x128xf32>
    %808 = arith.addf %800, %807 : vector<8x128xf32>
    %c43_i32 = arith.constant 43 : i32
    %809 = vector.broadcast %c43_i32 : i32 to vector<1x128xi32>
    %810 = arith.cmpi eq, %7, %809 : vector<1x128xi32>
    %811 = arith.extui %810 : vector<1x128xi1> to vector<1x128xi32>
    %812 = arith.sitofp %811 : vector<1x128xi32> to vector<1x128xf32>
    %813 = vector.broadcast %443 : vector<8x1xf32> to vector<8x128xf32>
    %814 = vector.broadcast %812 : vector<1x128xf32> to vector<8x128xf32>
    %815 = arith.mulf %813, %814 : vector<8x128xf32>
    %816 = arith.addf %808, %815 : vector<8x128xf32>
    %c44_i32 = arith.constant 44 : i32
    %817 = vector.broadcast %c44_i32 : i32 to vector<1x128xi32>
    %818 = arith.cmpi eq, %7, %817 : vector<1x128xi32>
    %819 = arith.extui %818 : vector<1x128xi1> to vector<1x128xi32>
    %820 = arith.sitofp %819 : vector<1x128xi32> to vector<1x128xf32>
    %821 = vector.broadcast %448 : vector<8x1xf32> to vector<8x128xf32>
    %822 = vector.broadcast %820 : vector<1x128xf32> to vector<8x128xf32>
    %823 = arith.mulf %821, %822 : vector<8x128xf32>
    %824 = arith.addf %816, %823 : vector<8x128xf32>
    %c45_i32 = arith.constant 45 : i32
    %825 = vector.broadcast %c45_i32 : i32 to vector<1x128xi32>
    %826 = arith.cmpi eq, %7, %825 : vector<1x128xi32>
    %827 = arith.extui %826 : vector<1x128xi1> to vector<1x128xi32>
    %828 = arith.sitofp %827 : vector<1x128xi32> to vector<1x128xf32>
    %829 = vector.broadcast %453 : vector<8x1xf32> to vector<8x128xf32>
    %830 = vector.broadcast %828 : vector<1x128xf32> to vector<8x128xf32>
    %831 = arith.mulf %829, %830 : vector<8x128xf32>
    %832 = arith.addf %824, %831 : vector<8x128xf32>
    %c46_i32 = arith.constant 46 : i32
    %833 = vector.broadcast %c46_i32 : i32 to vector<1x128xi32>
    %834 = arith.cmpi eq, %7, %833 : vector<1x128xi32>
    %835 = arith.extui %834 : vector<1x128xi1> to vector<1x128xi32>
    %836 = arith.sitofp %835 : vector<1x128xi32> to vector<1x128xf32>
    %837 = vector.broadcast %458 : vector<8x1xf32> to vector<8x128xf32>
    %838 = vector.broadcast %836 : vector<1x128xf32> to vector<8x128xf32>
    %839 = arith.mulf %837, %838 : vector<8x128xf32>
    %840 = arith.addf %832, %839 : vector<8x128xf32>
    %c47_i32 = arith.constant 47 : i32
    %841 = vector.broadcast %c47_i32 : i32 to vector<1x128xi32>
    %842 = arith.cmpi eq, %7, %841 : vector<1x128xi32>
    %843 = arith.extui %842 : vector<1x128xi1> to vector<1x128xi32>
    %844 = arith.sitofp %843 : vector<1x128xi32> to vector<1x128xf32>
    %845 = vector.broadcast %463 : vector<8x1xf32> to vector<8x128xf32>
    %846 = vector.broadcast %844 : vector<1x128xf32> to vector<8x128xf32>
    %847 = arith.mulf %845, %846 : vector<8x128xf32>
    %848 = arith.addf %840, %847 : vector<8x128xf32>
    %c0_233 = arith.constant 0 : index
    %c0_234 = arith.constant 0 : index
    %849 = vector.load %arg6[%c0_233, %c0_234] : memref<8x128xf32, #tpu.memory_space<vmem>>, vector<8x128xf32>
    tpu.vector_store %arg6[%c0_233, %c0_234], %848 {strides = array<i32>} : memref<8x128xf32, #tpu.memory_space<vmem>>, vector<8x128xf32>,
    return
  }
  func.func @transform_0(%arg0: i32) -> (i32, i32) {
    %c0_i32 = arith.constant 0 : i32
    %c0_i32_0 = arith.constant 0 : i32
    return %arg0, %c0_i32 : i32, i32
  }
  func.func @transform_1(%arg0: i32) -> (i32, i32, i32) {
    %c0_i32 = arith.constant 0 : i32
    %c0_i32_0 = arith.constant 0 : i32
    %c0_i32_1 = arith.constant 0 : i32
    %c0_i32_2 = arith.constant 0 : i32
    return %c0_i32, %c0_i32_0, %c0_i32_1 : i32, i32, i32
  }
  func.func @transform_2(%arg0: i32) -> i32 {
    %c0_i32 = arith.constant 0 : i32
    %c0_i32_0 = arith.constant 0 : i32
    return %c0_i32 : i32
  }
  func.func @transform_3(%arg0: i32) -> i32 {
    %c0_i32 = arith.constant 0 : i32
    %c0_i32_0 = arith.constant 0 : i32
    return %c0_i32 : i32
  }
  func.func @transform_4(%arg0: i32) -> i32 {
    %c0_i32 = arith.constant 0 : i32
    %c0_i32_0 = arith.constant 0 : i32
    return %c0_i32 : i32
  }
  func.func @transform_5(%arg0: i32) -> (i32, i32) {
    %c0_i32 = arith.constant 0 : i32
    %c0_i32_0 = arith.constant 0 : i32
    return %arg0, %c0_i32 : i32, i32
  }
}

</mosaic_0001>

<bundles_post_ra>
// kernel: tpu_custom_call.1
= control target key start
LH: loop header
LB: loop body
LE: loop exit
PB: predicated region body
PF: predicated region fallthrough
CT: control target
= control target key end

     0   :  { %10 = vsyncpa [#allocation4], 0  ;;  %s3045_s0 = inlined_call_operand.hbm [shape: f32[16,128], index: 0, kind: input, shape index: {}]   ;;  %s3046_s1 = inlined_call_operand.hbm [shape: f32[1,8,128], index: 1, kind: input, shape index: {}]   ;;  %s3047_s2 = inlined_call_operand.hbm [shape: f32[512], index: 2, kind: input, shape index: {}]   ;;  %s3048_s3 = inlined_call_operand.vmem [shape: s32[384], index: 3, kind: input, shape index: {}]   ;;  %s3049_s4 = inlined_call_operand.vmem [shape: s32[16], index: 4, kind: input, shape index: {}]   ;;  %s3050_s5 = inlined_call_operand.hbm [shape: f32[16,128], index: 5, kind: output, shape index: {}]  }
   0x1   :  { %12 = vsyncpa [#allocation4 + $0x1], 0 }
   0x2   :  { %13 = vsyncpa [#allocation9], 0 }
   0x3   :  { %14 = vsyncpa [#allocation6], 0 }
   0x4   :  { %15 = vsyncpa [#allocation7], 0 }
   0x5   :  { %16 = vsyncpa [#allocation13], 0 }
   0x6   :  { %17 = vsyncpa [#allocation5], 0 }
   0x7   :  { %19 = vsyncpa [#allocation5 + $0x1], 0  ;;  %s2324_s18 = smov 0   ;;  %s2326_s19 = smov 0  }
   0x8   :  { %s2328_s20 = smov 0   ;;  %s2330_s21 = smov 0  }
   0x9 LB: > { %s2266_s22 = smov [#allocation8]   ;;  %s2345_s24 = sadd.s32 4294967295, %s2260_s21   ;;  %s2260_s21 = sphi %s2330_s21, %s3098_s21   ;;  %s2256_s20 = sphi %s2328_s20, %s3097_s20   ;;  %s2252_s19 = sphi %s2326_s19, %s3096_s19   ;;  %s2248_s18 = sphi %s2324_s18, %s3095_s18  }
   0xa   : > { %s179_s23 = sshll.u32 %s2266_s22, 4  ;;  %p1777_p0 = scmp.ge.s32.totalorder %s2260_s21, 1  ;;  %s180_s23 = int_to_ptr.vmem [resolvable:$true] %s179_s23 }
   0xb   : > { %p3051_p1 = scmp.eq.s32.totalorder %s2345_s24, 0  ;;  %p166_p2 = scmp.lt.s32.totalorder %s2260_s21, 3 }
   0xc   : > { %s199_s28 = sshll.u32 %s3048_s3, 4  ;;  %s210_s6 = sshll.u32 %s3049_s4, 4  ;;  %s200_s28 = int_to_ptr.vmem [resolvable:$true] %s199_s28  ;;  %s2369_s6 = int_to_ptr.vmem [resolvable:$true] %s210_s6 }
   0xd   : > { %p2350_p3 = pnand %p1777_p0, %p166_p2  ;;  %s2092_s8 = scalar_lea.vmem %s180_s23, 128 }
   0xe   : > { %p2093_p8 = scmp.ne.s32.totalorder %s180_s23, %s2092_s8  ;;  %p2100_p11 = scmp.lt.s32.totalorder %s180_s23, %s180_s23 }
   0xf   : > { %s3062_s25 = scalar_select %p2350_p3, 1, 0 }
  0x10   : > { %p1915_p5 = pneg %p2350_p3  ;;  %p2101_p12 = scmp.lt.s32.totalorder %s2092_s8, %s2092_s8 }
  0x12   : > { %p2365_p6 = pnand %p1915_p5, %p3051_p1  ;;  %p2102_p13 = por %p2101_p12, %p2100_p11 }
  0x14   : > { %p2083_p7 = pneg %p2365_p6 }
  0x16   : > { %p2095_p9 = pnand %p2093_p8, %p2083_p7 }
  0x18   : > { %p2096_p10 = pneg %p2095_p9 }
  0x1a   : > { %p2103_p0 = pnand %p2102_p13, %p2096_p10 }
  0x1c   : > { %2106 = shalt.err (!%p2103_p0)
}
  0x1d   : > { %1918 = dma.hbm_to_vmem [thread:$0]  (!%p2365_p6), %s3046_s1, 128, %s180_s23, [#allocation9]  }
  0x1e   : > { %s2267_s11 = smov [#allocation10]   ;;  %s2118_s14 = scalar_lea.vmem %s200_s28, 48 }
  0x1f   : > { %1921 = dma.hbm_to_smem (!%p2365_p6), %s3047_s2, 64, %s2267_s11, [#allocation6]  }
  0x20   : > { %p2119_p2 = scmp.ne.s32.totalorder %s200_s28, %s2118_s14  ;;  %s2125_s15 = scalar_lea.vmem %s200_s28, 64 }
  0x21   : > { %p2126_p9 = scmp.lt.s32.totalorder %s200_s28, %s200_s28  ;;  %p2127_p10 = scmp.lt.s32.totalorder %s2125_s15, %s2118_s14 }
  0x22   : > { %p2121_p5 = pnand %p2119_p2, %p2083_p7 }
  0x23   : > { %p2128_p11 = por %p2127_p10, %p2126_p9 }
  0x24   : > { %p2122_p8 = pneg %p2121_p5 }
  0x26   : > { %p2129_p12 = pnand %p2128_p11, %p2122_p8 }
  0x28   : > { %2132 = shalt.err (!%p2129_p12)
}
  0x29   : > { %s2268_s16 = smov [#allocation11]   ;;  %s2133_s17 = scalar_lea.vmem %s2369_s6, 16 }
  0x2a   : > { %1924 = dma.vmem_to_smem (!%p2365_p6), %s200_s28, 48, %s2268_s16, [#allocation7]  }
  0x2b   : > { %p2134_p13 = scmp.ne.s32.totalorder %s2369_s6, %s2133_s17  ;;  %p2141_p5 = scmp.lt.s32.totalorder %s2369_s6, %s2369_s6 }
  0x2c   : > { %p2142_p4 = scmp.lt.s32.totalorder %s2133_s17, %s2133_s17 }
  0x2d   : > { %p2136_p0 = pnand %p2134_p13, %p2083_p7 }
  0x2e   : > { %p2143_p9 = por %p2142_p4, %p2141_p5 }
  0x2f   : > { %p2137_p2 = pneg %p2136_p0 }
  0x31   : > { %p2144_p8 = pnand %p2143_p9, %p2137_p2 }
  0x33   : > { %2147 = shalt.err (!%p2144_p8)
}
  0x34   : > { %s2269_s22 = smov [#allocation12]   ;;  %s1776_s23 = sadd.s32 4294967294, %s2260_s21  }
  0x35   : > { %1927 = dma.vmem_to_smem (!%p2365_p6), %s2369_s6, 16, %s2269_s22, [#allocation13]  }
  0x36   : > { %s2403_s26 = sadd.s32 1, %s2260_s21   ;;  %s32_s28 = sadd.s32 1, %s2256_s20 }
  0x37   : > { %s29_s27 = ssub.s32 %s2260_s21, %s2403_s26  ;;  %p39_p7 = scmp.ne.s32.totalorder %s2256_s20, %s2252_s19 }
  0x38   : > { %p30_p4 = scmp.eq.s32.totalorder %s29_s27, 0  ;;  %p40_p10 = scmp.eq.s32.totalorder %s2260_s21, 0 }
  0x39   : > { %p45_p11 = scmp.ne.s32.totalorder %s2252_s19, %s2248_s18  ;;  %p153_p13 = scmp.eq.s32.totalorder %s2345_s24, 1 }
  0x3a   : > { %s2414_s29 = scalar_select %p30_p4, %s2256_s20, %s32_s28  }
  0x3b   : > { %p2416_p12 = por %p40_p10, %p39_p7  ;;  %p2422_p6 = por %p3051_p1, %p45_p11 }
  0x3c   : > { %p159_p0 = scmp.eq.s32.totalorder %s1776_s23, 1  ;;  %p1940_p2 = scmp.lt.s32.totalorder %s2260_s21, 2 }
  0x3d   : > { %s3065_s6 = scalar_select %p2422_p6, 1, 0 }
  0x3e   : > { %s221_s7 = sand.u32 1, %s2256_s20   ;;  %p2429_p5 = por %p153_p13, %p39_p7 }
  0x3f   : > { %p2433_p9 = por %p159_p0, %p45_p11  ;;  %s1783_s10 = sshll.u32 %s221_s7, 3 }
  0x40   : > { %s3066_s8 = scalar_select %p2429_p5, 1, 0 }
  0x41   : > { %s3067_s9 = scalar_select %p2433_p9, 1, 0 }
  0x42   : > { %s1784_s11 = sshll.u32 %s2260_s21, 7  ;;  %s225_s15 = scalar_lea.vmem [#allocation3], %s1783_s10 }
  0x43   : > { %s2441_s14 = scalar_lea.hbm %s3045_s0, %s1784_s11  ;;  %s232_s16 = sshll.u32 %s225_s15, 4  ;;  %s233_s16 = int_to_ptr.vmem [resolvable:$true] %s232_s16 }
  0x44   : > { %p2445_p8 = pnand %p1940_p2, %p2416_p12  ;;  %s222_s22 = scalar_lea.sflag [#allocation4], %s221_s7 }
  0x45   : > { %s2148_s23 = scalar_lea.hbm %s2441_s14, 128  ;;  %s2153_s11 = scalar_lea.hbm %s3045_s0, 256 }
  0x46   : > { %p2149_p4 = scmp.ne.s32.totalorder %s2441_s14, %s2148_s23  ;;  %p2150_p7 = pneg %p2445_p8 }
  0x47   : > { %p2154_p13 = scmp.lt.s32.totalorder %s2441_s14, %s3045_s0  ;;  %p2155_p12 = scmp.lt.s32.totalorder %s2153_s11, %s2148_s23 }
  0x48   : > { %p2151_p10 = pnand %p2150_p7, %p2149_p4 }
  0x49   : > { %p2156_p0 = por %p2155_p12, %p2154_p13 }
  0x4a   : > { %p2152_p11 = pneg %p2151_p10 }
  0x4c   : > { %p2157_p2 = pnand %p2156_p0, %p2152_p11 }
  0x4e   : > { %2160 = shalt.err (!%p2157_p2)
}
  0x4f   : > { %s2161_s30 = scalar_lea.vmem %s233_s16, 128  ;;  %s2270_s7 = smov [#allocation3]  }
  0x50   : > { %p2162_p1 = scmp.ne.s32.totalorder %s233_s16, %s2161_s30  ;;  %s2166_s13 = sshll.u32 %s2270_s7, 4  ;;  %s2167_s13 = int_to_ptr.vmem [resolvable:$false] %s2166_s13 }
  0x51   : > { %s2168_s15 = scalar_lea.vmem %s2167_s13, 256  ;;  %p2169_p4 = scmp.lt.s32.totalorder %s233_s16, %s2167_s13 }
  0x52   : > { %p2164_p9 = pnand %p2162_p1, %p2150_p7  ;;  %p2170_p10 = scmp.lt.s32.totalorder %s2168_s15, %s2161_s30 }
  0x54   : > { %p2165_p5 = pneg %p2164_p9  ;;  %p2171_p6 = por %p2170_p10, %p2169_p4 }
  0x56   : > { %p2172_p3 = pnand %p2171_p6, %p2165_p5 }
  0x58   : > { %2175 = shalt.err (!%p2172_p3)
}
  0x59   : > { %1931 = dma.hbm_to_vmem [thread:$0]  (!%p2445_p8), %s2441_s14, 128, %s233_s16, %s222_s22  }
  0x5a   : > { %p3069_p11 = scmp.ne.s32.totalorder %s3062_s25, 0 }
  0x5c   : > { %241 = sbr.rel (%p3069_p11) target bundleno = 1187 (0x4a3), region = 40 }
  0x61   : > { %s2466_s23 = sand.u32 1, %s2252_s19   ;;  %p3070_p1 = scmp.ne.s32.totalorder %s3065_s6, 0 }
  0x62   : > { %s1786_s27 = sshll.u32 %s2466_s23, 3  ;;  %s244_s28 = scalar_lea.sflag [#allocation4], %s2466_s23 }
  0x63   : > { %s247_s11 = scalar_lea.vmem [#allocation3], %s1786_s27 }
  0x64   : > { %2223 = dma.done.wait (%p3070_p1), %s244_s28, 128  }
  0x65   : > { %2225 = vsyncadd (%p3070_p1), %s244_s28, 4294967168  ;;  %p3071_p3 = scmp.eq.s32.totalorder %s2345_s24, 0 }
  0x67   : > { %2227 = dma.done.wait (%p3071_p3), [#allocation9], 128   ;;  %p3072_p6 = pmov %p3071_p3 }
  0x68   : > { %p3073_p5 = pmov %p3071_p3 }
  0x69   : > { %2229 = vsyncadd (%p3072_p6), [#allocation9], 4294967168 }
  0x6a   : > { %2231 = dma.done.wait (%p3073_p5), [#allocation6], 64   ;;  %p3074_p9 = pmov %p3071_p3 }
  0x6b   : > { %p3075_p8 = pmov %p3071_p3 }
  0x6c   : > { %2233 = vsyncadd (%p3074_p9), [#allocation6], 4294967232 }
  0x6d   : > { %2235 = dma.done.wait (%p3075_p8), [#allocation7], 48   ;;  %p3076_p7 = pmov %p3071_p3 }
  0x6e   : > { %p3077_p13 = pmov %p3071_p3 }
  0x6f   : > { %2237 = vsyncadd (%p3076_p7), [#allocation7], 4294967248 }
  0x70   : > { %2239 = dma.done.wait (%p3077_p13), [#allocation13], 16   ;;  %p3078_p12 = pmov %p3071_p3 }
  0x72   : > { %2241 = vsyncadd (%p3078_p12), [#allocation13], 4294967280 }
  0x73   : > { %268 = sfence }
  0x74   : > { %v2492_v0 = vld [vmem:[%s247_s11] sm:$0xff]  ;;  %s2495_s25 = sshll.u32 %s2345_s24, 3  ;;  %v293_v1 = vlaneseq  ;;  %v2271_v2 = vmov 0   ;;  %v2272_v3 = vmov 2   ;;  %v3055_v7 = vmov 0.0   ;;  %v310_v10 = vld [vmem:[#allocation8] sm:$0xff] }
  0x75   : > { %3079 = vst [vmem:[#allocation21_spill] sm:$0xff] %v2492_v0  ;;  %2012 = vset.pattern.permute.xlu0 %v2271_v2  ;;  %2014 = vset.pattern.permute.xlu1 %v2272_v3  ;;  %v295_v4 = vstv %s2495_s25  ;;  %s2499_s6 = sld [smem:[#allocation12 + %s2495_s25]]  ;;  %s300_s14 = sadd.s32 1, %s2495_s25  ;;  %727 = vst [vmem:[#allocation2 + $0xb0] sm:$0xff] %v3055_v7  ;;  %v2274_v11 = vmov 1  }
  0x76   : > { %313 = vperm.xlu0 %2012, %v2492_v0   ;;  %331 = vperm.xlu1 %2014, %v2492_v0   ;;  %v2504_v5 = vshrl.u32 %v293_v1, 7  ;;  %v2506_v6 = vand.u32 127, %v293_v1  ;;  %s2508_s16 = sld [smem:[#allocation12 + %s300_s14]]  ;;  %s302_s17 = sadd.s32 2, %s2495_s25  ;;  %728 = vst [vmem:[#allocation2] sm:$0xff] %v3055_v7  ;;  %729 = vst [vmem:[#allocation2 + $0xd8] sm:$0xff] %v3055_v7 }
  0x77   : > { %730 = vst [vmem:[#allocation2 + $0x18] sm:$0xff] %v3055_v7  ;;  %731 = vst [vmem:[#allocation2 + $0x50] sm:$0xff] %v3055_v7  ;;  %s2545_s22 = sld [smem:[#allocation12 + %s302_s17]]  ;;  %s304_s10 = sadd.s32 3, %s2495_s25  ;;  %v2275_v62 = vmov 683565275  }
  0x78   : > { %732 = vst [vmem:[#allocation2 + $0x68] sm:$0xff] %v3055_v7  ;;  %733 = vst [vmem:[#allocation2 + $0x30] sm:$0xff] %v3055_v7  ;;  %v2549_v8 = vadd.s32 %v295_v4, %v2504_v5  ;;  %s2551_s12 = sld [smem:[#allocation12 + %s304_s10]]  ;;  %s306_s30 = sadd.s32 4, %s2495_s25  ;;  %v357_v9 = vsub.s32 3, %v2504_v5  ;;  %v318_v15 = vsub.s32 0, %v2504_v5 }
  0x79   : > { %734 = vst [vmem:[#allocation2 + $0x48] sm:$0xff] %v3055_v7  ;;  %735 = vst [vmem:[#allocation2 + $0x80] sm:$0xff] %v3055_v7  ;;  %s2555_s7 = sld [smem:[#allocation12 + %s306_s30]]  ;;  %s308_s13 = sadd.s32 5, %s2495_s25  ;;  %v336_v16 = vsub.s32 2, %v2504_v5  ;;  %v327_v17 = vsub.s32 1, %v2504_v5 }
  0x7a   : > { %736 = vst [vmem:[#allocation2 + $0x88] sm:$0xff] %v3055_v7  ;;  %737 = vst [vmem:[#allocation2 + $0xe8] sm:$0xff] %v3055_v7  ;;  %2013 = vset.pattern.permute.xlu0 %v2274_v11  ;;  %s2558_s15 = sld [smem:[#allocation12 + %s308_s13]]  ;;  %vm352_vm0 = vcmp.ne.s32.totalorder %v2506_v6, %v2549_v8  ;;  %v358_v12 = vrot.slane %v310_v10, %v357_v9  ;;  %v319_v18 = vrot.slane %v310_v10, %v318_v15  ;;  %v2276_v1 = vmov 2475754826   ;;  %s2762_s28 = scalar_lea.vmem [#allocation14], %s1786_s27 }
  0x7b   : > { %738 = vst [vmem:[#allocation2 + $0xb8] sm:$0xff] %v3055_v7  ;;  %739 = vst [vmem:[#allocation2 + $0x60] sm:$0xff] %v3055_v7  ;;  %322 = vperm.xlu0 %2013, %v2492_v0   ;;  %v1793_v13 = vsel %vm352_vm0, 1.0, %v3055_v7  ;;  %v337_v20 = vrot.slane %v310_v10, %v336_v16  ;;  %v328_v22 = vrot.slane %v310_v10, %v327_v17  ;;  %v2277_v4 = vmov 2131351028   ;;  %s2764_s11 = smov 0  }
  0x7c   : > { %740 = vst [vmem:[#allocation2 + $0xf0] sm:$0xff] %v3055_v7  ;;  %741 = vst [vmem:[#allocation2 + $0x8] sm:$0xff] %v3055_v7  ;;  %v2564_v14 = vmul.f32 %v1793_v13, %v358_v12  ;;  %v2278_v9 = vmov 2102212464   ;;  %v2279_v11 = vmov 920167782  }
  0x7d   : > { %742 = vst [vmem:[#allocation2 + $0x78] sm:$0xff] %v3055_v7  ;;  %743 = vst [vmem:[#allocation2 + $0x38] sm:$0xff] %v3055_v7 }
  0x7e   : > { %744 = vst [vmem:[#allocation2 + $0x58] sm:$0xff] %v3055_v7  ;;  %745 = vst [vmem:[#allocation2 + $0x40] sm:$0xff] %v3055_v7 }
  0x7f   : > { %746 = vst [vmem:[#allocation2 + $0xc8] sm:$0xff] %v3055_v7  ;;  %747 = vst [vmem:[#allocation2 + $0xe0] sm:$0xff] %v3055_v7  ;;  %2015 = vset.pattern.permute.xlu0 %v2272_v3 }
  0x80   : > { %748 = vst [vmem:[#allocation2 + $0x90] sm:$0xff] %v3055_v7  ;;  %749 = vst [vmem:[#allocation2 + $0x70] sm:$0xff] %v3055_v7 }
  0x81   : > { %750 = vst [vmem:[#allocation2 + $0xc0] sm:$0xff] %v3055_v7  ;;  %751 = vst [vmem:[#allocation2 + $0xa8] sm:$0xff] %v3055_v7 }
  0x82   : > { %752 = vst [vmem:[#allocation2 + $0xd0] sm:$0xff] %v3055_v7  ;;  %753 = vst [vmem:[#allocation2 + $0x10] sm:$0xff] %v3055_v7 }
  0x83   : > { %754 = vst [vmem:[#allocation2 + $0x28] sm:$0xff] %v3055_v7  ;;  %755 = vst [vmem:[#allocation2 + $0xa0] sm:$0xff] %v3055_v7 }
  0x84   : > { %756 = vst [vmem:[#allocation2 + $0xf8] sm:$0xff] %v3055_v7  ;;  %757 = vst [vmem:[#allocation2 + $0x20] sm:$0xff] %v3055_v7 }
  0x85   : > { %758 = vst [vmem:[#allocation2 + $0x98] sm:$0xff] %v3055_v7  ;;  %3080 = vst [vmem:[#allocation22_spill] sm:$0xff] %v2549_v8 }
  0xf1   : > { %v314_v19 = vpop.permute.xlu0 %313  ;;  %v332_v21 = vpop.permute.xlu1 %331 }
  0xf2   : > { %v2569_v23 = vsub.f32 %v314_v19, %v319_v18  ;;  %v2571_v24 = vsub.f32 %v332_v21, %v337_v20  ;;  %v2280_v19 = vmov 1326507024  }
  0xf4   : > { %3081 = vst [vmem:[#allocation23_spill] sm:$0xff] %v2569_v23  ;;  %3082 = vst [vmem:[#allocation24_spill] sm:$0xff] %v2571_v24  ;;  %v339_v27 = vmul.f32 %v2569_v23, %v2569_v23  ;;  %v342_v29 = vmul.f32 %v2571_v24, %v2571_v24 }
  0xf6   : > { %v323_v25 = vpop.permute.xlu0 %322 }
  0xf7   : > { %v2573_v26 = vsub.f32 %v323_v25, %v328_v22 }
  0xf9   : > { %v340_v28 = vmul.f32 %v2573_v26, %v2573_v26 }
  0xfb   : > { %v341_v30 = vadd.f32 %v340_v28, %v339_v27 }
  0xfd   : > { %v343_v31 = vadd.f32 %v342_v29, %v341_v30 }
  0xff   : > { %v344_v32 = vadd.f32 1e-12, %v343_v31 }
 0x101   : > { %2016 = vrsqrt.f32 %v344_v32  ;;  %vm347_vm1 = vcmp.eq.f32.partialorder %v344_v32, inf  ;;  %v350_v35 = vand.u32 2147483648, %v344_v32  ;;  %vm349_vm2 = vcmp.eq.f32.partialorder %v344_v32, 0.0 }
 0x10e   : > { %v2017_v33 = vpop.eup %2016 }
 0x10f   : > { %v346_v34 = vmul.f32 %v2017_v33, %v344_v32 }
 0x111   : > { %v348_v36 = vsel %vm347_vm1, %v344_v32, %v346_v34 }
 0x112   : > { %v2581_v37 = vsel %vm349_vm2, %v350_v35, %v348_v36 }
 0x113   : > { %v2584_v38 = vmul.f32 0.60415244, %v2581_v37  ;;  %v2587_v39 = vmul.f32 0.8975979, %v2581_v37 }
 0x115   : > { %v361_v40 = vand.u32 2147483647, %v2584_v38  ;;  %v364_v41 = vand.u32 2139095040, %v2584_v38  ;;  %v473_v42 = vand.u32 2147483647, %v2587_v39  ;;  %v476_v43 = vand.u32 2139095040, %v2587_v39 }
 0x116   : > { %vm363_vm1 = vcmp.lt.s32.totalorder %v2584_v38, 0 }
 0x117   : > { %v365_v44 = vshrl.u32 %v364_v41, 23  ;;  %v368_v45 = vand.u32 8388607, %v361_v40  ;;  %v477_v46 = vshrl.u32 %v476_v43, 23  ;;  %v480_v47 = vand.u32 8388607, %v473_v42 }
 0x118   : > { %vm2663_vm0 = vcmp.le.f32.partialorder %v361_v40, 0.7853982 }
 0x119   : > { %v1794_v48 = vadd.s32 4294967169, %v365_v44  ;;  %v1799_v49 = vadd.s32 4294967169, %v477_v46  ;;  %v369_v51 = vor.u32 8388608, %v368_v45  ;;  %v481_v52 = vor.u32 8388608, %v480_v47 }
 0x11b   : > { %v371_v50 = vadd.s32 1, %v1794_v48  ;;  %v483_v53 = vadd.s32 1, %v1799_v49  ;;  %v2597_v58 = vshll.u32 %v369_v51, 8  ;;  %v2601_v60 = vshll.u32 %v481_v52, 8 }
 0x11d   : > { %vm372_vm3 = vcmp.gt.s32.totalorder %v371_v50, 0  ;;  %vm484_vm4 = vcmp.gt.s32.totalorder %v483_v53, 0 }
 0x11e   : > { %v373_v54 = vsel %vm372_vm3, %v371_v50, 0  ;;  %v485_v57 = vsel %vm484_vm4, %v483_v53, 0  ;;  %vm475_vm3 = vcmp.lt.s32.totalorder %v2587_v39, 0  ;;  %vm2686_vm4 = vcmp.le.f32.partialorder %v473_v42, 0.7853982 }
 0x11f   : > { %v374_v55 = vshrl.u32 %v373_v54, 5  ;;  %v375_v56 = vand.u32 31, %v373_v54  ;;  %v2599_v59 = vshrl.u32 %v485_v57, 5  ;;  %v487_v3 = vand.u32 31, %v485_v57 }
 0x121   : > { %v376_v61 = vsub.s32 32, %v375_v56  ;;  %v378_v63 = vshll.u32 %v2275_v62, %v375_v56  ;;  %v381_v2 = vshll.u32 %v2276_v1, %v375_v56  ;;  %v384_v5 = vshll.u32 %v2277_v4, %v375_v56 }
 0x122   : > { %v387_v10 = vshll.u32 %v2278_v9, %v375_v56  ;;  %v390_v12 = vshll.u32 %v2279_v11, %v375_v56  ;;  %vm393_vm5 = vcmp.lt.s32.totalorder %v374_v55, 1  ;;  %vm394_vm6 = vcmp.lt.s32.totalorder %v374_v55, 2 }
 0x123   : > { %v379_v13 = vshrl.u32 %v2276_v1, %v376_v61  ;;  %v382_v15 = vshrl.u32 %v2277_v4, %v376_v61  ;;  %v385_v16 = vshrl.u32 %v2278_v9, %v376_v61  ;;  %v377_v17 = vshrl.u32 %v2275_v62, %v376_v61 }
 0x124   : > { %v388_v18 = vshrl.u32 %v2279_v11, %v376_v61  ;;  %v391_v20 = vshrl.u32 %v2280_v19, %v376_v61  ;;  %vm395_vm7 = vcmp.lt.s32.totalorder %v374_v55, 3  ;;  %v488_v27 = vsub.s32 32, %v487_v3 }
 0x125   : > { %v380_v21 = vor.u32 %v379_v13, %v378_v63  ;;  %v383_v22 = vor.u32 %v382_v15, %v381_v2  ;;  %v386_v25 = vor.u32 %v385_v16, %v384_v5  ;;  %vm396_vm8 = vcmp.lt.s32.totalorder %v374_v55, 4 }
 0x126   : > { %v389_v28 = vor.u32 %v388_v18, %v387_v10  ;;  %v392_v29 = vor.u32 %v391_v20, %v390_v12  ;;  %v490_v30 = vshll.u32 %v2275_v62, %v487_v3  ;;  %v493_v43 = vshll.u32 %v2276_v1, %v487_v3 }
 0x127   : > { %v397_v31 = vsel %vm393_vm5, %v377_v17, %v380_v21  ;;  %v398_v32 = vsel %vm396_vm8, %v386_v25, 2102212464  ;;  %v401_v33 = vsel %vm393_vm5, %v380_v21, %v383_v22  ;;  %v405_v34 = vsel %vm393_vm5, %v383_v22, %v386_v25 }
 0x128   : > { %v399_v35 = vsel %vm395_vm7, %v383_v22, %v398_v32  ;;  %v402_v36 = vsel %vm396_vm8, %v389_v28, 920167782  ;;  %v406_v41 = vsel %vm396_vm8, %v392_v29, 1326507024  ;;  %v489_v46 = vshrl.u32 %v2275_v62, %v488_v27 }
 0x129   : > { %v403_v44 = vsel %vm395_vm7, %v386_v25, %v402_v36  ;;  %v407_v45 = vsel %vm395_vm7, %v389_v28, %v406_v41  ;;  %v491_v47 = vshrl.u32 %v2276_v1, %v488_v27  ;;  %v400_v48 = vsel %vm394_vm6, %v397_v31, %v399_v35 }
 0x12a   : > { %v404_v49 = vsel %vm394_vm6, %v401_v33, %v403_v44  ;;  %v408_v50 = vsel %vm394_vm6, %v405_v34, %v407_v45  ;;  %v494_v51 = vshrl.u32 %v2277_v4, %v488_v27  ;;  %v496_v62 = vshll.u32 %v2277_v4, %v487_v3 }
 0x12b   : > { %v2613_v52 = vmul.u32.u64.low %v2597_v58, %v408_v50  ;;  %v2614_v53 = vmul.u32.u64.high %v2597_v58, %v408_v50, %v2613_v52  ;;  %v2617_v54 = vmul.u32.u64.low %v2597_v58, %v404_v49  ;;  %v2618_v56 = vmul.u32.u64.high %v2597_v58, %v404_v49, %v2617_v54 }
 0x12c   : > { %v492_v57 = vor.u32 %v491_v47, %v490_v30  ;;  %v495_v61 = vor.u32 %v494_v51, %v493_v43  ;;  %v497_v63 = vshrl.u32 %v2278_v9, %v488_v27  ;;  %v416_v1 = vmul.u32 %v2597_v58, %v400_v48 }
 0x12d   : > { %v499_v2 = vshll.u32 %v2278_v9, %v487_v3  ;;  %v500_v5 = vshrl.u32 %v2279_v11, %v488_v27  ;;  %v503_v55 = vshrl.u32 %v2280_v19, %v488_v27  ;;  %v502_v12 = vshll.u32 %v2279_v11, %v487_v3 }
 0x12e   : > { %v498_v10 = vor.u32 %v497_v63, %v496_v62  ;;  %vm505_vm9 = vcmp.lt.s32.totalorder %v2599_v59, 1  ;;  %vm506_vm10 = vcmp.lt.s32.totalorder %v2599_v59, 2  ;;  %vm418_vm11 = vc.u32 %v2614_v53, %v2617_v54 }
 0x12f   : > { %v419_v13 = vadd.s32 1, %v2618_v56  ;;  %v501_v15 = vor.u32 %v500_v5, %v499_v2  ;;  %vm507_vm12 = vcmp.lt.s32.totalorder %v2599_v59, 3  ;;  %v504_v4 = vor.u32 %v503_v55, %v502_v12 }
 0x130   : > { %vm508_vm13 = vcmp.lt.s32.totalorder %v2599_v59, 4  ;;  %v509_v58 = vsel %vm505_vm9, %v489_v46, %v492_v57  ;;  %v513_v9 = vsel %vm505_vm9, %v492_v57, %v495_v61  ;;  %v517_v17 = vsel %vm505_vm9, %v495_v61, %v498_v10 }
 0x131   : > { %v420_v16 = vsel %vm418_vm11, %v419_v13, %v2618_v56  ;;  %v510_v3 = vsel %vm508_vm13, %v498_v10, 2102212464  ;;  %v514_v11 = vsel %vm508_vm13, %v501_v15, 920167782  ;;  %v518_v21 = vsel %vm508_vm13, %v504_v4, 1326507024 }
 0x132   : > { %v421_v18 = vadd.s32 %v420_v16, %v416_v1  ;;  %v511_v19 = vsel %vm507_vm12, %v495_v61, %v510_v3  ;;  %v515_v20 = vsel %vm507_vm12, %v498_v10, %v514_v11  ;;  %v519_v27 = vsel %vm507_vm12, %v501_v15, %v518_v21 }
 0x133   : > { %v512_v22 = vsel %vm506_vm10, %v509_v58, %v511_v19  ;;  %v516_v25 = vsel %vm506_vm10, %v513_v9, %v515_v20  ;;  %v520_v29 = vsel %vm506_vm10, %v517_v17, %v519_v27  ;;  %v1805_v49 = vadd.f32 -1.16875, %v2581_v37 }
 0x134   : > { %v422_v28 = vadd.s32 536870912, %v421_v18  ;;  %v2637_v30 = vmul.u32.u64.low %v2601_v60, %v516_v25  ;;  %v2638_v31 = vmul.u32.u64.high %v2601_v60, %v516_v25, %v2637_v30  ;;  %v528_v41 = vmul.u32 %v2601_v60, %v512_v22 }
 0x135   : > { %v2641_v32 = vmul.u32.u64.low %v2601_v60, %v520_v29  ;;  %v2642_v33 = vmul.u32.u64.high %v2601_v60, %v520_v29, %v2641_v32  ;;  %v1804_v60 = vadd.f32 -0.9, %v2581_v37  ;;  %v593_v57 = vmul.f32 -16.0, %v1805_v49 }
 0x136   : > { %v2644_v34 = vshrl.u32 %v422_v28, 30  ;;  %v531_v36 = vadd.s32 1, %v2638_v31  ;;  %v1807_v62 = vadd.f32 -1.70625, %v2581_v37  ;;  %v1806_v63 = vadd.f32 -1.4375, %v2581_v37 }
 0x137   : > { %v529_v43 = vadd.s32 %v2637_v30, %v2642_v33  ;;  %vm530_vm14 = vc.u32 %v2642_v33, %v2637_v30  ;;  %v584_v5 = vmul.f32 -16.0, %v1804_v60  ;;  %v417_v55 = vadd.s32 %v2617_v54, %v2614_v53 }
 0x138   : > { %v424_v35 = vshll.u32 %v2644_v34, 30  ;;  %v532_v44 = vsel %vm530_vm14, %v531_v36, %v2638_v31  ;;  %v594_v13 = vmul.f32 %v1805_v49, %v593_v57  ;;  %v611_v4 = vmul.f32 -16.0, %v1807_v62 }
 0x139   : > { %v533_v45 = vadd.s32 %v532_v44, %v528_v41  ;;  %v602_v58 = vmul.f32 -16.0, %v1806_v63  ;;  %v585_v17 = vmul.f32 %v1804_v60, %v584_v5  ;;  %v1809_v27 = vadd.f32 -2.24375, %v2581_v37 }
 0x13a   : > { %v425_v59 = vsub.s32 %v421_v18, %v424_v35  ;;  %v595_v20 = vmul.f32 1.442695, %v594_v13  ;;  %v612_v22 = vmul.f32 %v1807_v62, %v611_v4  ;;  %v1808_v29 = vadd.f32 -1.975, %v2581_v37 }
 0x13b   : > { %v534_v47 = vadd.s32 536870912, %v533_v45  ;;  %v603_v25 = vmul.f32 %v1806_v63, %v602_v58  ;;  %v586_v28 = vmul.f32 1.442695, %v585_v17  ;;  %v629_v44 = vmul.f32 -16.0, %v1809_v27 }
 0x13c   : > { %v427_v46 = vsub.s32 0, %v425_v59  ;;  %2018 = vpow2.f32 %v595_v20  ;;  %v613_v36 = vmul.f32 1.442695, %v612_v22  ;;  %v620_v49 = vmul.f32 -16.0, %v1808_v29 }
 0x13d   : > { %v2653_v50 = vshrl.u32 %v534_v47, 30  ;;  %v604_v40 = vmul.f32 1.442695, %v603_v25  ;;  %2020 = vpow2.f32 %v586_v28  ;;  %v1813_v60 = vadd.f32 -3.31875, %v2581_v37 }
 0x13e   : > { %v1795_v48 = vmin.u32 %v427_v46, %v425_v59  ;;  %2022 = vpow2.f32 %v613_v36  ;;  %v1812_v62 = vadd.f32 -3.05, %v2581_v37  ;;  %v1819_v20 = vadd.f32 -4.93125, %v2581_v37 }
 0x13f   : > { %v536_v52 = vshll.u32 %v2653_v50, 30  ;;  %v665_v13 = vmul.f32 -16.0, %v1813_v60  ;;  %v1818_v25 = vadd.f32 -4.6625, %v2581_v37  ;;  %vm453_vm8 = vweird.f32 %v2584_v38 }
 0x140   : > { %v429_v51 = vclz %v1795_v48  ;;  %v656_v42 = vmul.f32 -16.0, %v1812_v62  ;;  %vm466_vm9 = vcmp.lt.f32.partialorder %v2581_v37, 5.2  ;;  %vm565_vm13 = vweird.f32 %v2587_v39 }
 0x141   : > { %v537_v61 = vsub.s32 %v533_v45, %v536_v52  ;;  %v1811_v45 = vadd.f32 -2.78125, %v2581_v37  ;;  %v1810_v52 = vadd.f32 -2.5125, %v2581_v37  ;;  %v1798_v5 = vsel %vm466_vm9, 1.0, %v3055_v7 }
 0x142   : > { %v1796_v56 = vadd.s32 4294967294, %v429_v51  ;;  %vm578_vm14 = vcmp.lt.f32.partialorder %v2581_v37, 3.5 }
 0x143   : > { %v539_v2 = vsub.s32 0, %v537_v61 }
 0x144   : > { %vm1797_vm15 = vcmp.lt.s32.totalorder %v1796_v56, 0 }
 0x145   : > { %v432_v1 = vsel %vm1797_vm15, 0, %v1796_v56  ;;  %v1800_v15 = vmin.u32 %v539_v2, %v537_v61 }
 0x146   : > { %v433_v10 = vsub.s32 32, %v432_v1  ;;  %v437_v12 = vsub.s32 4294967266, %v432_v1  ;;  %v434_v9 = vshll.u32 %v425_v59, %v432_v1  ;;  %v447_v59 = vsub.s32 4, %v2644_v34 }
 0x147   : > { %v541_v11 = vclz %v1800_v15  ;;  %v647_v1 = vmul.f32 -16.0, %v1811_v45  ;;  %v1814_v15 = vadd.f32 -3.5875, %v2581_v37 }
 0x148   : > { %v435_v16 = vshrl.u32 %v417_v55, %v433_v10  ;;  %v438_v3 = vadd.s32 127, %v437_v12  ;;  %v621_v10 = vmul.f32 %v1808_v29, %v620_v49  ;;  %v1815_v12 = vadd.f32 -3.85625, %v2581_v37 }
 0x149   : > { %v1801_v21 = vadd.s32 4294967294, %v541_v11  ;;  %v1816_v11 = vadd.f32 -4.125, %v2581_v37  ;;  %v674_v22 = vmul.f32 -16.0, %v1814_v15  ;;  %v666_v29 = vmul.f32 %v1813_v60, %v665_v13 }
 0x14a   : > { %v436_v18 = vor.u32 %v435_v16, %v434_v9  ;;  %v439_v19 = vshll.u32 %v438_v3, 23  ;;  %v1817_v9 = vadd.f32 -4.39375, %v2581_v37  ;;  %v648_v3 = vmul.f32 %v1811_v45, %v647_v1 }
 0x14b   : > { %vm1802_vm2 = vcmp.lt.s32.totalorder %v1801_v21, 0  ;;  %v675_v53 = vmul.f32 %v1814_v15, %v674_v22  ;;  %v559_v49 = vsub.s32 4, %v2653_v50 }
 0x14c   : > { %v440_v54 = vor.u32 4788187, %v439_v19  ;;  %v443_v31 = vcvt.s32.f32 %v436_v18  ;;  %v544_v32 = vsel %vm1802_vm2, 0, %v1801_v21  ;;  %v622_v18 = vmul.f32 1.442695, %v621_v10 }
 0x14d   : > { %v545_v33 = vsub.s32 32, %v544_v32  ;;  %v549_v35 = vsub.s32 4294967266, %v544_v32  ;;  %v546_v46 = vshll.u32 %v537_v61, %v544_v32  ;;  %v630_v61 = vmul.f32 %v1809_v27, %v629_v44 }
 0x14e   : > { %v441_v30 = vand.u32 2147483647, %v440_v54  ;;  %v683_v19 = vmul.f32 -16.0, %v1815_v12  ;;  %v2696_v54 = vpop.eup %2018  ;;  %v657_v32 = vmul.f32 %v1812_v62, %v656_v42  ;;  %v710_v44 = vmul.f32 -16.0, %v1818_v25 }
 0x14f   : > { %v547_v47 = vshrl.u32 %v529_v43, %v545_v33  ;;  %v550_v48 = vadd.s32 127, %v549_v35  ;;  %v448_v43 = vsel %vm363_vm1, %v447_v59, %v2644_v34  ;;  %v638_v34 = vmul.f32 -16.0, %v1810_v52  ;;  %v2705_v45 = vpop.eup %2020 }
 0x150   : > { %v444_v41 = vmul.f32 %v443_v31, %v441_v30  ;;  %v631_v16 = vmul.f32 1.442695, %v630_v61  ;;  %v450_v27 = vsel %vm2663_vm0, 0, %v448_v43  ;;  %v701_v30 = vmul.f32 -16.0, %v1817_v9 }
 0x151   : > { %v548_v56 = vor.u32 %v547_v47, %v546_v46  ;;  %v551_v57 = vshll.u32 %v550_v48, 23  ;;  %v639_v21 = vmul.f32 %v1810_v52, %v638_v34  ;;  %v649_v31 = vmul.f32 1.442695, %v648_v3  ;;  %v2707_v48 = vpop.eup %2022 }
 0x152   : > { %v445_v51 = vxor.u32 2147483648, %v444_v41  ;;  %v692_v33 = vmul.f32 -16.0, %v1816_v11  ;;  %v684_v36 = vmul.f32 %v1815_v12, %v683_v19  ;;  %v667_v46 = vmul.f32 1.442695, %v666_v29 }
 0x153   : > { %v552_v55 = vor.u32 4788187, %v551_v57  ;;  %v555_v58 = vcvt.s32.f32 %v548_v56  ;;  %v640_v59 = vmul.f32 1.442695, %v639_v21  ;;  %v702_v47 = vmul.f32 %v1817_v9, %v701_v30 }
 0x154   : > { %v446_v63 = vsel %vm363_vm1, %v445_v51, %v444_v41  ;;  %v658_v51 = vmul.f32 1.442695, %v657_v32  ;;  %v693_v52 = vmul.f32 %v1816_v11, %v692_v33  ;;  %v454_v60 = vand.u32 3, %v450_v27 }
 0x155   : > { %v449_v2 = vsel %vm2663_vm0, %v2584_v38, %v446_v63  ;;  %v553_v4 = vand.u32 2147483647, %v552_v55  ;;  %v685_v56 = vmul.f32 1.442695, %v684_v36  ;;  %v676_v62 = vmul.f32 1.442695, %v675_v53 }
 0x156   : > { %2024 = vcosq.f32 %v449_v2  ;;  %v711_v63 = vmul.f32 %v1818_v25, %v710_v44  ;;  %v703_v61 = vmul.f32 1.442695, %v702_v47  ;;  %v560_v55 = vsel %vm475_vm3, %v559_v49, %v2653_v50 }
 0x157   : > { %2026 = vsinq.f32 %v449_v2  ;;  %v556_v17 = vmul.f32 %v555_v58, %v553_v4  ;;  %v694_v10 = vmul.f32 1.442695, %v693_v52  ;;  %vm459_vm5 = vcmp.eq.s32.totalorder %v454_v60, 2 }
 0x158   : > { %2028 = vpow2.f32 %v604_v40  ;;  %v719_v40 = vmul.f32 -16.0, %v1819_v20  ;;  %vm456_vm6 = vcmp.eq.s32.totalorder %v454_v60, 0  ;;  %v712_v15 = vmul.f32 1.442695, %v711_v63 }
 0x159   : > { %v557_v28 = vxor.u32 2147483648, %v556_v17  ;;  %2030 = vpow2.f32 %v631_v16  ;;  %vm455_vm7 = vcmp.lt.s32.totalorder %v454_v60, 2  ;;  %v562_v9 = vsel %vm2686_vm4, 0, %v560_v55 }
 0x15a   : > { %2032 = vpow2.f32 %v622_v18  ;;  %v720_v57 = vmul.f32 %v1819_v20, %v719_v40 }
 0x15b   : > { %v558_v35 = vsel %vm475_vm3, %v557_v28, %v556_v17  ;;  %v566_v17 = vand.u32 3, %v562_v9 }
 0x15c   : > { %v561_v41 = vsel %vm2686_vm4, %v2587_v39, %v558_v35  ;;  %v721_v34 = vmul.f32 1.442695, %v720_v57 }
 0x15d   : > { %2034 = vcosq.f32 %v561_v41  ;;  %vm571_vm10 = vcmp.eq.s32.totalorder %v566_v17, 2  ;;  %vm568_vm11 = vcmp.eq.s32.totalorder %v566_v17, 0  ;;  %vm567_vm12 = vcmp.lt.s32.totalorder %v566_v17, 2 }
 0x15e   : > { %2036 = vsinq.f32 %v561_v41 }
 0x15f   : > { %2038 = vpow2.f32 %v649_v31 }
 0x160   : > { %2040 = vpow2.f32 %v640_v59 }
 0x161   : > { %2042 = vpow2.f32 %v667_v46 }
 0x162   : > { %2044 = vpow2.f32 %v658_v51 }
 0x163   : > { %v2025_v43 = vpop.eup %2024  ;;  %2046 = vpow2.f32 %v685_v56 }
 0x164   : > { %v2027_v1 = vpop.eup %2026  ;;  %v460_v2 = vxor.u32 2147483648, %v2025_v43  ;;  %2048 = vpow2.f32 %v676_v62  ;;  %v1803_v62 = vsel %vm578_vm14, 1.0, %v3055_v7 }
 0x165   : > { %v457_v12 = vxor.u32 2147483648, %v2027_v1  ;;  %v2029_v4 = vpop.eup %2028  ;;  %2050 = vpow2.f32 %v703_v61 }
 0x166   : > { %v461_v13 = vsel %vm459_vm5, %v460_v2, %v2027_v1  ;;  %2052 = vpow2.f32 %v694_v10  ;;  %v2031_v16 = vpop.eup %2030 }
 0x167   : > { %v458_v58 = vsel %vm456_vm6, %v2025_v43, %v457_v12  ;;  %2054 = vpow2.f32 %v721_v34  ;;  %v2033_v42 = vpop.eup %2032 }
 0x168   : > { %v462_v50 = vsel %vm455_vm7, %v458_v58, %v461_v13  ;;  %2056 = vpow2.f32 %v712_v15 }
 0x169   : > { %v463_v3 = vsel %vm453_vm8, nan, %v462_v50 }
 0x16a   : > { %v464_v11 = vmul.f32 0.5, %v463_v3  ;;  %v2035_v18 = vpop.eup %2034 }
 0x16b   : > { %v2037_v20 = vpop.eup %2036  ;;  %v572_v21 = vxor.u32 2147483648, %v2035_v18 }
 0x16c   : > { %v465_v19 = vadd.f32 0.5, %v464_v11  ;;  %v2039_v22 = vpop.eup %2038  ;;  %v569_v38 = vxor.u32 2147483648, %v2037_v20 }
 0x16d   : > { %v2041_v27 = vpop.eup %2040  ;;  %v573_v28 = vsel %vm571_vm10, %v572_v21, %v2037_v20 }
 0x16e   : > { %v469_v25 = vmul.f32 %v1798_v5, %v465_v19  ;;  %v2043_v29 = vpop.eup %2042  ;;  %v570_v31 = vsel %vm568_vm11, %v2035_v18, %v569_v38 }
 0x16f   : > { %v2045_v32 = vpop.eup %2044  ;;  %v574_v33 = vsel %vm567_vm12, %v570_v31, %v573_v28 }
 0x170   : > { %v470_v30 = vmul.f32 0.25, %v469_v25  ;;  %v2047_v35 = vpop.eup %2046  ;;  %v575_v40 = vsel %vm565_vm13, nan, %v574_v33 }
 0x171   : > { %v2049_v41 = vpop.eup %2048  ;;  %v576_v59 = vmul.f32 0.5, %v575_v40 }
 0x172   : > { %v471_v36 = vmul.f32 %v470_v30, %v2564_v14  ;;  %v2051_v53 = vpop.eup %2050 }
 0x173   : > { %v2053_v51 = vpop.eup %2052  ;;  %v577_v52 = vadd.f32 0.5, %v576_v59 }
 0x174   : > { %v597_v44 = vmul.f32 %v2696_v54, %v471_v36  ;;  %v588_v46 = vmul.f32 %v2705_v45, %v471_v36  ;;  %v615_v47 = vmul.f32 %v2707_v48, %v471_v36  ;;  %v606_v49 = vmul.f32 %v2029_v4, %v471_v36  ;;  %v2055_v57 = vpop.eup %2054 }
 0x175   : > { %v633_v39 = vmul.f32 %v2031_v16, %v471_v36  ;;  %v624_v60 = vmul.f32 %v2033_v42, %v471_v36  ;;  %v651_v56 = vmul.f32 %v2039_v22, %v471_v36  ;;  %v642_v63 = vmul.f32 %v2041_v27, %v471_v36  ;;  %v2057_v1 = vpop.eup %2056 }
 0x176   : > { %598 = vadd.xlane.f32.xlu0 %v597_v44  ;;  %589 = vadd.xlane.f32.xlu1 %v588_v46  ;;  %v669_v43 = vmul.f32 %v2043_v29, %v471_v36  ;;  %v660_v61 = vmul.f32 %v2045_v32, %v471_v36  ;;  %v581_v54 = vmul.f32 %v1803_v62, %v577_v52 }
 0x177   : > { %v687_v2 = vmul.f32 %v2047_v35, %v471_v36  ;;  %v678_v45 = vmul.f32 %v2049_v41, %v471_v36  ;;  %v705_v55 = vmul.f32 %v2051_v53, %v471_v36  ;;  %v696_v48 = vmul.f32 %v2053_v51, %v471_v36 }
 0x178   : > { %v723_v10 = vmul.f32 %v2055_v57, %v471_v36  ;;  %v714_v12 = vmul.f32 %v2057_v1, %v471_v36  ;;  %v2726_v34 = vmul.f32 %v581_v54, %v2564_v14 }
 0x17a   : > { %616 = vadd.xlane.f32.xlu0 %v615_v47  ;;  %607 = vadd.xlane.f32.xlu1 %v606_v49 }
 0x17e   : > { %634 = vadd.xlane.f32.xlu0 %v633_v39  ;;  %625 = vadd.xlane.f32.xlu1 %v624_v60 }
 0x182   : > { %652 = vadd.xlane.f32.xlu0 %v651_v56  ;;  %643 = vadd.xlane.f32.xlu1 %v642_v63 }
 0x186   : > { %670 = vadd.xlane.f32.xlu0 %v669_v43  ;;  %661 = vadd.xlane.f32.xlu1 %v660_v61 }
 0x18a   : > { %688 = vadd.xlane.f32.xlu0 %v687_v2  ;;  %679 = vadd.xlane.f32.xlu1 %v678_v45 }
 0x18e   : > { %706 = vadd.xlane.f32.xlu0 %v705_v55  ;;  %697 = vadd.xlane.f32.xlu1 %v696_v48 }
 0x192   : > { %724 = vadd.xlane.f32.xlu0 %v723_v10  ;;  %715 = vadd.xlane.f32.xlu1 %v714_v12 }
 0x1ff   : > { %v2728_v13 = vpop.xlane.xlu0 %598  ;;  %v2730_v15 = vpop.xlane.xlu1 %589 }
 0x203   : > { %v2732_v14 = vpop.xlane.xlu0 %616  ;;  %v2734_v4 = vpop.xlane.xlu1 %607 }
 0x207   : > { %v2736_v58 = vpop.xlane.xlu0 %634  ;;  %v2738_v9 = vpop.xlane.xlu1 %625 }
 0x20b   : > { %v2740_v50 = vpop.xlane.xlu0 %652  ;;  %v2742_v16 = vpop.xlane.xlu1 %643 }
 0x20f   : > { %v2744_v3 = vpop.xlane.xlu0 %670  ;;  %v2746_v42 = vpop.xlane.xlu1 %661 }
 0x213   : > { %v2748_v11 = vpop.xlane.xlu0 %688  ;;  %v2750_v17 = vpop.xlane.xlu1 %679 }
 0x217   : > { %v2752_v18 = vpop.xlane.xlu0 %706  ;;  %v2754_v19 = vpop.xlane.xlu1 %697 }
 0x21b   : > { %v2756_v20 = vpop.xlane.xlu0 %724  ;;  %v2758_v5 = vpop.xlane.xlu1 %715 }
 0x21c LB: >> { %v3087_v0 = vld [vmem:[#allocation21_spill] sm:$0xff]  ;;  %s765_s25 = sld [smem:[#allocation11 + %s2264_s11]]  ;;  %s766_s14 = sadd.s32 128, %s2264_s11  ;;  %s2264_s11 = sphi %s2764_s11, %s764_s11  }
 0x21d   : >> { %s767_s27 = sld [smem:[#allocation11 + %s766_s14]]  ;;  %s768_s17 = sadd.s32 256, %s2264_s11 }
 0x21e   : >> { %s769_s10 = sld [smem:[#allocation11 + %s768_s17]] }
 0x222   : >> { %p770_p0 = scmp.ge.s32.totalorder %s765_s25, %s2499_s6  ;;  %p771_p2 = scmp.le.s32.totalorder %s765_s25, %s2551_s12 }
 0x223   : >> { %p774_p10 = scmp.ge.s32.totalorder %s767_s27, %s2508_s16  ;;  %p777_p3 = scmp.le.s32.totalorder %s767_s27, %s2555_s7 }
 0x224   : >> { %p772_p4 = pnand %p771_p2, %p770_p0  ;;  %p780_p9 = scmp.ge.s32.totalorder %s769_s10, %s2545_s22 }
 0x225   : >> { %p783_p13 = scmp.le.s32.totalorder %s769_s10, %s2558_s15 }
 0x226   : >> { %p773_p11 = pneg %p772_p4 }
 0x228   : >> { %p775_p1 = pnand %p774_p10, %p773_p11 }
 0x22a   : >> { %p776_p6 = pneg %p775_p1 }
 0x22c   : >> { %p778_p5 = pnand %p777_p3, %p776_p6 }
 0x22e   : >> { %p779_p8 = pneg %p778_p5 }
 0x230   : >> { %p781_p7 = pnand %p780_p9, %p779_p8 }
 0x232   : >> { %p782_p12 = pneg %p781_p7 }
 0x234   : >> { %p784_p0 = pnand %p783_p13, %p782_p12 }
 0x235   : >> { %s789_s30 = sld [smem:[#allocation10 + %s766_s14]] (!%p784_p0)  ;;  %s2282_s25 = smov (!%p784_p0), 127  }
 0x236   : >> { %787 = sbr.rel (%p784_p0) target bundleno = 965 (0x3c5), region = 71  ;;  %s790_s13 = sld [smem:[#allocation10 + %s768_s17]] (!%p784_p0) }
 0x237   : >> { %s2283_s27 = smov (!%p784_p0), 126   ;;  %s788_s14 = sld [smem:[#allocation10 + %s2264_s11]] (!%p784_p0) }
 0x238   : >> { %s791_s17 = sadd.s32 (!%p784_p0), 384, %s2264_s11 }
 0x239   : >> { %s792_s10 = sld [smem:[#allocation10 + %s791_s17]] (!%p784_p0) }
 0x23b   : >> { %v795_v21 = vstv %s789_s30  ;;  %v2281_v38 = vmov 0   ;;  %v2284_v30 = vmov 1   ;;  %v2285_v57 = vmov 2   ;;  %v3088_v8 = vld [vmem:[#allocation22_spill] sm:$0xff]  ;;  %v3089_v23 = vld [vmem:[#allocation23_spill] sm:$0xff]  ;;  %v3090_v24 = vld [vmem:[#allocation24_spill] sm:$0xff] }
 0x23c   : >> { %v796_v22 = vsub.f32 %v3087_v0, %v795_v21  ;;  %v797_v25 = vstv %s790_s13  ;;  %2058 = vset.pattern.permute.xlu1 %v2281_v38  ;;  %2059 = vset.pattern.permute.xlu0 %v2284_v30  ;;  %v2286_v2 = vmov 683565275   ;;  %v2287_v55 = vmov 2475754826  }
 0x23d   : >> { %v798_v27 = vsub.f32 %v3087_v0, %v797_v25  ;;  %v793_v31 = vstv %s788_s14  ;;  %v2288_v12 = vmov 2131351028   ;;  %v2289_v25 = vmov 2102212464  }
 0x23e   : >> { %v800_v28 = vmul.f32 %v796_v22, %v796_v22  ;;  %v794_v32 = vsub.f32 %v3087_v0, %v793_v31 }
 0x23f   : >> { %v806_v29 = vmul.f32 %v798_v27, %v798_v27 }
 0x240   : >> { %802 = vrot.lane.b32.xlu0 %v800_v28, %s2282_s25  ;;  %v799_v33 = vmul.f32 %v794_v32, %v794_v32 }
 0x244   : >> { %808 = vrot.lane.b32.xlu0 %v806_v29, %s2283_s27  ;;  %v2290_v29 = vmov 920167782  }
 0x248   : >> { %956 = vperm.xlu0 %2059, %v796_v22  }
 0x24c   : >> { %2062 = vset.pattern.permute.xlu0 %v2281_v38 }
 0x2b2   : >> { %v803_v35 = vpop.permute.xlu0 %802 }
 0x2b3   : >> { %v805_v36 = vadd.f32 %v803_v35, %v799_v33 }
 0x2b6   : >> { %v809_v40 = vpop.permute.xlu0 %808 }
 0x2b7   : >> { %v811_v41 = vadd.f32 %v809_v40, %v805_v36 }
 0x2b9   : >> { %v812_v59 = vadd.f32 1e-12, %v811_v41 }
 0x2bb   : >> { %2063 = vrsqrt.f32 %v812_v59  ;;  %vm815_vm15 = vcmp.eq.f32.partialorder %v812_v59, inf  ;;  %v818_v46 = vand.u32 2147483648, %v812_v59  ;;  %vm817_vm0 = vcmp.eq.f32.partialorder %v812_v59, 0.0 }
 0x2c8   : >> { %v2064_v53 = vpop.eup %2063 }
 0x2c9   : >> { %v814_v44 = vmul.f32 %v2064_v53, %v812_v59 }
 0x2cb   : >> { %v816_v47 = vsel %vm815_vm15, %v812_v59, %v814_v44 }
 0x2cc   : >> { %v2782_v49 = vsel %vm817_vm0, %v818_v46, %v816_v47 }
 0x2cd   : >> { %971 = vperm.xlu1 %2058, %v2782_v49   ;;  %v2786_v51 = vmul.f32 0.8975979, %v2782_v49  ;;  %vm930_vm14 = vcmp.lt.f32.partialorder %v2782_v49, 3.5 }
 0x2cf   : >> { %v828_v52 = vand.u32 2139095040, %v2786_v51  ;;  %v825_v62 = vand.u32 2147483647, %v2786_v51  ;;  %vm827_vm8 = vcmp.lt.s32.totalorder %v2786_v51, 0  ;;  %vm917_vm13 = vweird.f32 %v2786_v51 }
 0x2d1   : >> { %v829_v39 = vshrl.u32 %v828_v52, 23  ;;  %950 = vperm.xlu1 %2058, %v794_v32   ;;  %v832_v61 = vand.u32 8388607, %v825_v62  ;;  %vm826_vm9 = vcmp.le.f32.partialorder %v825_v62, 0.7853982 }
 0x2d3   : >> { %v1821_v60 = vadd.s32 4294967169, %v829_v39  ;;  %v833_v33 = vor.u32 8388608, %v832_v61 }
 0x2d5   : >> { %v835_v56 = vadd.s32 1, %v1821_v60  ;;  %2060 = vset.pattern.permute.xlu1 %v2285_v57  ;;  %v873_v57 = vshll.u32 %v833_v33, 8 }
 0x2d6   : >> { %963 = vperm.xlu1 %2060, %v798_v27  }
 0x2d7   : >> { %vm836_vm1 = vcmp.gt.s32.totalorder %v835_v56, 0 }
 0x2d8   : >> { %v837_v63 = vsel %vm836_vm1, %v835_v56, 0 }
 0x2d9   : >> { %v839_v43 = vand.u32 31, %v837_v63  ;;  %v838_v54 = vshrl.u32 %v837_v63, 5 }
 0x2da   : >> { %2061 = vset.pattern.permute.xlu1 %v2281_v38  ;;  %v2291_v38 = vmov 1326507024  }
 0x2db   : >> { %v840_v1 = vsub.s32 32, %v839_v43  ;;  %v842_v45 = vshll.u32 %v2286_v2, %v839_v43  ;;  %v845_v48 = vshll.u32 %v2287_v55, %v839_v43  ;;  %v848_v22 = vshll.u32 %v2288_v12, %v839_v43 }
 0x2dc   : >> { %v851_v28 = vshll.u32 %v2289_v25, %v839_v43  ;;  %v854_v31 = vshll.u32 %v2290_v29, %v839_v43  ;;  %vm857_vm2 = vcmp.lt.s32.totalorder %v838_v54, 1  ;;  %vm860_vm3 = vcmp.lt.s32.totalorder %v838_v54, 4 }
 0x2dd   : >> { %v843_v10 = vshrl.u32 %v2287_v55, %v840_v1  ;;  %v846_v21 = vshrl.u32 %v2288_v12, %v840_v1  ;;  %v849_v27 = vshrl.u32 %v2289_v25, %v840_v1  ;;  %v852_v30 = vshrl.u32 %v2290_v29, %v840_v1 }
 0x2de   : >> { %v855_v32 = vshrl.u32 %v2291_v38, %v840_v1  ;;  %v841_v47 = vshrl.u32 %v2286_v2, %v840_v1  ;;  %vm859_vm4 = vcmp.lt.s32.totalorder %v838_v54, 3  ;;  %vm858_vm5 = vcmp.lt.s32.totalorder %v838_v54, 2 }
 0x2df   : >> { %v844_v35 = vor.u32 %v843_v10, %v842_v45  ;;  %v847_v36 = vor.u32 %v846_v21, %v845_v48  ;;  %v850_v40 = vor.u32 %v849_v27, %v848_v22  ;;  %v853_v41 = vor.u32 %v852_v30, %v851_v28 }
 0x2e0   : >> { %v856_v59 = vor.u32 %v855_v32, %v854_v31 }
 0x2e1   : >> { %v862_v53 = vsel %vm860_vm3, %v850_v40, 2102212464  ;;  %v865_v44 = vsel %vm857_vm2, %v844_v35, %v847_v36  ;;  %v869_v46 = vsel %vm857_vm2, %v847_v36, %v850_v40  ;;  %v866_v52 = vsel %vm860_vm3, %v853_v41, 920167782 }
 0x2e2   : >> { %v870_v39 = vsel %vm860_vm3, %v856_v59, 1326507024  ;;  %v867_v60 = vsel %vm859_vm4, %v850_v40, %v866_v52  ;;  %v861_v63 = vsel %vm857_vm2, %v841_v47, %v844_v35  ;;  %v863_v43 = vsel %vm859_vm4, %v847_v36, %v862_v53 }
 0x2e3   : >> { %v871_v56 = vsel %vm859_vm4, %v853_v41, %v870_v39  ;;  %v868_v61 = vsel %vm858_vm5, %v865_v44, %v867_v60  ;;  %v864_v21 = vsel %vm858_vm5, %v861_v63, %v863_v43 }
 0x2e4   : >> { %v872_v45 = vsel %vm858_vm5, %v869_v46, %v871_v56  ;;  %v2795_v10 = vmul.u32.u64.low %v873_v57, %v868_v61  ;;  %v2796_v12 = vmul.u32.u64.high %v873_v57, %v868_v61, %v2795_v10  ;;  %v880_v2 = vmul.u32 %v873_v57, %v864_v21 }
 0x2e5   : >> { %v2792_v55 = vmul.u32.u64.low %v873_v57, %v872_v45  ;;  %v2793_v48 = vmul.u32.u64.high %v873_v57, %v872_v45, %v2792_v55 }
 0x2e6   : >> { %v883_v1 = vadd.s32 1, %v2796_v12 }
 0x2e7   : >> { %vm882_vm6 = vc.u32 %v2793_v48, %v2795_v10  ;;  %v881_v35 = vadd.s32 %v2795_v10, %v2793_v48 }
 0x2e8   : >> { %v884_v54 = vsel %vm882_vm6, %v883_v1, %v2796_v12 }
 0x2e9   : >> { %v885_v22 = vadd.s32 %v884_v54, %v880_v2 }
 0x2eb   : >> { %v886_v25 = vadd.s32 536870912, %v885_v22 }
 0x2ed   : >> { %v887_v27 = vshrl.u32 %v886_v25, 30  ;;  %v820_v25 = vstv %s2264_s11 }
 0x2ee   : >> { %vm821_vm15 = vcmp.ne.s32.totalorder %v3088_v8, %v820_v25  ;;  %vm938_vm2 = vcmp.gt.s32.totalorder %v2506_v6, %v820_v25  ;;  %v1137_v8 = vld [vmem:[#allocation2 + $0xf0] sm:$0xff] }
 0x2ef   : >> { %v888_v28 = vshll.u32 %v887_v27, 30  ;;  %v911_v43 = vsub.s32 4, %v887_v27 }
 0x2f1   : >> { %v889_v29 = vsub.s32 %v885_v22, %v888_v28  ;;  %v912_v61 = vsel %vm827_vm8, %v911_v43, %v887_v27  ;;  %v2292_v28 = vmov 0.0  }
 0x2f2   : >> { %v914_v45 = vsel %vm826_vm9, 0, %v912_v61 }
 0x2f3   : >> { %v891_v30 = vsub.s32 0, %v889_v29  ;;  %v918_v55 = vand.u32 3, %v914_v45 }
 0x2f5   : >> { %v1822_v31 = vmin.u32 %v891_v30, %v889_v29  ;;  %vm923_vm10 = vcmp.eq.s32.totalorder %v918_v55, 2  ;;  %vm920_vm11 = vcmp.eq.s32.totalorder %v918_v55, 0  ;;  %vm919_vm12 = vcmp.lt.s32.totalorder %v918_v55, 2 }
 0x2f7   : >> { %v893_v38 = vclz %v1822_v31  ;;  %v935_v31 = vstv %s792_s10 }
 0x2f9   : >> { %v1823_v32 = vadd.s32 4294967294, %v893_v38 }
 0x2fb   : >> { %vm1824_vm7 = vcmp.lt.s32.totalorder %v1823_v32, 0 }
 0x2fc   : >> { %v896_v33 = vsel %vm1824_vm7, 0, %v1823_v32  ;;  %v1820_v32 = vsel %vm821_vm15, 1.0, %v2292_v28 }
 0x2fd   : >> { %v897_v36 = vsub.s32 32, %v896_v33  ;;  %v901_v40 = vsub.s32 4294967266, %v896_v33  ;;  %v898_v41 = vshll.u32 %v889_v29, %v896_v33  ;;  %v1825_v29 = vsel %vm930_vm14, 1.0, %v2292_v28 }
 0x2ff   : >> { %v899_v59 = vshrl.u32 %v881_v35, %v897_v36  ;;  %v902_v53 = vadd.s32 127, %v901_v40 }
 0x301   : >> { %v900_v44 = vor.u32 %v899_v59, %v898_v41  ;;  %v903_v46 = vshll.u32 %v902_v53, 23  ;;  %v957_v41 = vpop.permute.xlu0 %956 }
 0x302   : >> { %v959_v53 = vmul.f32 %v957_v41, %v2573_v26 }
 0x303   : >> { %v904_v47 = vor.u32 4788187, %v903_v46  ;;  %v907_v39 = vcvt.s32.f32 %v900_v44 }
 0x305   : >> { %v905_v52 = vand.u32 2147483647, %v904_v47 }
 0x307   : >> { %v908_v60 = vmul.f32 %v907_v39, %v905_v52 }
 0x309   : >> { %v909_v56 = vxor.u32 2147483648, %v908_v60 }
 0x30b   : >> { %v910_v57 = vsel %vm827_vm8, %v909_v56, %v908_v60 }
 0x30c   : >> { %v913_v63 = vsel %vm826_vm9, %v2786_v51, %v910_v57 }
 0x30d   : >> { %2065 = vcosq.f32 %v913_v63 }
 0x30e   : >> { %2067 = vsinq.f32 %v913_v63 }
 0x31a   : >> { %v2066_v48 = vpop.eup %2065 }
 0x31b   : >> { %v2068_v10 = vpop.eup %2067  ;;  %v924_v12 = vxor.u32 2147483648, %v2066_v48 }
 0x31c   : >> { %v921_v21 = vxor.u32 2147483648, %v2068_v10 }
 0x31d   : >> { %v925_v1 = vsel %vm923_vm10, %v924_v12, %v2068_v10 }
 0x31e   : >> { %v922_v62 = vsel %vm920_vm11, %v2066_v48, %v921_v21 }
 0x31f   : >> { %v926_v2 = vsel %vm919_vm12, %v922_v62, %v925_v1 }
 0x320   : >> { %v927_v54 = vsel %vm917_vm13, nan, %v926_v2 }
 0x321   : >> { %v928_v22 = vmul.f32 0.5, %v927_v54 }
 0x323   : >> { %v929_v27 = vadd.f32 0.5, %v928_v22 }
 0x325   : >> { %v933_v30 = vmul.f32 %v1825_v29, %v929_v27 }
 0x327   : >> { %v934_v38 = vmul.f32 2.0, %v933_v30 }
 0x329   : >> { %v936_v33 = vmul.f32 %v935_v31, %v934_v38 }
 0x32b   : >> { %v937_v51 = vmul.f32 %v1820_v32, %v936_v33 }
 0x32d   : >> { %943 = vperm.xlu1 %2061, %v937_v51  }
 0x348   : >> { %v972_v35 = vpop.permute.xlu1 %971 }
 0x349   : >> { %v974_v36 = vmul.f32 %v972_v35, %v2581_v37  ;;  %v990_v61 = vadd.f32 %v972_v35, %v2581_v37 }
 0x34b   : >> { %v975_v40 = vadd.f32 1e-12, %v974_v36  ;;  %v991_v55 = vmul.f32 0.5, %v990_v61 }
 0x34c   : >> { %v951_v49 = vpop.permute.xlu1 %950 }
 0x34d   : >> { %2069 = vrcp.f32 %v975_v40  ;;  %v953_v59 = vmul.f32 %v951_v49, %v3089_v23  ;;  %v1827_v10 = vadd.f32 -0.9, %v991_v55  ;;  %v1828_v1 = vadd.f32 -1.55, %v991_v55  ;;  %v1142_v23 = vld [vmem:[#allocation2 + $0x8] sm:$0xff] }
 0x34e   : >> { %v1829_v62 = vadd.f32 -2.2, %v991_v55  ;;  %v1830_v54 = vadd.f32 -2.85, %v991_v55 }
 0x34f   : >> { %v960_v46 = vadd.f32 %v959_v53, %v953_v59  ;;  %v993_v2 = vmul.f32 -8.0, %v1827_v10  ;;  %v1106_v29 = vmul.f32 -8.0, %v1828_v1 }
 0x350   : >> { %v1152_v30 = vmul.f32 -8.0, %v1829_v62  ;;  %v1198_v32 = vmul.f32 -8.0, %v1830_v54 }
 0x351   : >> { %v964_v44 = vpop.permute.xlu1 %963  ;;  %v994_v38 = vmul.f32 %v1827_v10, %v993_v2  ;;  %v1107_v53 = vmul.f32 %v1828_v1, %v1106_v29 }
 0x352   : >> { %v966_v47 = vmul.f32 %v964_v44, %v3090_v24  ;;  %v1147_v24 = vld [vmem:[#allocation2 + $0x78] sm:$0xff] }
 0x353   : >> { %v1108_v1 = vmul.f32 1.442695, %v1107_v53 }
 0x354   : >> { %v967_v52 = vadd.f32 %v966_v47, %v960_v46 }
 0x356   : >> { %v968_v39 = vmul.f32 0.95, %v967_v52  ;;  %v995_v52 = vmul.f32 1.442695, %v994_v38 }
 0x35a   : >> { %v2070_v60 = vpop.eup %2069 }
 0x35b   : >> { %v977_v56 = vmul.f32 %v2070_v60, %v968_v39  ;;  %v1153_v39 = vmul.f32 %v1829_v62, %v1152_v30  ;;  %v1199_v60 = vmul.f32 %v1830_v54, %v1198_v32 }
 0x35d   : >> { %v978_v57 = vmul.f32 %v977_v56, %v977_v56  ;;  %v988_v27 = vmul.f32 0.5, %v977_v56  ;;  %v1154_v38 = vmul.f32 1.442695, %v1153_v39  ;;  %v1200_v54 = vmul.f32 1.442695, %v1199_v60 }
 0x35f   : >> { %v979_v63 = vsub.f32 1.0, %v978_v57  ;;  %v998_v33 = vmul.f32 0.98078525, %v988_v27  ;;  %v1011_v51 = vmul.f32 0.8314696, %v988_v27 }
 0x360   : >> { %v1025_v35 = vmul.f32 0.55557024, %v988_v27  ;;  %v1039_v36 = vmul.f32 0.19509032, %v988_v27  ;;  %v1066_v49 = vmul.f32 -0.55557024, %v988_v27 }
 0x361   : >> { %v980_v43 = vmax.f32 %v979_v63, 0.0  ;;  %v1053_v40 = vmul.f32 -0.19509032, %v988_v27  ;;  %v1079_v41 = vmul.f32 -0.8314696, %v988_v27  ;;  %v999_v57 = vadd.f32 0.5, %v998_v33 }
 0x362   : >> { %v1092_v59 = vmul.f32 -0.98078525, %v988_v27  ;;  %v1012_v63 = vadd.f32 0.5, %v1011_v51  ;;  %v1067_v61 = vadd.f32 0.5, %v1066_v49 }
 0x363   : >> { %2071 = vrsqrt.f32 %v980_v43  ;;  %vm983_vm0 = vcmp.eq.f32.partialorder %v980_v43, inf  ;;  %v986_v21 = vand.u32 2147483648, %v980_v43  ;;  %vm985_vm1 = vcmp.eq.f32.partialorder %v980_v43, 0.0 }
 0x364   : >> { %v1054_v55 = vadd.f32 0.5, %v1053_v40  ;;  %v1093_v10 = vadd.f32 0.5, %v1092_v59  ;;  %2073 = vpow2.f32 %v995_v52 }
 0x365   : >> { %2075 = vpow2.f32 %v1108_v1 }
 0x366   : >> { %2077 = vpow2.f32 %v1154_v38 }
 0x367   : >> { %2079 = vpow2.f32 %v1200_v54 }
 0x370   : >> { %v2072_v45 = vpop.eup %2071 }
 0x371   : >> { %v982_v48 = vmul.f32 %v2072_v45, %v980_v43  ;;  %v1040_v45 = vadd.f32 0.5, %v1039_v36 }
 0x373   : >> { %v984_v12 = vsel %vm983_vm0, %v980_v43, %v982_v48  ;;  %v1026_v43 = vadd.f32 0.5, %v1025_v35  ;;  %v1080_v48 = vadd.f32 0.5, %v1079_v41 }
 0x374   : >> { %v987_v22 = vsel %vm985_vm1, %v986_v21, %v984_v12 }
 0x375   : >> { %v989_v31 = vmul.f32 0.5, %v987_v22 }
 0x377   : >> { %v1000_v44 = vmul.f32 0.19509032, %v989_v31  ;;  %v1013_v46 = vmul.f32 0.55557024, %v989_v31  ;;  %v1027_v47 = vmul.f32 0.8314696, %v989_v31 }
 0x378   : >> { %v1041_v56 = vmul.f32 0.98078525, %v989_v31 }
 0x379   : >> { %v1001_v12 = vadd.f32 %v1000_v44, %v999_v57  ;;  %v1014_v21 = vadd.f32 %v1013_v46, %v1012_v63  ;;  %v1028_v2 = vadd.f32 %v1027_v47, %v1026_v43  ;;  %v1068_v22 = vadd.f32 %v1067_v61, %v1027_v47 }
 0x37a   : >> { %v1042_v27 = vadd.f32 %v1041_v56, %v1040_v45  ;;  %v1055_v29 = vadd.f32 %v1054_v55, %v1041_v56  ;;  %v1081_v7 = vadd.f32 %v1080_v48, %v1013_v46  ;;  %v1094_v62 = vadd.f32 %v1093_v10, %v1000_v44  ;;  %v2074_v55 = vpop.eup %2073 }
 0x37b   : >> { %v1003_v30 = vmul.f32 %v1001_v12, %v1001_v12  ;;  %v1017_v31 = vmul.f32 %v1014_v21, %v1014_v21  ;;  %v1031_v32 = vmul.f32 %v1028_v2, %v1028_v2  ;;  %v1071_v33 = vmul.f32 %v1068_v22, %v1068_v22 }
 0x37c   : >> { %v1045_v51 = vmul.f32 %v1042_v27, %v1042_v27  ;;  %v1058_v35 = vmul.f32 %v1055_v29, %v1055_v29  ;;  %v1084_v36 = vmul.f32 %v1081_v7, %v1081_v7  ;;  %v1097_v49 = vmul.f32 %v1094_v62, %v1094_v62  ;;  %v2076_v29 = vpop.eup %2075 }
 0x37d   : >> { %v1004_v40 = vmul.f32 %v1003_v30, %v1003_v30  ;;  %v1018_v41 = vmul.f32 %v1017_v31, %v1017_v31  ;;  %v1032_v59 = vmul.f32 %v1031_v32, %v1031_v32  ;;  %v1072_v53 = vmul.f32 %v1071_v33, %v1071_v33  ;;  %v2078_v62 = vpop.eup %2077 }
 0x37e   : >> { %v1046_v46 = vmul.f32 %v1045_v51, %v1045_v51  ;;  %v1059_v44 = vmul.f32 %v1058_v35, %v1058_v35  ;;  %v1085_v47 = vmul.f32 %v1084_v36, %v1084_v36  ;;  %v1098_v52 = vmul.f32 %v1097_v49, %v1097_v49  ;;  %v2080_v30 = vpop.eup %2079  ;;  %v1002_v49 = vld [vmem:[#allocation2 + $0xb0] sm:$0xff] }
 0x37f   : >> { %v1005_v39 = vmul.f32 %v1004_v40, %v1004_v40  ;;  %v1019_v60 = vmul.f32 %v1018_v41, %v1018_v41  ;;  %v1033_v56 = vmul.f32 %v1032_v59, %v1032_v59  ;;  %v1073_v57 = vmul.f32 %v1072_v53, %v1072_v53  ;;  %v1016_v40 = vld [vmem:[#allocation2] sm:$0xff]  ;;  %v1030_v53 = vld [vmem:[#allocation2 + $0xd8] sm:$0xff] }
 0x380   : >> { %v1047_v63 = vmul.f32 %v1046_v46, %v1046_v46  ;;  %v1060_v7 = vmul.f32 %v1059_v44, %v1059_v44  ;;  %v1086_v43 = vmul.f32 %v1085_v47, %v1085_v47  ;;  %v1099_v61 = vmul.f32 %v1098_v52, %v1098_v52  ;;  %v1044_v46 = vld [vmem:[#allocation2 + $0x18] sm:$0xff]  ;;  %v1057_v44 = vld [vmem:[#allocation2 + $0x50] sm:$0xff] }
 0x381   : >> { %v1826_v45 = vsel %vm938_vm2, 1.0, %v2292_v28  ;;  %v1006_v48 = vmul.f32 %v1005_v39, %v1005_v39  ;;  %v1020_v10 = vmul.f32 %v1019_v60, %v1019_v60  ;;  %v1034_v12 = vmul.f32 %v1033_v56, %v1033_v56  ;;  %v1070_v60 = vld [vmem:[#allocation2 + $0x68] sm:$0xff]  ;;  %v1083_v56 = vld [vmem:[#allocation2 + $0x30] sm:$0xff] }
 0x382   : >> { %v1074_v21 = vmul.f32 %v1073_v57, %v1073_v57  ;;  %v1048_v22 = vmul.f32 %v1047_v63, %v1047_v63  ;;  %v1061_v1 = vmul.f32 %v1060_v7, %v1060_v7  ;;  %v1087_v27 = vmul.f32 %v1086_v43, %v1086_v43  ;;  %v1096_v57 = vld [vmem:[#allocation2 + $0x48] sm:$0xff] }
 0x383   : >> { %v1100_v38 = vmul.f32 %v1099_v61, %v1099_v61  ;;  %v2825_v31 = vmul.f32 %v1006_v48, %v1006_v48  ;;  %v2827_v32 = vmul.f32 %v1020_v10, %v1020_v10  ;;  %v2829_v28 = vmul.f32 %v1034_v12, %v1034_v12  ;;  %v1112_v12 = vld [vmem:[#allocation2 + $0x80] sm:$0xff] }
 0x384   : >> { %v2831_v33 = vmul.f32 %v1074_v21, %v1074_v21  ;;  %v2833_v51 = vmul.f32 %v1048_v22, %v1048_v22  ;;  %v2835_v35 = vmul.f32 %v1061_v1, %v1061_v1  ;;  %v2837_v36 = vmul.f32 %v1087_v27, %v1087_v27  ;;  %v1117_v21 = vld [vmem:[#allocation2 + $0x88] sm:$0xff] }
 0x385   : >> { %v2839_v59 = vmul.f32 %v1100_v38, %v1100_v38  ;;  %v1132_v38 = vld [vmem:[#allocation2 + $0x60] sm:$0xff] }
 0x3a8   : >> { %v944_v2 = vpop.permute.xlu1 %943 }
 0x3a9   : >> { %v946_v25 = vmul.f32 %v1826_v45, %v944_v2 }
 0x3ab   : >> { %v947_v54 = vmul.f32 %v946_v25, %v2726_v34  ;;  %v1122_v25 = vld [vmem:[#allocation2 + $0xe8] sm:$0xff] }
 0x3ad   : >> { %v997_v41 = vmul.f32 %v2074_v55, %v947_v54  ;;  %v1110_v47 = vmul.f32 %v2076_v29, %v947_v54  ;;  %v2841_v52 = vmul.f32 %v2078_v62, %v947_v54  ;;  %v2843_v39 = vmul.f32 %v2080_v30, %v947_v54  ;;  %v1127_v29 = vld [vmem:[#allocation2 + $0xb8] sm:$0xff] }
 0x3af   : >> { %v1008_v63 = vmul.f32 %v2825_v31, %v997_v41  ;;  %v1022_v7 = vmul.f32 %v2827_v32, %v997_v41  ;;  %v1036_v43 = vmul.f32 %v2829_v28, %v997_v41  ;;  %v1050_v61 = vmul.f32 %v2833_v51, %v997_v41 }
 0x3b0   : >> { %v1063_v45 = vmul.f32 %v2835_v35, %v997_v41  ;;  %v1076_v55 = vmul.f32 %v2831_v33, %v997_v41  ;;  %v1089_v48 = vmul.f32 %v2837_v36, %v997_v41  ;;  %v1102_v10 = vmul.f32 %v2839_v59, %v997_v41 }
 0x3b1   : >> { %v1009_v2 = vadd.f32 %v1008_v63, %v1002_v49  ;;  %v1023_v22 = vadd.f32 %v1022_v7, %v1016_v40  ;;  %v1037_v1 = vadd.f32 %v1036_v43, %v1030_v53  ;;  %v1051_v27 = vadd.f32 %v1050_v61, %v1044_v46  ;;  %v1163_v63 = vld [vmem:[#allocation2 + $0x58] sm:$0xff] }
 0x3b2   : >> { %v1064_v62 = vadd.f32 %v1063_v45, %v1057_v44  ;;  %v1077_v54 = vadd.f32 %v1076_v55, %v1070_v60  ;;  %v1090_v30 = vadd.f32 %v1089_v48, %v1083_v56  ;;  %v1103_v0 = vadd.f32 %v1102_v10, %v1096_v57  ;;  %v1158_v57 = vld [vmem:[#allocation2 + $0x38] sm:$0xff]  ;;  %v1168_v55 = vld [vmem:[#allocation2 + $0x40] sm:$0xff]  ;;  %v1173_v48 = vld [vmem:[#allocation2 + $0xc8] sm:$0xff] }
 0x3b3   : >> { %1010 = vst [vmem:[#allocation2 + $0xb0] sm:$0xff] %v1009_v2  ;;  %1024 = vst [vmem:[#allocation2] sm:$0xff] %v1023_v22  ;;  %v1113_v41 = vmul.f32 %v1110_v47, %v2825_v31  ;;  %v1118_v49 = vmul.f32 %v1110_v47, %v2827_v32  ;;  %v1123_v40 = vmul.f32 %v1110_v47, %v2829_v28  ;;  %v1178_v10 = vld [vmem:[#allocation2 + $0xe0] sm:$0xff] }
 0x3b4   : >> { %1038 = vst [vmem:[#allocation2 + $0xd8] sm:$0xff] %v1037_v1  ;;  %1052 = vst [vmem:[#allocation2 + $0x18] sm:$0xff] %v1051_v27  ;;  %v1128_v53 = vmul.f32 %v1110_v47, %v2833_v51  ;;  %v1133_v46 = vmul.f32 %v1110_v47, %v2835_v35  ;;  %v1138_v44 = vmul.f32 %v1110_v47, %v2831_v33  ;;  %v1183_v27 = vld [vmem:[#allocation2 + $0x90] sm:$0xff] }
 0x3b5   : >> { %1065 = vst [vmem:[#allocation2 + $0x50] sm:$0xff] %v1064_v62  ;;  %1078 = vst [vmem:[#allocation2 + $0x68] sm:$0xff] %v1077_v54  ;;  %v1143_v60 = vmul.f32 %v1110_v47, %v2837_v36  ;;  %v1148_v56 = vmul.f32 %v1110_v47, %v2839_v59  ;;  %v1114_v7 = vadd.f32 %v1113_v41, %v1112_v12  ;;  %v1188_v62 = vld [vmem:[#allocation2 + $0x70] sm:$0xff]  ;;  %v1193_v54 = vld [vmem:[#allocation2 + $0xc0] sm:$0xff] }
 0x3b6   : >> { %1091 = vst [vmem:[#allocation2 + $0x30] sm:$0xff] %v1090_v30  ;;  %1104 = vst [vmem:[#allocation2 + $0x48] sm:$0xff] %v1103_v0  ;;  %v1119_v43 = vadd.f32 %v1118_v49, %v1117_v21  ;;  %v1124_v61 = vadd.f32 %v1123_v40, %v1122_v25  ;;  %v1129_v45 = vadd.f32 %v1128_v53, %v1127_v29  ;;  %v1209_v30 = vld [vmem:[#allocation2 + $0xd0] sm:$0xff] }
 0x3b7   : >> { %v1134_v2 = vadd.f32 %v1133_v46, %v1132_v38  ;;  %v1139_v22 = vadd.f32 %v1138_v44, %v1137_v8  ;;  %v1144_v0 = vadd.f32 %v1143_v60, %v1142_v23  ;;  %v1149_v1 = vadd.f32 %v1148_v56, %v1147_v24  ;;  %1115 = vst [vmem:[#allocation2 + $0x80] sm:$0xff] %v1114_v7  ;;  %v1204_v38 = vld [vmem:[#allocation2 + $0xa8] sm:$0xff]  ;;  %v1214_v46 = vld [vmem:[#allocation2 + $0x10] sm:$0xff]  ;;  %v1224_v60 = vld [vmem:[#allocation2 + $0xa0] sm:$0xff] }
 0x3b8   : >> { %1120 = vst [vmem:[#allocation2 + $0x88] sm:$0xff] %v1119_v43  ;;  %1125 = vst [vmem:[#allocation2 + $0xe8] sm:$0xff] %v1124_v61  ;;  %v1159_v47 = vmul.f32 %v2841_v52, %v2825_v31  ;;  %v1164_v12 = vmul.f32 %v2841_v52, %v2827_v32  ;;  %v1169_v21 = vmul.f32 %v2841_v52, %v2829_v28  ;;  %v1219_v44 = vld [vmem:[#allocation2 + $0x28] sm:$0xff] }
 0x3b9   : >> { %1130 = vst [vmem:[#allocation2 + $0xb8] sm:$0xff] %v1129_v45  ;;  %v1174_v8 = vmul.f32 %v2841_v52, %v2833_v51  ;;  %1135 = vst [vmem:[#allocation2 + $0x60] sm:$0xff] %v1134_v2  ;;  %v1179_v23 = vmul.f32 %v2841_v52, %v2835_v35  ;;  %v1184_v24 = vmul.f32 %v2841_v52, %v2831_v33  ;;  %v1229_v45 = vld [vmem:[#allocation2 + $0xf8] sm:$0xff]  ;;  %v1234_v2 = vld [vmem:[#allocation2 + $0x20] sm:$0xff] }
 0x3ba   : >> { %1140 = vst [vmem:[#allocation2 + $0xf0] sm:$0xff] %v1139_v22  ;;  %1145 = vst [vmem:[#allocation2 + $0x8] sm:$0xff] %v1144_v0  ;;  %v1189_v25 = vmul.f32 %v2841_v52, %v2837_v36  ;;  %v1194_v29 = vmul.f32 %v2841_v52, %v2839_v59  ;;  %v1160_v41 = vadd.f32 %v1159_v47, %v1158_v57  ;;  %v1239_v22 = vld [vmem:[#allocation2 + $0x98] sm:$0xff] }
 0x3bb   : >> { %1150 = vst [vmem:[#allocation2 + $0x78] sm:$0xff] %v1149_v1  ;;  %v1165_v49 = vadd.f32 %v1164_v12, %v1163_v63  ;;  %v1170_v40 = vadd.f32 %v1169_v21, %v1168_v55  ;;  %v1175_v53 = vadd.f32 %v1174_v8, %v1173_v48  ;;  %v1180_v56 = vadd.f32 %v1179_v23, %v1178_v10 }
 0x3bc   : >> { %v1185_v7 = vadd.f32 %v1184_v24, %v1183_v27  ;;  %v1190_v43 = vadd.f32 %v1189_v25, %v1188_v62  ;;  %v1195_v61 = vadd.f32 %v1194_v29, %v1193_v54  ;;  %1161 = vst [vmem:[#allocation2 + $0x38] sm:$0xff] %v1160_v41  ;;  %v1205_v52 = vmul.f32 %v2843_v39, %v2825_v31 }
 0x3bd   : >> { %1166 = vst [vmem:[#allocation2 + $0x58] sm:$0xff] %v1165_v49  ;;  %1171 = vst [vmem:[#allocation2 + $0x40] sm:$0xff] %v1170_v40  ;;  %v1210_v57 = vmul.f32 %v2843_v39, %v2827_v32  ;;  %v1215_v63 = vmul.f32 %v2843_v39, %v2829_v28  ;;  %v1220_v55 = vmul.f32 %v2843_v39, %v2833_v51 }
 0x3be   : >> { %1176 = vst [vmem:[#allocation2 + $0xc8] sm:$0xff] %v1175_v53  ;;  %1181 = vst [vmem:[#allocation2 + $0xe0] sm:$0xff] %v1180_v56  ;;  %v1225_v48 = vmul.f32 %v2843_v39, %v2835_v35  ;;  %v1230_v10 = vmul.f32 %v2843_v39, %v2831_v33  ;;  %v1235_v31 = vmul.f32 %v2843_v39, %v2837_v36 }
 0x3bf   : >> { %1186 = vst [vmem:[#allocation2 + $0x90] sm:$0xff] %v1185_v7  ;;  %1191 = vst [vmem:[#allocation2 + $0x70] sm:$0xff] %v1190_v43  ;;  %v1240_v32 = vmul.f32 %v2843_v39, %v2839_v59  ;;  %v1206_v28 = vadd.f32 %v1205_v52, %v1204_v38  ;;  %v1211_v0 = vadd.f32 %v1210_v57, %v1209_v30 }
 0x3c0   : >> { %1196 = vst [vmem:[#allocation2 + $0xc0] sm:$0xff] %v1195_v61  ;;  %v1216_v1 = vadd.f32 %v1215_v63, %v1214_v46  ;;  %v1221_v51 = vadd.f32 %v1220_v55, %v1219_v44  ;;  %v1226_v27 = vadd.f32 %v1225_v48, %v1224_v60  ;;  %v1231_v62 = vadd.f32 %v1230_v10, %v1229_v45 }
 0x3c1   : >> { %v1236_v54 = vadd.f32 %v1235_v31, %v1234_v2  ;;  %v1241_v47 = vadd.f32 %v1240_v32, %v1239_v22  ;;  %1207 = vst [vmem:[#allocation2 + $0xa8] sm:$0xff] %v1206_v28  ;;  %1212 = vst [vmem:[#allocation2 + $0xd0] sm:$0xff] %v1211_v0 }
 0x3c2   : >> { %1217 = vst [vmem:[#allocation2 + $0x10] sm:$0xff] %v1216_v1  ;;  %1222 = vst [vmem:[#allocation2 + $0x28] sm:$0xff] %v1221_v51 }
 0x3c3   : >> { %1227 = vst [vmem:[#allocation2 + $0xa0] sm:$0xff] %v1226_v27  ;;  %1232 = vst [vmem:[#allocation2 + $0xf8] sm:$0xff] %v1231_v62 }
 0x3c4   : >> { %1237 = vst [vmem:[#allocation2 + $0x20] sm:$0xff] %v1236_v54  ;;  %1242 = vst [vmem:[#allocation2 + $0x98] sm:$0xff] %v1241_v47 }
 0x3c5 PF: >> { %s764_s11 = sadd.s32 1, %s2264_s11  }
 0x3c6   : >> { %p761_p2 = scmp.ge.s32.totalorder %s764_s11, 16  }
 0x3c7   : > { %v1243_v33 = vld [vmem:[#allocation2 + $0xb0] sm:$0xff] (%p761_p2)  ;;  %v1253_v35 = vld [vmem:[#allocation2 + $0xd8] sm:$0xff] (%p761_p2)  ;;  %v1248_v36 = vld [vmem:[#allocation2] sm:$0xff] (%p761_p2)  ;;  %vm1402_vm3 = vcmp.eq.s32.totalorder (%p761_p2), %v2506_v6, 0  ;;  %vm1407_vm4 = vcmp.eq.s32.totalorder (%p761_p2), %v2506_v6, 1  ;;  %v3091_v57 = vmov (%p761_p2), 0.0  }
 0x3c8   : > { %763 = sbr.rel (!%p761_p2) target bundleno = 540 (0x21c), region = 176  ;;  %1244 = vadd.xlane.f32.xlu0 (%p761_p2), %v1243_v33  ;;  %1254 = vadd.xlane.f32.xlu1 (%p761_p2), %v1253_v35  ;;  %v1258_v59 = vld [vmem:[#allocation2 + $0x18] sm:$0xff] (%p761_p2)  ;;  %v1263_v39 = vld [vmem:[#allocation2 + $0x50] sm:$0xff] (%p761_p2)  ;;  %v1268_v12 = vld [vmem:[#allocation2 + $0x68] sm:$0xff] (%p761_p2)  ;;  %v1831_v63 = vsel (%p761_p2), %vm1402_vm3, 1.0, %v3091_v57  ;;  %v1832_v55 = vsel (%p761_p2), %vm1407_vm4, 1.0, %v3091_v57 }
 0x3c9   : > { %v1273_v21 = vld [vmem:[#allocation2 + $0x30] sm:$0xff] (%p761_p2)  ;;  %v1278_v8 = vld [vmem:[#allocation2 + $0x48] sm:$0xff] (%p761_p2)  ;;  %v1283_v23 = vld [vmem:[#allocation2 + $0x80] sm:$0xff] (%p761_p2)  ;;  %vm1412_vm5 = vcmp.eq.s32.totalorder (%p761_p2), %v2506_v6, 2  ;;  %v1405_v48 = vmul.f32 (%p761_p2), %v1831_v63, %v2730_v15  ;;  %v1410_v10 = vmul.f32 (%p761_p2), %v1832_v55, %v2728_v13  ;;  %vm1417_vm6 = vcmp.eq.s32.totalorder (%p761_p2), %v2506_v6, 3  ;;  %s1880_s6 = sshll.u32 (%p761_p2), %s2345_s24, 7 }
 0x3ca   : > { %v1288_v24 = vld [vmem:[#allocation2 + $0x88] sm:$0xff] (%p761_p2)  ;;  %v1298_v37 = vld [vmem:[#allocation2 + $0xb8] sm:$0xff] (%p761_p2)  ;;  %v1303_v34 = vld [vmem:[#allocation2 + $0x60] sm:$0xff] (%p761_p2)  ;;  %v1833_v31 = vsel (%p761_p2), %vm1412_vm5, 1.0, %v3091_v57  ;;  %v1834_v0 = vsel (%p761_p2), %vm1417_vm6, 1.0, %v3091_v57  ;;  %vm1422_vm7 = vcmp.eq.s32.totalorder (%p761_p2), %v2506_v6, 4  ;;  %s1655_s7 = scalar_lea.hbm (%p761_p2), %s3050_s5, %s1880_s6 }
 0x3cb   : > { %v1293_v26 = vld [vmem:[#allocation2 + $0xe8] sm:$0xff] (%p761_p2)  ;;  %v1308_v25 = vld [vmem:[#allocation2 + $0xf0] sm:$0xff] (%p761_p2)  ;;  %v1318_v38 = vld [vmem:[#allocation2 + $0x78] sm:$0xff] (%p761_p2)  ;;  %v1411_v32 = vadd.f32 (%p761_p2), %v1410_v10, %v1405_v48  ;;  %v1415_v28 = vmul.f32 (%p761_p2), %v1833_v31, %v2734_v4  ;;  %v1420_v51 = vmul.f32 (%p761_p2), %v1834_v0, %v2732_v14  ;;  %v1835_v27 = vsel (%p761_p2), %vm1422_vm7, 1.0, %v3091_v57  ;;  %s1657_s16 = sshll.u32 (%p761_p2), %s2762_s28, 4  ;;  %s1644_s15 = scalar_lea.sflag (%p761_p2), [#allocation5], %s2466_s23  ;;  %s1658_s16 = int_to_ptr.vmem [resolvable:$true] %s1657_s16 }
 0x3cc   : > { %1249 = vadd.xlane.f32.xlu0 (%p761_p2), %v1248_v36  ;;  %1259 = vadd.xlane.f32.xlu1 (%p761_p2), %v1258_v59  ;;  %v1313_v29 = vld [vmem:[#allocation2 + $0x8] sm:$0xff] (%p761_p2)  ;;  %v1323_v30 = vld [vmem:[#allocation2 + $0x38] sm:$0xff] (%p761_p2)  ;;  %v1333_v49 = vld [vmem:[#allocation2 + $0x40] sm:$0xff] (%p761_p2)  ;;  %vm1427_vm8 = vcmp.eq.s32.totalorder (%p761_p2), %v2506_v6, 5  ;;  %v1425_v13 = vmul.f32 (%p761_p2), %v1835_v27, %v2738_v9  ;;  %vm1432_vm9 = vcmp.eq.s32.totalorder (%p761_p2), %v2506_v6, 6  ;;  %vm1437_vm10 = vcmp.eq.s32.totalorder (%p761_p2), %v2506_v6, 7 }
 0x3cd   : > { %v1328_v41 = vld [vmem:[#allocation2 + $0x58] sm:$0xff]  ;;  %v1338_v40 = vld [vmem:[#allocation2 + $0xc8] sm:$0xff]  ;;  %v1343_v53 = vld [vmem:[#allocation2 + $0xe0] sm:$0xff]  ;;  %v1416_v1 = vadd.f32 %v1415_v28, %v1411_v32  ;;  %v1836_v62 = vsel %vm1427_vm8, 1.0, %v3091_v57  ;;  %v1837_v47 = vsel %vm1432_vm9, 1.0, %v3091_v57  ;;  %v1838_v35 = vsel %vm1437_vm10, 1.0, %v3091_v57 }
 0x3ce   : > { %v1348_v46 = vld [vmem:[#allocation2 + $0x90] sm:$0xff]  ;;  %v1358_v60 = vld [vmem:[#allocation2 + $0xc0] sm:$0xff]  ;;  %v1363_v56 = vld [vmem:[#allocation2 + $0xa8] sm:$0xff]  ;;  %v1430_v4 = vmul.f32 %v1836_v62, %v2736_v58  ;;  %v1435_v14 = vmul.f32 %v1837_v47, %v2742_v16  ;;  %vm1442_vm11 = vcmp.eq.s32.totalorder %v2506_v6, 8  ;;  %v1440_v9 = vmul.f32 %v1838_v35, %v2740_v50  ;;  %s2176_s11 = scalar_lea.vmem %s1658_s16, 128  ;;  %p3092_p10 = scmp.ne.s32.totalorder %s3066_s8, 0 }
 0x3cf   : > { %v1353_v44 = vld [vmem:[#allocation2 + $0x70] sm:$0xff]  ;;  %v1378_v61 = vld [vmem:[#allocation2 + $0x28] sm:$0xff]  ;;  %v1383_v45 = vld [vmem:[#allocation2 + $0xa0] sm:$0xff]  ;;  %v1421_v15 = vadd.f32 %v1420_v51, %v1416_v1  ;;  %v1839_v59 = vsel %vm1442_vm11, 1.0, %v3091_v57  ;;  %vm1447_vm12 = vcmp.eq.s32.totalorder %v2506_v6, 9  ;;  %vm1452_vm13 = vcmp.eq.s32.totalorder %v2506_v6, 10  ;;  %p2177_p4 = scmp.ne.s32.totalorder %s1658_s16, %s2176_s11 }
 0x3d0   : > { %1264 = vadd.xlane.f32.xlu0 %v1263_v39  ;;  %1269 = vadd.xlane.f32.xlu1 %v1268_v12  ;;  %v1368_v7 = vld [vmem:[#allocation2 + $0xd0] sm:$0xff]  ;;  %v1388_v2 = vld [vmem:[#allocation2 + $0xf8] sm:$0xff]  ;;  %v1393_v22 = vld [vmem:[#allocation2 + $0x20] sm:$0xff]  ;;  %v1445_v58 = vmul.f32 %v1839_v59, %v2746_v42  ;;  %v1840_v12 = vsel %vm1447_vm12, 1.0, %v3091_v57  ;;  %vm1457_vm14 = vcmp.eq.s32.totalorder %v2506_v6, 11  ;;  %vm1462_vm15 = vcmp.eq.s32.totalorder %v2506_v6, 12 }
 0x3d1   : > { %v1373_v43 = vld [vmem:[#allocation2 + $0x10] sm:$0xff]  ;;  %v1398_v52 = vld [vmem:[#allocation2 + $0x98] sm:$0xff]  ;;  %v1426_v54 = vadd.f32 %v1425_v13, %v1421_v15  ;;  %v1450_v16 = vmul.f32 %v1840_v12, %v2744_v3  ;;  %vm1467_vm0 = vcmp.eq.s32.totalorder %v2506_v6, 13  ;;  %vm1472_vm1 = vcmp.eq.s32.totalorder %v2506_v6, 14  ;;  %p2178_p11 = pnand %p2177_p4, %p3092_p10  ;;  %s2293_s30 = smov [#allocation14]  }
 0x3d2   : > { %vm1477_vm2 = vcmp.eq.s32.totalorder %v2506_v6, 15  ;;  %vm1482_vm3 = vcmp.eq.s32.totalorder %v2506_v6, 16  ;;  %vm1487_vm4 = vcmp.eq.s32.totalorder %v2506_v6, 17  ;;  %vm1492_vm5 = vcmp.eq.s32.totalorder %v2506_v6, 18  ;;  %s2180_s13 = sshll.u32 %s2293_s30, 4  ;;  %s2181_s13 = int_to_ptr.vmem [resolvable:$false] %s2180_s13 }
 0x3d3   : > { %v1431_v33 = vadd.f32 %v1430_v4, %v1426_v54  ;;  %vm1497_vm6 = vcmp.eq.s32.totalorder %v2506_v6, 19  ;;  %vm1502_vm7 = vcmp.eq.s32.totalorder %v2506_v6, 20  ;;  %vm1507_vm8 = vcmp.eq.s32.totalorder %v2506_v6, 21  ;;  %p2179_p1 = pneg %p2178_p11  ;;  %s2182_s25 = scalar_lea.vmem %s2181_s13, 256 }
 0x3d4   : > { %1274 = vadd.xlane.f32.xlu0 %v1273_v21  ;;  %1279 = vadd.xlane.f32.xlu1 %v1278_v8  ;;  %v1841_v8 = vsel %vm1452_vm13, 1.0, %v3091_v57  ;;  %vm1512_vm9 = vcmp.eq.s32.totalorder %v2506_v6, 22  ;;  %v1852_v55 = vsel %vm1507_vm8, 1.0, %v3091_v57  ;;  %vm1517_vm10 = vcmp.eq.s32.totalorder %v2506_v6, 23  ;;  %p2183_p3 = scmp.lt.s32.totalorder %s1658_s16, %s2181_s13  ;;  %p2184_p6 = scmp.lt.s32.totalorder %s2182_s25, %s2176_s11 }
 0x3d5   : > { %v1436_v36 = vadd.f32 %v1435_v14, %v1431_v33  ;;  %v1455_v50 = vmul.f32 %v1841_v8, %v2750_v17  ;;  %v1853_v32 = vsel %vm1512_vm9, 1.0, %v3091_v57  ;;  %vm1522_vm11 = vcmp.eq.s32.totalorder %v2506_v6, 24 }
 0x3d6   : > { %v1854_v51 = vsel %vm1517_vm10, 1.0, %v3091_v57  ;;  %vm1527_vm12 = vcmp.eq.s32.totalorder %v2506_v6, 25  ;;  %v1855_v62 = vsel %vm1522_vm11, 1.0, %v3091_v57  ;;  %vm1532_vm13 = vcmp.eq.s32.totalorder %v2506_v6, 26  ;;  %p2185_p5 = por %p2184_p6, %p2183_p3 }
 0x3d7   : > { %v1441_v39 = vadd.f32 %v1440_v9, %v1436_v36  ;;  %v1856_v33 = vsel %vm1527_vm12, 1.0, %v3091_v57  ;;  %v1857_v9 = vsel %vm1532_vm13, 1.0, %v3091_v57  ;;  %vm1587_vm8 = vcmp.eq.s32.totalorder %v2506_v6, 37 }
 0x3d8   : > { %1284 = vadd.xlane.f32.xlu0 %v1283_v23  ;;  %1289 = vadd.xlane.f32.xlu1 %v1288_v24  ;;  %v1842_v24 = vsel %vm1457_vm14, 1.0, %v3091_v57  ;;  %vm1537_vm14 = vcmp.eq.s32.totalorder %v2506_v6, 27  ;;  %vm1592_vm9 = vcmp.eq.s32.totalorder %v2506_v6, 38  ;;  %vm1597_vm10 = vcmp.eq.s32.totalorder %v2506_v6, 39  ;;  %p2186_p9 = pnand %p2185_p5, %p2179_p1 }
 0x3d9   : > { %v1446_v21 = vadd.f32 %v1445_v58, %v1441_v39  ;;  %v1460_v42 = vmul.f32 %v1842_v24, %v2748_v11  ;;  %v1858_v12 = vsel %vm1537_vm14, 1.0, %v3091_v57  ;;  %vm1602_vm11 = vcmp.eq.s32.totalorder %v2506_v6, 40 }
 0x3da   : > { %vm1607_vm12 = vcmp.eq.s32.totalorder %v2506_v6, 41  ;;  %vm1612_vm13 = vcmp.eq.s32.totalorder %v2506_v6, 42  ;;  %vm1617_vm14 = vcmp.eq.s32.totalorder %v2506_v6, 43 }
 0x3db   : > { %v1451_v23 = vadd.f32 %v1450_v16, %v1446_v21 }
 0x3dc   : > { %1294 = vadd.xlane.f32.xlu0 %v1293_v26  ;;  %1299 = vadd.xlane.f32.xlu1 %v1298_v37  ;;  %v1843_v37 = vsel %vm1462_vm15, 1.0, %v3091_v57  ;;  %vm1542_vm15 = vcmp.eq.s32.totalorder %v2506_v6, 28 }
 0x3dd   : > { %v1456_v26 = vadd.f32 %v1455_v50, %v1451_v23  ;;  %v1465_v3 = vmul.f32 %v1843_v37, %v2754_v19  ;;  %v1859_v23 = vsel %vm1542_vm15, 1.0, %v3091_v57  ;;  %vm1622_vm15 = vcmp.eq.s32.totalorder %v2506_v6, 44 }
 0x3e0   : > { %1304 = vadd.xlane.f32.xlu0 %v1303_v34  ;;  %1309 = vadd.xlane.f32.xlu1 %v1308_v25  ;;  %v1461_v34 = vadd.f32 %v1460_v42, %v1456_v26  ;;  %v1844_v25 = vsel %vm1467_vm0, 1.0, %v3091_v57  ;;  %vm1547_vm0 = vcmp.eq.s32.totalorder %v2506_v6, 29 }
 0x3e1   : > { %v1470_v17 = vmul.f32 %v1844_v25, %v2752_v18  ;;  %v1860_v42 = vsel %vm1547_vm0, 1.0, %v3091_v57  ;;  %vm1627_vm0 = vcmp.eq.s32.totalorder %v2506_v6, 45 }
 0x3e4   : > { %1314 = vadd.xlane.f32.xlu0 %v1313_v29  ;;  %1319 = vadd.xlane.f32.xlu1 %v1318_v38  ;;  %v1466_v29 = vadd.f32 %v1465_v3, %v1461_v34  ;;  %v1845_v38 = vsel %vm1472_vm1, 1.0, %v3091_v57  ;;  %vm1552_vm1 = vcmp.eq.s32.totalorder %v2506_v6, 30 }
 0x3e5   : > { %v1475_v11 = vmul.f32 %v1845_v38, %v2758_v5  ;;  %v1848_v5 = vsel %vm1487_vm4, 1.0, %v3091_v57  ;;  %v1861_v25 = vsel %vm1552_vm1, 1.0, %v3091_v57  ;;  %vm1567_vm4 = vcmp.eq.s32.totalorder %v2506_v6, 33 }
 0x3e6   : > { %vm1632_vm1 = vcmp.eq.s32.totalorder %v2506_v6, 46 }
 0x3e8   : > { %1324 = vadd.xlane.f32.xlu0 %v1323_v30  ;;  %1329 = vadd.xlane.f32.xlu1 %v1328_v41  ;;  %v1471_v30 = vadd.f32 %v1470_v17, %v1466_v29  ;;  %v1846_v41 = vsel %vm1477_vm2, 1.0, %v3091_v57  ;;  %vm1557_vm2 = vcmp.eq.s32.totalorder %v2506_v6, 31 }
 0x3e9   : > { %v1480_v19 = vmul.f32 %v1846_v41, %v2756_v20  ;;  %v1850_v20 = vsel %vm1497_vm6, 1.0, %v3091_v57  ;;  %vm1577_vm6 = vcmp.eq.s32.totalorder %v2506_v6, 35 }
 0x3ec   : > { %1334 = vadd.xlane.f32.xlu0 %v1333_v49  ;;  %1339 = vadd.xlane.f32.xlu1 %v1338_v40  ;;  %v1476_v49 = vadd.f32 %v1475_v11, %v1471_v30  ;;  %v1847_v40 = vsel %vm1482_vm3, 1.0, %v3091_v57  ;;  %vm1562_vm3 = vcmp.eq.s32.totalorder %v2506_v6, 32  ;;  %v1862_v30 = vsel %vm1557_vm2, 1.0, %v3091_v57 }
 0x3ed   : > { %vm1637_vm2 = vcmp.eq.s32.totalorder %v2506_v6, 47 }
 0x3f0   : > { %1344 = vadd.xlane.f32.xlu0 %v1343_v53  ;;  %1349 = vadd.xlane.f32.xlu1 %v1348_v46  ;;  %v1481_v46 = vadd.f32 %v1480_v19, %v1476_v49  ;;  %v1863_v19 = vsel %vm1562_vm3, 1.0, %v3091_v57 }
 0x3f4   : > { %1354 = vadd.xlane.f32.xlu0 %v1353_v44  ;;  %1359 = vadd.xlane.f32.xlu1 %v1358_v60  ;;  %v1849_v60 = vsel %vm1492_vm5, 1.0, %v3091_v57  ;;  %vm1572_vm5 = vcmp.eq.s32.totalorder %v2506_v6, 34 }
 0x3f8   : > { %1364 = vadd.xlane.f32.xlu0 %v1363_v56  ;;  %1369 = vadd.xlane.f32.xlu1 %v1368_v7 }
 0x3fc   : > { %1374 = vadd.xlane.f32.xlu0 %v1373_v43  ;;  %1379 = vadd.xlane.f32.xlu1 %v1378_v61 }
 0x400   : > { %1384 = vadd.xlane.f32.xlu0 %v1383_v45  ;;  %1389 = vadd.xlane.f32.xlu1 %v1388_v2  ;;  %v1851_v45 = vsel %vm1502_vm7, 1.0, %v3091_v57  ;;  %vm1582_vm7 = vcmp.eq.s32.totalorder %v2506_v6, 36 }
 0x404   : > { %1394 = vadd.xlane.f32.xlu0 %v1393_v22  ;;  %1399 = vadd.xlane.f32.xlu1 %v1398_v52 }
 0x451   : > { %v1245_v53 = vpop.xlane.xlu0 %1244  ;;  %v1255_v18 = vpop.xlane.xlu1 %1254 }
 0x452   : > { %v1485_v44 = vmul.f32 %v1847_v40, %v1245_v53  ;;  %v1495_v2 = vmul.f32 %v1849_v60, %v1255_v18 }
 0x454   : > { %v1486_v43 = vadd.f32 %v1485_v44, %v1481_v46  ;;  %v1864_v46 = vsel %vm1567_vm4, 1.0, %v3091_v57 }
 0x455   : > { %v1250_v56 = vpop.xlane.xlu0 %1249  ;;  %v1260_v7 = vpop.xlane.xlu1 %1259 }
 0x456   : > { %v1490_v61 = vmul.f32 %v1848_v5, %v1250_v56  ;;  %v1500_v52 = vmul.f32 %v1850_v20, %v1260_v7  ;;  %v1865_v56 = vsel %vm1572_vm5, 1.0, %v3091_v57 }
 0x458   : > { %v1491_v22 = vadd.f32 %v1490_v61, %v1486_v43  ;;  %v1866_v61 = vsel %vm1577_vm6, 1.0, %v3091_v57 }
 0x459   : > { %v1265_v63 = vpop.xlane.xlu0 %1264  ;;  %v1270_v48 = vpop.xlane.xlu1 %1269 }
 0x45a   : > { %v1496_v10 = vadd.f32 %v1495_v2, %v1491_v22  ;;  %v1505_v31 = vmul.f32 %v1851_v45, %v1265_v63  ;;  %v1510_v0 = vmul.f32 %v1852_v55, %v1270_v48 }
 0x45c   : > { %v1501_v28 = vadd.f32 %v1500_v52, %v1496_v10  ;;  %v1867_v52 = vsel %vm1582_vm7, 1.0, %v3091_v57  ;;  %v1868_v10 = vsel %vm1587_vm8, 1.0, %v3091_v57 }
 0x45d   : > { %v1275_v1 = vpop.xlane.xlu0 %1274  ;;  %v1280_v27 = vpop.xlane.xlu1 %1279 }
 0x45e   : > { %v1506_v15 = vadd.f32 %v1505_v31, %v1501_v28  ;;  %v1515_v13 = vmul.f32 %v1853_v32, %v1275_v1  ;;  %v1520_v4 = vmul.f32 %v1854_v51, %v1280_v27 }
 0x460   : > { %v1511_v54 = vadd.f32 %v1510_v0, %v1506_v15  ;;  %v1869_v0 = vsel %vm1592_vm9, 1.0, %v3091_v57  ;;  %v1870_v15 = vsel %vm1597_vm10, 1.0, %v3091_v57 }
 0x461   : > { %v1285_v47 = vpop.xlane.xlu0 %1284  ;;  %v1290_v14 = vpop.xlane.xlu1 %1289 }
 0x462   : > { %v1516_v35 = vadd.f32 %v1515_v13, %v1511_v54  ;;  %v1525_v36 = vmul.f32 %v1855_v62, %v1285_v47  ;;  %v1530_v39 = vmul.f32 %v1856_v33, %v1290_v14 }
 0x464   : > { %v1521_v59 = vadd.f32 %v1520_v4, %v1516_v35  ;;  %v1871_v4 = vsel %vm1602_vm11, 1.0, %v3091_v57  ;;  %v1872_v35 = vsel %vm1607_vm12, 1.0, %v3091_v57 }
 0x465   : > { %v1295_v58 = vpop.xlane.xlu0 %1294  ;;  %v1300_v21 = vpop.xlane.xlu1 %1299 }
 0x466   : > { %v1526_v16 = vadd.f32 %v1525_v36, %v1521_v59  ;;  %v1535_v8 = vmul.f32 %v1857_v9, %v1295_v58  ;;  %v1540_v24 = vmul.f32 %v1858_v12, %v1300_v21 }
 0x468   : > { %v1531_v50 = vadd.f32 %v1530_v39, %v1526_v16  ;;  %v1873_v39 = vsel %vm1612_vm13, 1.0, %v3091_v57  ;;  %v1874_v16 = vsel %vm1617_vm14, 1.0, %v3091_v57 }
 0x469   : > { %v1305_v26 = vpop.xlane.xlu0 %1304  ;;  %v1310_v37 = vpop.xlane.xlu1 %1309 }
 0x46a   : > { %v1536_v34 = vadd.f32 %v1535_v8, %v1531_v50  ;;  %v1545_v3 = vmul.f32 %v1859_v23, %v1305_v26  ;;  %v1550_v17 = vmul.f32 %v1860_v42, %v1310_v37 }
 0x46c   : > { %v1541_v29 = vadd.f32 %v1540_v24, %v1536_v34  ;;  %v1875_v24 = vsel %vm1622_vm15, 1.0, %v3091_v57  ;;  %v1876_v34 = vsel %vm1627_vm0, 1.0, %v3091_v57 }
 0x46d   : > { %v1315_v38 = vpop.xlane.xlu0 %1314  ;;  %v1320_v11 = vpop.xlane.xlu1 %1319 }
 0x46e   : > { %v1546_v41 = vadd.f32 %v1545_v3, %v1541_v29  ;;  %v1555_v49 = vmul.f32 %v1861_v25, %v1315_v38  ;;  %v1560_v53 = vmul.f32 %v1862_v30, %v1320_v11 }
 0x470   : > { %v1551_v40 = vadd.f32 %v1550_v17, %v1546_v41  ;;  %v1877_v17 = vsel %vm1632_vm1, 1.0, %v3091_v57  ;;  %v1878_v41 = vsel %vm1637_vm2, 1.0, %v3091_v57 }
 0x471   : > { %v1325_v18 = vpop.xlane.xlu0 %1324  ;;  %v1330_v44 = vpop.xlane.xlu1 %1329 }
 0x472   : > { %v1556_v5 = vadd.f32 %v1555_v49, %v1551_v40  ;;  %v1565_v60 = vmul.f32 %v1863_v19, %v1325_v18  ;;  %v1570_v7 = vmul.f32 %v1864_v46, %v1330_v44 }
 0x474   : > { %v1561_v20 = vadd.f32 %v1560_v53, %v1556_v5 }
 0x475   : > { %v1335_v43 = vpop.xlane.xlu0 %1334  ;;  %v1340_v45 = vpop.xlane.xlu1 %1339 }
 0x476   : > { %v1566_v2 = vadd.f32 %v1565_v60, %v1561_v20  ;;  %v1575_v22 = vmul.f32 %v1865_v56, %v1335_v43  ;;  %v1580_v55 = vmul.f32 %v1866_v61, %v1340_v45 }
 0x478   : > { %v1571_v63 = vadd.f32 %v1570_v7, %v1566_v2 }
 0x479   : > { %v1345_v48 = vpop.xlane.xlu0 %1344  ;;  %v1350_v31 = vpop.xlane.xlu1 %1349 }
 0x47a   : > { %v1576_v32 = vadd.f32 %v1575_v22, %v1571_v63  ;;  %v1585_v28 = vmul.f32 %v1867_v52, %v1345_v48  ;;  %v1590_v51 = vmul.f32 %v1868_v10, %v1350_v31 }
 0x47c   : > { %v1581_v1 = vadd.f32 %v1580_v55, %v1576_v32 }
 0x47d   : > { %v1355_v27 = vpop.xlane.xlu0 %1354  ;;  %v1360_v13 = vpop.xlane.xlu1 %1359 }
 0x47e   : > { %v1586_v62 = vadd.f32 %v1585_v28, %v1581_v1  ;;  %v1595_v54 = vmul.f32 %v1869_v0, %v1355_v27  ;;  %v1600_v33 = vmul.f32 %v1870_v15, %v1360_v13 }
 0x480   : > { %v1591_v47 = vadd.f32 %v1590_v51, %v1586_v62 }
 0x481   : > { %v1365_v14 = vpop.xlane.xlu0 %1364  ;;  %v1370_v36 = vpop.xlane.xlu1 %1369 }
 0x482   : > { %v1596_v9 = vadd.f32 %v1595_v54, %v1591_v47  ;;  %v1605_v59 = vmul.f32 %v1871_v4, %v1365_v14  ;;  %v1610_v12 = vmul.f32 %v1872_v35, %v1370_v36 }
 0x484   : > { %v1601_v58 = vadd.f32 %v1600_v33, %v1596_v9 }
 0x485   : > { %v1375_v21 = vpop.xlane.xlu0 %1374  ;;  %v1380_v8 = vpop.xlane.xlu1 %1379 }
 0x486   : > { %v1606_v23 = vadd.f32 %v1605_v59, %v1601_v58  ;;  %v1615_v50 = vmul.f32 %v1873_v39, %v1375_v21  ;;  %v1620_v42 = vmul.f32 %v1874_v16, %v1380_v8 }
 0x488   : > { %v1611_v26 = vadd.f32 %v1610_v12, %v1606_v23 }
 0x489   : > { %v1385_v37 = vpop.xlane.xlu0 %1384  ;;  %v1390_v3 = vpop.xlane.xlu1 %1389 }
 0x48a   : > { %v1616_v25 = vadd.f32 %v1615_v50, %v1611_v26  ;;  %v1625_v29 = vmul.f32 %v1875_v24, %v1385_v37  ;;  %v1630_v30 = vmul.f32 %v1876_v34, %v1390_v3 }
 0x48c   : > { %v1621_v38 = vadd.f32 %v1620_v42, %v1616_v25 }
 0x48d   : > { %v1395_v11 = vpop.xlane.xlu0 %1394  ;;  %v1400_v49 = vpop.xlane.xlu1 %1399 }
 0x48e   : > { %v1626_v19 = vadd.f32 %v1625_v29, %v1621_v38  ;;  %v1635_v40 = vmul.f32 %v1877_v17, %v1395_v11  ;;  %v1640_v18 = vmul.f32 %v1878_v41, %v1400_v49 }
 0x490   : > { %v1631_v53 = vadd.f32 %v1630_v30, %v1626_v19 }
 0x492   : > { %v1636_v46 = vadd.f32 %v1635_v40, %v1631_v53 }
 0x494   : > { %v1641_v44 = vadd.f32 %v1640_v18, %v1636_v46 }
 0x496   : > { %1642 = vst [vmem:[%s2762_s28] sm:$0xff] %v1641_v44 }
 0x497   : > { %2189 = shalt.err (!%p2186_p9)
}
 0x498   : > { %s2190_s24 = scalar_lea.hbm %s1655_s7, 128  ;;  %s2194_s27 = scalar_lea.hbm %s3050_s5, 256 }
 0x499   : > { %p2191_p8 = scmp.ne.s32.totalorder %s1655_s7, %s2190_s24  ;;  %p2195_p12 = scmp.lt.s32.totalorder %s1655_s7, %s3050_s5 }
 0x49a   : > { %p2196_p0 = scmp.lt.s32.totalorder %s2194_s27, %s2190_s24 }
 0x49b   : > { %p2192_p7 = pnand %p2191_p8, %p3092_p10 }
 0x49c   : > { %p2197_p2 = por %p2196_p0, %p2195_p12 }
 0x49d   : > { %p2193_p13 = pneg %p2192_p7 }
 0x49f   : > { %p2198_p4 = pnand %p2197_p2, %p2193_p13 }
 0x4a1   : > { %2201 = shalt.err (!%p2198_p4)
}
 0x4a2   : > { %1913 = dma.vmem_to_hbm [thread:$0]  (%p3092_p10), %s1658_s16, 128, %s1655_s7, %s1644_s15  }
 0x4a3 PF: > { %s1669_s10 = sand.u32 1, %s2248_s18   ;;  %p3093_p11 = scmp.ne.s32.totalorder %s3067_s9, 0 }
 0x4a4   : > { %p3094_p1 = scmp.ge.s32.totalorder %s2260_s21, 2  ;;  %s1670_s6 = scalar_lea.sflag [#allocation5], %s1669_s10 }
 0x4a6   : > { %p1933_p3 = pnand %p3094_p1, %p3093_p11 }
 0x4a8   : > { %p1934_p6 = pneg %p1933_p3 }
 0x4aa   : > { %2243 = dma.done.wait (%p1934_p6), %s1670_s6, 128  }
 0x4ab   : > { %2245 = vsyncadd (%p1934_p6), %s1670_s6, 4294967168  ;;  %p22_p5 = scmp.ge.s32.totalorder %s2403_s26, 4   ;;  %s3095_s18 = smov %s2252_s19 }
 0x4ac   : > { %s3096_s19 = smov %s2256_s20  ;;  %s3097_s20 = smov %s2414_s29 }
 0x4ad   : > { %s3098_s21 = smov %s2403_s26  ;;  %24 = sbr.rel (!%p22_p5) target bundleno = 9 (0x9), region = 187 }
 0x4b2   :  { %1675 = vsyncpa [#allocation4], 1 }
 0x4b3   :  { %1677 = vsyncpa [#allocation4 + $0x1], 1 }
 0x4b4   :  { %1678 = vsyncpa [#allocation9], 1 }
 0x4b5   :  { %1679 = vsyncpa [#allocation5], 1 }
 0x4b6   :  { %1681 = vsyncpa [#allocation5 + $0x1], 1 }
 0x4b7   :  { %1682 = vsyncpa [#allocation6], 1 }
 0x4b8   :  { %1684 = vsyncpa [#allocation6 + $0x1], 1 }
 0x4b9   :  { %1685 = vsyncpa [#allocation7], 1 }
 0x4ba   :  { %1687 = vsyncpa [#allocation7 + $0x1], 1 }
 0x4bb   :  { %1688 = vsyncpa [#allocation13], 1 }

</bundles_post_ra>
